<compile_context>
chip_gen: v5e
topology: v5e:2x2
jax: 0.10.0
libtpu: 0.0.40
codegen_flags: <defaults>
</compile_context>

<pallas_src>
import functools

import jax
import jax.numpy as jnp
from jax.experimental import pallas as pl
from jax.experimental.pallas import tpu as pltpu


def _round_up(x, m):
    return ((x + m - 1) // m) * m


# ---------------------------------------------------------------------------
# Pallas kernel: 3x3 conv as 9 tap-GEMMs (in-kernel im2col) + bias + ReLU
# ---------------------------------------------------------------------------
def _conv3x3_kernel(x_ref, w_ref, b_ref, o_ref, *, taps, mq, apply_relu):
    """One batch element.

    x_ref : [1, P, Lp, Cin]  bf16  -- P stride-phases, spatially flattened
    w_ref : [9, Cin, Cout]   bf16  -- tap-major (di*3 + dj)
    b_ref : [1, Cout]        f32
    o_ref : [1, Mq, Cout]          -- Mq = Ho*Wq rows (Wq-Wo garbage cols kept)
    """
    cout = o_ref.shape[-1]
    acc = jnp.zeros((mq, cout), jnp.float32)
    for t, (p, start) in enumerate(taps):
        xt = x_ref[0, p, pl.ds(start, mq), :]          # [Mq, Cin] bf16, contiguous
        acc = acc + jnp.dot(xt, w_ref[t], preferred_element_type=jnp.float32)
    acc = acc + b_ref[...]                             # f32 epilogue (v5e-safe)
    if apply_relu:
        acc = jnp.maximum(acc, 0.0)
    o_ref[0] = acc.astype(o_ref.dtype)


def conv3x3(x_nhwc, w_taps, bias_row, *, stride, out_dtype, apply_relu):
    """3x3 conv, padding=1, stride in {1,2}, PyTorch semantics, NHWC activations.

    x_nhwc  : [B, H, W, Cin]
    w_taps  : [9, Cin, Cout] bf16 (pre-flattened torch weight, tap-major)
    bias_row: [1, Cout] f32
    returns : [B, Ho, Wo, Cout] in out_dtype
    """
    k, pad = 3, 1
    s = stride
    B, H, W, Cin = x_nhwc.shape
    Cout = w_taps.shape[-1]
    Ho = (H + 2 * pad - k) // s + 1
    Wo = (W + 2 * pad - k) // s + 1

    xp = jnp.pad(x_nhwc, ((0, 0), (pad, pad), (pad, pad), (0, 0))).astype(jnp.bfloat16)
    Hp, Wp = H + 2 * pad, W + 2 * pad

    # Phase split so every in-kernel tap slice is contiguous (no strided loads).
    if s == 1:
        Hq, Wq = Hp, Wp
        phases = xp[:, None]                                      # [B, 1, Hq, Wq, Cin]
    else:
        assert Hp % 2 == 0 and Wp % 2 == 0, "even H, W required for stride-2 conv"
        Hq, Wq = Hp // 2, Wp // 2
        phases = jnp.stack(
            [xp[:, pi::2, pj::2, :] for pi in range(2) for pj in range(2)], axis=1
        )                                                          # [B, 4, Hq, Wq, Cin]
    P = s * s
    L = Hq * Wq
    Lp = _round_up(L + Wq, 8)          # slack so every tap slice stays in bounds
    xf = jnp.pad(phases.reshape(B, P, L, Cin), ((0, 0), (0, 0), (0, Lp - L), (0, 0)))

    Mq = Ho * Wq                        # output rows incl. Wq-Wo garbage columns
    taps = tuple(
        ((di % s) * s + (dj % s), (di // s) * Wq + (dj // s))
        for di in range(k) for dj in range(k)
    )

    out = pl.pallas_call(
        functools.partial(_conv3x3_kernel, taps=taps, mq=Mq, apply_relu=apply_relu),
        out_shape=jax.ShapeDtypeStruct((B, Mq, Cout), out_dtype),
        grid=(B,),
        in_specs=[
            pl.BlockSpec((1, P, Lp, Cin), lambda b: (b, 0, 0, 0)),  # activation (pipelined over B)
            pl.BlockSpec((9, Cin, Cout), lambda b: (0, 0, 0)),      # weights resident
            pl.BlockSpec((1, Cout), lambda b: (0, 0)),              # bias resident
        ],
        out_specs=pl.BlockSpec((1, Mq, Cout), lambda b: (b, 0, 0)),
        compiler_params=pltpu.CompilerParams(
            dimension_semantics=("parallel",),
        ),
    )(xf, w_taps, bias_row)

    # Drop the Wq-Wo garbage columns (row-major view; fuses into the consumer).
    return out.reshape(B, Ho, Wq, Cout)[:, :, :Wo, :]


# ---------------------------------------------------------------------------
# Parameters (torch layout) + one-time preprocessing into kernel layout
# ---------------------------------------------------------------------------
def _init_conv(key, cin, cout, k=3, scale=0.05):
    kw_, kb_ = jax.random.split(key)
    w = scale * jax.random.normal(kw_, (cout, cin, k, k), jnp.float32)
    b = scale * jax.random.normal(kb_, (cout,), jnp.float32)
    return w, b


def make_params(key, num_classes, num_anchors):
    ks = jax.random.split(key, 6)
    return {
        "backbone": {
            "conv1": _init_conv(ks[0], 3, 8),    # stride 2
            "conv2": _init_conv(ks[1], 8, 16),   # stride 2
        },
        "head": {
            "cls": [
                _init_conv(ks[2], 8, num_anchors[0] * num_classes),
                _init_conv(ks[3], 16, num_anchors[1] * num_classes),
            ],
            "reg": [
                _init_conv(ks[4], 8, num_anchors[0] * 4),
                _init_conv(ks[5], 16, num_anchors[1] * 4),
            ],
        },
    }


def _prep_conv(w, b):
    """torch [Cout, Cin, k, k] -> ([k*k, Cin, Cout] bf16 taps, [1, Cout] f32)."""
    cout, cin, kh, kw = w.shape
    w_taps = jnp.transpose(w, (2, 3, 1, 0)).reshape(kh * kw, cin, cout)
    return w_taps.astype(jnp.bfloat16), jnp.asarray(b, jnp.float32).reshape(1, cout)


def prepare_params(params):
    """One-time weight preprocessing, hoisted out of the jitted forward."""
    backbone = {n: _prep_conv(*params["backbone"][n]) for n in ("conv1", "conv2")}
    head = []
    for (wc, bc), (wr, br) in zip(params["head"]["cls"], params["head"]["reg"]):
        w9c, b1c = _prep_conv(wc, bc)
        w9r, b1r = _prep_conv(wr, br)
        head.append((jnp.concatenate([w9c, w9r], axis=-1),     # cls channels first
                     jnp.concatenate([b1c, b1r], axis=-1)))
    return {"backbone": backbone, "head": head}


# ---------------------------------------------------------------------------
# Model components (backbone / prior generator / multibox head)
# ---------------------------------------------------------------------------
def backbone_forward(bparams, x_nchw):
    x = jnp.transpose(x_nchw, (0, 2, 3, 1))                        # NCHW -> NHWC once
    w1, b1 = bparams["conv1"]
    w2, b2 = bparams["conv2"]
    f1 = conv3x3(x, w1, b1, stride=2, out_dtype=jnp.bfloat16, apply_relu=True)
    f2 = conv3x3(f1, w2, b2, stride=2, out_dtype=jnp.bfloat16, apply_relu=True)
    return [f1, f2]


def prior_generator(features_nhwc, num_anchors):
    """SSD-style priors (cx, cy, w, h) in [0, 1]; plain-JAX glue."""
    cfg = [
        (0.2, 0.5, [2.0, 0.5]),                 # 4 anchors / location
        (0.5, 0.9, [2.0, 0.5, 3.0, 1.0 / 3]),   # 6 anchors / location
    ]
    priors = []
    for feat, (sk, sk1, ratios), a in zip(features_nhwc, cfg, num_anchors):
        Hf, Wf = feat.shape[1], feat.shape[2]
        ys = (jnp.arange(Hf, dtype=jnp.float32) + 0.5) / Hf
        xs = (jnp.arange(Wf, dtype=jnp.float32) + 0.5) / Wf
        cy, cx = jnp.meshgrid(ys, xs, indexing="ij")
        whs = [(sk, sk), (float((sk * sk1) ** 0.5),) * 2]
        for r in ratios:
            rs = r ** 0.5
            whs.append((sk * rs, sk / rs))
        assert len(whs) == a
        per_loc = [
            jnp.stack([cx, cy, jnp.full_like(cx, w), jnp.full_like(cy, h)], axis=-1)
            for (w, h) in whs
        ]
        boxes = jnp.stack(per_loc, axis=2)                          # [Hf, Wf, A, 4]
        priors.append(boxes.reshape(-1, 4))
    return jnp.clip(jnp.concatenate(priors, axis=0), 0.0, 1.0)


def multibox_head_forward(hparams, features_nhwc, num_classes, num_anchors):
    """Per level: ONE fused conv for cls+reg heads (shared feature map)."""
    logits_all, boxes_all = [], []
    B = features_nhwc[0].shape[0]
    for feat, (w, b), a in zip(features_nhwc, hparams, num_anchors):
        n_cls = a * num_classes
        out = conv3x3(feat, w, b, stride=1, out_dtype=jnp.float32, apply_relu=False)
        # NHWC conv output == torch conv output .permute(0,2,3,1): flatten directly.
        logits_all.append(out[..., :n_cls].reshape(B, -1))
        boxes_all.append(out[..., n_cls:].reshape(B, -1))
    logits = jnp.concatenate(logits_all, axis=1).reshape(B, -1, num_classes)
    bbox_reg = jnp.concatenate(boxes_all, axis=1).reshape(B, -1, 4)
    return logits, bbox_reg


# ---------------------------------------------------------------------------
# GeneralizedSSD forward (training path -> returns the out_ssd dict)
# ---------------------------------------------------------------------------
def generalized_ssd_forward(params, samples, num_classes, num_anchors):
    features = backbone_forward(params["backbone"], samples)        # NHWC, bf16
    priors = prior_generator(features, num_anchors)
    logits, bbox_reg = multibox_head_forward(params["head"], features,
                                             num_classes, num_anchors)
    # TODO(synk): post_process (box decode + per-image NMS / top-k) has no clean
    # Pallas equivalent; the eval-mode `detections` path is not implemented.
    return {"pred_logits": logits, "pred_boxes": bbox_reg, "priors": priors}


if __name__ == "__main__":
    num_classes = 3
    num_anchors = (4, 6)

    key = jax.random.PRNGKey(0)
    k_param, k_data = jax.random.split(key)
    params = prepare_params(make_params(k_param, num_classes, num_anchors))

    # samples.tensor: [batch_size x 3 x H x W]
    x = jax.random.normal(k_data, (2, 3, 16, 16), jnp.float32)

    fwd = jax.jit(
        functools.partial(
            generalized_ssd_forward,
            num_classes=num_classes,
            num_anchors=num_anchors,
        )
    )
    out = jax.block_until_ready(fwd(params, x))

    # sanity: 8*8*4 + 4*4*6 = 352 anchors total
    assert out["pred_logits"].shape == (2, 352, num_classes)
    assert out["pred_boxes"].shape == (2, 352, 4)
    assert out["priors"].shape == (352, 4)
    assert bool(jnp.isfinite(out["pred_logits"]).all())
    assert bool(jnp.isfinite(out["pred_boxes"]).all())

    print("KERNEL_OK")
</pallas_src>

<mosaic_0001>
module attributes {stable_mosaic.version = 11 : i64} {
  func.func @_conv3x3_kernel(%arg0: i32, %arg1: memref<1x4x96x3xbf16, #tpu.memory_space<vmem>>, %arg2: memref<9x3x8xbf16, #tpu.memory_space<vmem>>, %arg3: memref<1x8xf32, #tpu.memory_space<vmem>>, %arg4: memref<1x72x8xbf16, #tpu.memory_space<vmem>>) attributes {dimension_semantics = [#tpu.dimension_semantics<parallel>], iteration_bounds = array<i64: 2>, scalar_prefetch = 0 : i64, scratch_operands = 0 : i64, tpu.core_type = #tpu.core_type<tc>, window_params = [{transform_indices = @transform_0, window_bounds = array<i64: 1, 4, 96, 3>}, {pipeline_mode = #tpu.pipeline_mode<synchronous>, transform_indices = @transform_1, window_bounds = array<i64: 9, 3, 8>}, {pipeline_mode = #tpu.pipeline_mode<synchronous>, transform_indices = @transform_2, window_bounds = array<i64: 1, 8>}, {transform_indices = @transform_3, window_bounds = array<i64: 1, 72, 8>}]} {
    %cst = arith.constant 0.000000e+00 : f32
    %0 = vector.broadcast %cst : f32 to vector<72x8xf32>
    %c0 = arith.constant 0 : index
    %c0_0 = arith.constant 0 : index
    %c0_1 = arith.constant 0 : index
    %c0_2 = arith.constant 0 : index
    %1 = vector.load %arg1[%c0, %c0_0, %c0_1, %c0_2] : memref<1x4x96x3xbf16, #tpu.memory_space<vmem>>, vector<1x1x72x3xbf16>
    %2 = vector.shape_cast %1 : vector<1x1x72x3xbf16> to vector<72x3xbf16>
    %c0_3 = arith.constant 0 : index
    %c0_4 = arith.constant 0 : index
    %c0_5 = arith.constant 0 : index
    %3 = vector.load %arg2[%c0_3, %c0_4, %c0_5] : memref<9x3x8xbf16, #tpu.memory_space<vmem>>, vector<1x3x8xbf16>
    %4 = vector.shape_cast %3 : vector<1x3x8xbf16> to vector<3x8xbf16>
    %cst_6 = arith.constant dense<0.000000e+00> : vector<72x8xf32>
    %5 = tpu.matmul %2, %4, %cst_6 {dimension_numbers = #tpu.dot_dimension_numbers<[1], [0], [0], [1], [0, 0, 1, 1], [], []>} : vector<72x3xbf16>, vector<3x8xbf16>, vector<72x8xf32> -> vector<72x8xf32>
    %6 = arith.addf %0, %5 : vector<72x8xf32>
    %c0_7 = arith.constant 0 : index
    %c1 = arith.constant 1 : index
    %c0_8 = arith.constant 0 : index
    %c0_9 = arith.constant 0 : index
    %7 = vector.load %arg1[%c0_7, %c1, %c0_8, %c0_9] : memref<1x4x96x3xbf16, #tpu.memory_space<vmem>>, vector<1x1x72x3xbf16>
    %8 = vector.shape_cast %7 : vector<1x1x72x3xbf16> to vector<72x3xbf16>
    %c1_10 = arith.constant 1 : index
    %c0_11 = arith.constant 0 : index
    %c0_12 = arith.constant 0 : index
    %9 = vector.load %arg2[%c1_10, %c0_11, %c0_12] : memref<9x3x8xbf16, #tpu.memory_space<vmem>>, vector<1x3x8xbf16>
    %10 = vector.shape_cast %9 : vector<1x3x8xbf16> to vector<3x8xbf16>
    %cst_13 = arith.constant dense<0.000000e+00> : vector<72x8xf32>
    %11 = tpu.matmul %8, %10, %cst_13 {dimension_numbers = #tpu.dot_dimension_numbers<[1], [0], [0], [1], [0, 0, 1, 1], [], []>} : vector<72x3xbf16>, vector<3x8xbf16>, vector<72x8xf32> -> vector<72x8xf32>
    %12 = arith.addf %6, %11 : vector<72x8xf32>
    %c0_14 = arith.constant 0 : index
    %c0_15 = arith.constant 0 : index
    %c1_16 = arith.constant 1 : index
    %c0_17 = arith.constant 0 : index
    %13 = vector.load %arg1[%c0_14, %c0_15, %c1_16, %c0_17] : memref<1x4x96x3xbf16, #tpu.memory_space<vmem>>, vector<1x1x72x3xbf16>
    %14 = vector.shape_cast %13 : vector<1x1x72x3xbf16> to vector<72x3xbf16>
    %c2 = arith.constant 2 : index
    %c0_18 = arith.constant 0 : index
    %c0_19 = arith.constant 0 : index
    %15 = vector.load %arg2[%c2, %c0_18, %c0_19] : memref<9x3x8xbf16, #tpu.memory_space<vmem>>, vector<1x3x8xbf16>
    %16 = vector.shape_cast %15 : vector<1x3x8xbf16> to vector<3x8xbf16>
    %cst_20 = arith.constant dense<0.000000e+00> : vector<72x8xf32>
    %17 = tpu.matmul %14, %16, %cst_20 {dimension_numbers = #tpu.dot_dimension_numbers<[1], [0], [0], [1], [0, 0, 1, 1], [], []>} : vector<72x3xbf16>, vector<3x8xbf16>, vector<72x8xf32> -> vector<72x8xf32>
    %18 = arith.addf %12, %17 : vector<72x8xf32>
    %c0_21 = arith.constant 0 : index
    %c2_22 = arith.constant 2 : index
    %c0_23 = arith.constant 0 : index
    %c0_24 = arith.constant 0 : index
    %19 = vector.load %arg1[%c0_21, %c2_22, %c0_23, %c0_24] : memref<1x4x96x3xbf16, #tpu.memory_space<vmem>>, vector<1x1x72x3xbf16>
    %20 = vector.shape_cast %19 : vector<1x1x72x3xbf16> to vector<72x3xbf16>
    %c3 = arith.constant 3 : index
    %c0_25 = arith.constant 0 : index
    %c0_26 = arith.constant 0 : index
    %21 = vector.load %arg2[%c3, %c0_25, %c0_26] : memref<9x3x8xbf16, #tpu.memory_space<vmem>>, vector<1x3x8xbf16>
    %22 = vector.shape_cast %21 : vector<1x3x8xbf16> to vector<3x8xbf16>
    %cst_27 = arith.constant dense<0.000000e+00> : vector<72x8xf32>
    %23 = tpu.matmul %20, %22, %cst_27 {dimension_numbers = #tpu.dot_dimension_numbers<[1], [0], [0], [1], [0, 0, 1, 1], [], []>} : vector<72x3xbf16>, vector<3x8xbf16>, vector<72x8xf32> -> vector<72x8xf32>
    %24 = arith.addf %18, %23 : vector<72x8xf32>
    %c0_28 = arith.constant 0 : index
    %c3_29 = arith.constant 3 : index
    %c0_30 = arith.constant 0 : index
    %c0_31 = arith.constant 0 : index
    %25 = vector.load %arg1[%c0_28, %c3_29, %c0_30, %c0_31] : memref<1x4x96x3xbf16, #tpu.memory_space<vmem>>, vector<1x1x72x3xbf16>
    %26 = vector.shape_cast %25 : vector<1x1x72x3xbf16> to vector<72x3xbf16>
    %c4 = arith.constant 4 : index
    %c0_32 = arith.constant 0 : index
    %c0_33 = arith.constant 0 : index
    %27 = vector.load %arg2[%c4, %c0_32, %c0_33] : memref<9x3x8xbf16, #tpu.memory_space<vmem>>, vector<1x3x8xbf16>
    %28 = vector.shape_cast %27 : vector<1x3x8xbf16> to vector<3x8xbf16>
    %cst_34 = arith.constant dense<0.000000e+00> : vector<72x8xf32>
    %29 = tpu.matmul %26, %28, %cst_34 {dimension_numbers = #tpu.dot_dimension_numbers<[1], [0], [0], [1], [0, 0, 1, 1], [], []>} : vector<72x3xbf16>, vector<3x8xbf16>, vector<72x8xf32> -> vector<72x8xf32>
    %30 = arith.addf %24, %29 : vector<72x8xf32>
    %c0_35 = arith.constant 0 : index
    %c2_36 = arith.constant 2 : index
    %c1_37 = arith.constant 1 : index
    %c0_38 = arith.constant 0 : index
    %31 = vector.load %arg1[%c0_35, %c2_36, %c1_37, %c0_38] : memref<1x4x96x3xbf16, #tpu.memory_space<vmem>>, vector<1x1x72x3xbf16>
    %32 = vector.shape_cast %31 : vector<1x1x72x3xbf16> to vector<72x3xbf16>
    %c5 = arith.constant 5 : index
    %c0_39 = arith.constant 0 : index
    %c0_40 = arith.constant 0 : index
    %33 = vector.load %arg2[%c5, %c0_39, %c0_40] : memref<9x3x8xbf16, #tpu.memory_space<vmem>>, vector<1x3x8xbf16>
    %34 = vector.shape_cast %33 : vector<1x3x8xbf16> to vector<3x8xbf16>
    %cst_41 = arith.constant dense<0.000000e+00> : vector<72x8xf32>
    %35 = tpu.matmul %32, %34, %cst_41 {dimension_numbers = #tpu.dot_dimension_numbers<[1], [0], [0], [1], [0, 0, 1, 1], [], []>} : vector<72x3xbf16>, vector<3x8xbf16>, vector<72x8xf32> -> vector<72x8xf32>
    %36 = arith.addf %30, %35 : vector<72x8xf32>
    %c0_42 = arith.constant 0 : index
    %c0_43 = arith.constant 0 : index
    %c9 = arith.constant 9 : index
    %c0_44 = arith.constant 0 : index
    %37 = vector.load %arg1[%c0_42, %c0_43, %c9, %c0_44] : memref<1x4x96x3xbf16, #tpu.memory_space<vmem>>, vector<1x1x72x3xbf16>
    %38 = vector.shape_cast %37 : vector<1x1x72x3xbf16> to vector<72x3xbf16>
    %c6 = arith.constant 6 : index
    %c0_45 = arith.constant 0 : index
    %c0_46 = arith.constant 0 : index
    %39 = vector.load %arg2[%c6, %c0_45, %c0_46] : memref<9x3x8xbf16, #tpu.memory_space<vmem>>, vector<1x3x8xbf16>
    %40 = vector.shape_cast %39 : vector<1x3x8xbf16> to vector<3x8xbf16>
    %cst_47 = arith.constant dense<0.000000e+00> : vector<72x8xf32>
    %41 = tpu.matmul %38, %40, %cst_47 {dimension_numbers = #tpu.dot_dimension_numbers<[1], [0], [0], [1], [0, 0, 1, 1], [], []>} : vector<72x3xbf16>, vector<3x8xbf16>, vector<72x8xf32> -> vector<72x8xf32>
    %42 = arith.addf %36, %41 : vector<72x8xf32>
    %c0_48 = arith.constant 0 : index
    %c1_49 = arith.constant 1 : index
    %c9_50 = arith.constant 9 : index
    %c0_51 = arith.constant 0 : index
    %43 = vector.load %arg1[%c0_48, %c1_49, %c9_50, %c0_51] : memref<1x4x96x3xbf16, #tpu.memory_space<vmem>>, vector<1x1x72x3xbf16>
    %44 = vector.shape_cast %43 : vector<1x1x72x3xbf16> to vector<72x3xbf16>
    %c7 = arith.constant 7 : index
    %c0_52 = arith.constant 0 : index
    %c0_53 = arith.constant 0 : index
    %45 = vector.load %arg2[%c7, %c0_52, %c0_53] : memref<9x3x8xbf16, #tpu.memory_space<vmem>>, vector<1x3x8xbf16>
    %46 = vector.shape_cast %45 : vector<1x3x8xbf16> to vector<3x8xbf16>
    %cst_54 = arith.constant dense<0.000000e+00> : vector<72x8xf32>
    %47 = tpu.matmul %44, %46, %cst_54 {dimension_numbers = #tpu.dot_dimension_numbers<[1], [0], [0], [1], [0, 0, 1, 1], [], []>} : vector<72x3xbf16>, vector<3x8xbf16>, vector<72x8xf32> -> vector<72x8xf32>
    %48 = arith.addf %42, %47 : vector<72x8xf32>
    %c0_55 = arith.constant 0 : index
    %c0_56 = arith.constant 0 : index
    %c10 = arith.constant 10 : index
    %c0_57 = arith.constant 0 : index
    %49 = vector.load %arg1[%c0_55, %c0_56, %c10, %c0_57] : memref<1x4x96x3xbf16, #tpu.memory_space<vmem>>, vector<1x1x72x3xbf16>
    %50 = vector.shape_cast %49 : vector<1x1x72x3xbf16> to vector<72x3xbf16>
    %c8 = arith.constant 8 : index
    %c0_58 = arith.constant 0 : index
    %c0_59 = arith.constant 0 : index
    %51 = vector.load %arg2[%c8, %c0_58, %c0_59] : memref<9x3x8xbf16, #tpu.memory_space<vmem>>, vector<1x3x8xbf16>
    %52 = vector.shape_cast %51 : vector<1x3x8xbf16> to vector<3x8xbf16>
    %cst_60 = arith.constant dense<0.000000e+00> : vector<72x8xf32>
    %53 = tpu.matmul %50, %52, %cst_60 {dimension_numbers = #tpu.dot_dimension_numbers<[1], [0], [0], [1], [0, 0, 1, 1], [], []>} : vector<72x3xbf16>, vector<3x8xbf16>, vector<72x8xf32> -> vector<72x8xf32>
    %54 = arith.addf %48, %53 : vector<72x8xf32>
    %c0_61 = arith.constant 0 : index
    %c0_62 = arith.constant 0 : index
    %55 = vector.load %arg3[%c0_61, %c0_62] : memref<1x8xf32, #tpu.memory_space<vmem>>, vector<1x8xf32>
    %56 = vector.broadcast %55 : vector<1x8xf32> to vector<72x8xf32>
    %57 = arith.addf %54, %56 : vector<72x8xf32>
    %cst_63 = arith.constant 0.000000e+00 : f32
    %58 = vector.broadcast %cst_63 : f32 to vector<72x8xf32>
    %59 = arith.maximumf %57, %58 : vector<72x8xf32>
    %60 = arith.truncf %59 : vector<72x8xf32> to vector<72x8xbf16>
    %c0_64 = arith.constant 0 : index
    %c0_65 = arith.constant 0 : index
    %c0_66 = arith.constant 0 : index
    %61 = vector.load %arg4[%c0_64, %c0_65, %c0_66] : memref<1x72x8xbf16, #tpu.memory_space<vmem>>, vector<1x72x8xbf16>
    %62 = vector.shape_cast %61 : vector<1x72x8xbf16> to vector<72x8xbf16>
    %63 = vector.shape_cast %60 : vector<72x8xbf16> to vector<1x72x8xbf16>
    tpu.vector_store %arg4[%c0_64, %c0_65, %c0_66], %63 {strides = array<i32>} : memref<1x72x8xbf16, #tpu.memory_space<vmem>>, vector<1x72x8xbf16>,
    return
  }
  func.func @transform_0(%arg0: i32) -> (i32, i32, i32, i32) {
    %c0_i32 = arith.constant 0 : i32
    %c0_i32_0 = arith.constant 0 : i32
    %c0_i32_1 = arith.constant 0 : i32
    %c0_i32_2 = arith.constant 0 : i32
    return %arg0, %c0_i32, %c0_i32_0, %c0_i32_1 : i32, i32, i32, i32
  }
  func.func @transform_1(%arg0: i32) -> (i32, i32, i32) {
    %c0_i32 = arith.constant 0 : i32
    %c0_i32_0 = arith.constant 0 : i32
    %c0_i32_1 = arith.constant 0 : i32
    %c0_i32_2 = arith.constant 0 : i32
    return %c0_i32, %c0_i32_0, %c0_i32_1 : i32, i32, i32
  }
  func.func @transform_2(%arg0: i32) -> (i32, i32) {
    %c0_i32 = arith.constant 0 : i32
    %c0_i32_0 = arith.constant 0 : i32
    %c0_i32_1 = arith.constant 0 : i32
    return %c0_i32, %c0_i32_0 : i32, i32
  }
  func.func @transform_3(%arg0: i32) -> (i32, i32, i32) {
    %c0_i32 = arith.constant 0 : i32
    %c0_i32_0 = arith.constant 0 : i32
    %c0_i32_1 = arith.constant 0 : i32
    return %arg0, %c0_i32, %c0_i32_0 : i32, i32, i32
  }
}

module attributes {stable_mosaic.version = 11 : i64} {
  func.func @_conv3x3_kernel(%arg0: i32, %arg1: memref<1x4x32x8xbf16, #tpu.memory_space<vmem>>, %arg2: memref<9x8x16xbf16, #tpu.memory_space<vmem>>, %arg3: memref<1x16xf32, #tpu.memory_space<vmem>>, %arg4: memref<1x20x16xbf16, #tpu.memory_space<vmem>>) attributes {dimension_semantics = [#tpu.dimension_semantics<parallel>], iteration_bounds = array<i64: 2>, scalar_prefetch = 0 : i64, scratch_operands = 0 : i64, tpu.core_type = #tpu.core_type<tc>, window_params = [{transform_indices = @transform_0, window_bounds = array<i64: 1, 4, 32, 8>}, {pipeline_mode = #tpu.pipeline_mode<synchronous>, transform_indices = @transform_1, window_bounds = array<i64: 9, 8, 16>}, {pipeline_mode = #tpu.pipeline_mode<synchronous>, transform_indices = @transform_2, window_bounds = array<i64: 1, 16>}, {transform_indices = @transform_3, window_bounds = array<i64: 1, 20, 16>}]} {
    %cst = arith.constant 0.000000e+00 : f32
    %0 = vector.broadcast %cst : f32 to vector<20x16xf32>
    %c0 = arith.constant 0 : index
    %c0_0 = arith.constant 0 : index
    %c0_1 = arith.constant 0 : index
    %c0_2 = arith.constant 0 : index
    %1 = vector.load %arg1[%c0, %c0_0, %c0_1, %c0_2] : memref<1x4x32x8xbf16, #tpu.memory_space<vmem>>, vector<1x1x20x8xbf16>
    %2 = vector.shape_cast %1 : vector<1x1x20x8xbf16> to vector<20x8xbf16>
    %c0_3 = arith.constant 0 : index
    %c0_4 = arith.constant 0 : index
    %c0_5 = arith.constant 0 : index
    %3 = vector.load %arg2[%c0_3, %c0_4, %c0_5] : memref<9x8x16xbf16, #tpu.memory_space<vmem>>, vector<1x8x16xbf16>
    %4 = vector.shape_cast %3 : vector<1x8x16xbf16> to vector<8x16xbf16>
    %cst_6 = arith.constant dense<0.000000e+00> : vector<20x16xf32>
    %5 = tpu.matmul %2, %4, %cst_6 {dimension_numbers = #tpu.dot_dimension_numbers<[1], [0], [0], [1], [0, 0, 1, 1], [], []>} : vector<20x8xbf16>, vector<8x16xbf16>, vector<20x16xf32> -> vector<20x16xf32>
    %6 = arith.addf %0, %5 : vector<20x16xf32>
    %c0_7 = arith.constant 0 : index
    %c1 = arith.constant 1 : index
    %c0_8 = arith.constant 0 : index
    %c0_9 = arith.constant 0 : index
    %7 = vector.load %arg1[%c0_7, %c1, %c0_8, %c0_9] : memref<1x4x32x8xbf16, #tpu.memory_space<vmem>>, vector<1x1x20x8xbf16>
    %8 = vector.shape_cast %7 : vector<1x1x20x8xbf16> to vector<20x8xbf16>
    %c1_10 = arith.constant 1 : index
    %c0_11 = arith.constant 0 : index
    %c0_12 = arith.constant 0 : index
    %9 = vector.load %arg2[%c1_10, %c0_11, %c0_12] : memref<9x8x16xbf16, #tpu.memory_space<vmem>>, vector<1x8x16xbf16>
    %10 = vector.shape_cast %9 : vector<1x8x16xbf16> to vector<8x16xbf16>
    %cst_13 = arith.constant dense<0.000000e+00> : vector<20x16xf32>
    %11 = tpu.matmul %8, %10, %cst_13 {dimension_numbers = #tpu.dot_dimension_numbers<[1], [0], [0], [1], [0, 0, 1, 1], [], []>} : vector<20x8xbf16>, vector<8x16xbf16>, vector<20x16xf32> -> vector<20x16xf32>
    %12 = arith.addf %6, %11 : vector<20x16xf32>
    %c0_14 = arith.constant 0 : index
    %c0_15 = arith.constant 0 : index
    %c1_16 = arith.constant 1 : index
    %c0_17 = arith.constant 0 : index
    %13 = vector.load %arg1[%c0_14, %c0_15, %c1_16, %c0_17] : memref<1x4x32x8xbf16, #tpu.memory_space<vmem>>, vector<1x1x20x8xbf16>
    %14 = vector.shape_cast %13 : vector<1x1x20x8xbf16> to vector<20x8xbf16>
    %c2 = arith.constant 2 : index
    %c0_18 = arith.constant 0 : index
    %c0_19 = arith.constant 0 : index
    %15 = vector.load %arg2[%c2, %c0_18, %c0_19] : memref<9x8x16xbf16, #tpu.memory_space<vmem>>, vector<1x8x16xbf16>
    %16 = vector.shape_cast %15 : vector<1x8x16xbf16> to vector<8x16xbf16>
    %cst_20 = arith.constant dense<0.000000e+00> : vector<20x16xf32>
    %17 = tpu.matmul %14, %16, %cst_20 {dimension_numbers = #tpu.dot_dimension_numbers<[1], [0], [0], [1], [0, 0, 1, 1], [], []>} : vector<20x8xbf16>, vector<8x16xbf16>, vector<20x16xf32> -> vector<20x16xf32>
    %18 = arith.addf %12, %17 : vector<20x16xf32>
    %c0_21 = arith.constant 0 : index
    %c2_22 = arith.constant 2 : index
    %c0_23 = arith.constant 0 : index
    %c0_24 = arith.constant 0 : index
    %19 = vector.load %arg1[%c0_21, %c2_22, %c0_23, %c0_24] : memref<1x4x32x8xbf16, #tpu.memory_space<vmem>>, vector<1x1x20x8xbf16>
    %20 = vector.shape_cast %19 : vector<1x1x20x8xbf16> to vector<20x8xbf16>
    %c3 = arith.constant 3 : index
    %c0_25 = arith.constant 0 : index
    %c0_26 = arith.constant 0 : index
    %21 = vector.load %arg2[%c3, %c0_25, %c0_26] : memref<9x8x16xbf16, #tpu.memory_space<vmem>>, vector<1x8x16xbf16>
    %22 = vector.shape_cast %21 : vector<1x8x16xbf16> to vector<8x16xbf16>
    %cst_27 = arith.constant dense<0.000000e+00> : vector<20x16xf32>
    %23 = tpu.matmul %20, %22, %cst_27 {dimension_numbers = #tpu.dot_dimension_numbers<[1], [0], [0], [1], [0, 0, 1, 1], [], []>} : vector<20x8xbf16>, vector<8x16xbf16>, vector<20x16xf32> -> vector<20x16xf32>
    %24 = arith.addf %18, %23 : vector<20x16xf32>
    %c0_28 = arith.constant 0 : index
    %c3_29 = arith.constant 3 : index
    %c0_30 = arith.constant 0 : index
    %c0_31 = arith.constant 0 : index
    %25 = vector.load %arg1[%c0_28, %c3_29, %c0_30, %c0_31] : memref<1x4x32x8xbf16, #tpu.memory_space<vmem>>, vector<1x1x20x8xbf16>
    %26 = vector.shape_cast %25 : vector<1x1x20x8xbf16> to vector<20x8xbf16>
    %c4 = arith.constant 4 : index
    %c0_32 = arith.constant 0 : index
    %c0_33 = arith.constant 0 : index
    %27 = vector.load %arg2[%c4, %c0_32, %c0_33] : memref<9x8x16xbf16, #tpu.memory_space<vmem>>, vector<1x8x16xbf16>
    %28 = vector.shape_cast %27 : vector<1x8x16xbf16> to vector<8x16xbf16>
    %cst_34 = arith.constant dense<0.000000e+00> : vector<20x16xf32>
    %29 = tpu.matmul %26, %28, %cst_34 {dimension_numbers = #tpu.dot_dimension_numbers<[1], [0], [0], [1], [0, 0, 1, 1], [], []>} : vector<20x8xbf16>, vector<8x16xbf16>, vector<20x16xf32> -> vector<20x16xf32>
    %30 = arith.addf %24, %29 : vector<20x16xf32>
    %c0_35 = arith.constant 0 : index
    %c2_36 = arith.constant 2 : index
    %c1_37 = arith.constant 1 : index
    %c0_38 = arith.constant 0 : index
    %31 = vector.load %arg1[%c0_35, %c2_36, %c1_37, %c0_38] : memref<1x4x32x8xbf16, #tpu.memory_space<vmem>>, vector<1x1x20x8xbf16>
    %32 = vector.shape_cast %31 : vector<1x1x20x8xbf16> to vector<20x8xbf16>
    %c5 = arith.constant 5 : index
    %c0_39 = arith.constant 0 : index
    %c0_40 = arith.constant 0 : index
    %33 = vector.load %arg2[%c5, %c0_39, %c0_40] : memref<9x8x16xbf16, #tpu.memory_space<vmem>>, vector<1x8x16xbf16>
    %34 = vector.shape_cast %33 : vector<1x8x16xbf16> to vector<8x16xbf16>
    %cst_41 = arith.constant dense<0.000000e+00> : vector<20x16xf32>
    %35 = tpu.matmul %32, %34, %cst_41 {dimension_numbers = #tpu.dot_dimension_numbers<[1], [0], [0], [1], [0, 0, 1, 1], [], []>} : vector<20x8xbf16>, vector<8x16xbf16>, vector<20x16xf32> -> vector<20x16xf32>
    %36 = arith.addf %30, %35 : vector<20x16xf32>
    %c0_42 = arith.constant 0 : index
    %c0_43 = arith.constant 0 : index
    %c5_44 = arith.constant 5 : index
    %c0_45 = arith.constant 0 : index
    %37 = vector.load %arg1[%c0_42, %c0_43, %c5_44, %c0_45] : memref<1x4x32x8xbf16, #tpu.memory_space<vmem>>, vector<1x1x20x8xbf16>
    %38 = vector.shape_cast %37 : vector<1x1x20x8xbf16> to vector<20x8xbf16>
    %c6 = arith.constant 6 : index
    %c0_46 = arith.constant 0 : index
    %c0_47 = arith.constant 0 : index
    %39 = vector.load %arg2[%c6, %c0_46, %c0_47] : memref<9x8x16xbf16, #tpu.memory_space<vmem>>, vector<1x8x16xbf16>
    %40 = vector.shape_cast %39 : vector<1x8x16xbf16> to vector<8x16xbf16>
    %cst_48 = arith.constant dense<0.000000e+00> : vector<20x16xf32>
    %41 = tpu.matmul %38, %40, %cst_48 {dimension_numbers = #tpu.dot_dimension_numbers<[1], [0], [0], [1], [0, 0, 1, 1], [], []>} : vector<20x8xbf16>, vector<8x16xbf16>, vector<20x16xf32> -> vector<20x16xf32>
    %42 = arith.addf %36, %41 : vector<20x16xf32>
    %c0_49 = arith.constant 0 : index
    %c1_50 = arith.constant 1 : index
    %c5_51 = arith.constant 5 : index
    %c0_52 = arith.constant 0 : index
    %43 = vector.load %arg1[%c0_49, %c1_50, %c5_51, %c0_52] : memref<1x4x32x8xbf16, #tpu.memory_space<vmem>>, vector<1x1x20x8xbf16>
    %44 = vector.shape_cast %43 : vector<1x1x20x8xbf16> to vector<20x8xbf16>
    %c7 = arith.constant 7 : index
    %c0_53 = arith.constant 0 : index
    %c0_54 = arith.constant 0 : index
    %45 = vector.load %arg2[%c7, %c0_53, %c0_54] : memref<9x8x16xbf16, #tpu.memory_space<vmem>>, vector<1x8x16xbf16>
    %46 = vector.shape_cast %45 : vector<1x8x16xbf16> to vector<8x16xbf16>
    %cst_55 = arith.constant dense<0.000000e+00> : vector<20x16xf32>
    %47 = tpu.matmul %44, %46, %cst_55 {dimension_numbers = #tpu.dot_dimension_numbers<[1], [0], [0], [1], [0, 0, 1, 1], [], []>} : vector<20x8xbf16>, vector<8x16xbf16>, vector<20x16xf32> -> vector<20x16xf32>
    %48 = arith.addf %42, %47 : vector<20x16xf32>
    %c0_56 = arith.constant 0 : index
    %c0_57 = arith.constant 0 : index
    %c6_58 = arith.constant 6 : index
    %c0_59 = arith.constant 0 : index
    %49 = vector.load %arg1[%c0_56, %c0_57, %c6_58, %c0_59] : memref<1x4x32x8xbf16, #tpu.memory_space<vmem>>, vector<1x1x20x8xbf16>
    %50 = vector.shape_cast %49 : vector<1x1x20x8xbf16> to vector<20x8xbf16>
    %c8 = arith.constant 8 : index
    %c0_60 = arith.constant 0 : index
    %c0_61 = arith.constant 0 : index
    %51 = vector.load %arg2[%c8, %c0_60, %c0_61] : memref<9x8x16xbf16, #tpu.memory_space<vmem>>, vector<1x8x16xbf16>
    %52 = vector.shape_cast %51 : vector<1x8x16xbf16> to vector<8x16xbf16>
    %cst_62 = arith.constant dense<0.000000e+00> : vector<20x16xf32>
    %53 = tpu.matmul %50, %52, %cst_62 {dimension_numbers = #tpu.dot_dimension_numbers<[1], [0], [0], [1], [0, 0, 1, 1], [], []>} : vector<20x8xbf16>, vector<8x16xbf16>, vector<20x16xf32> -> vector<20x16xf32>
    %54 = arith.addf %48, %53 : vector<20x16xf32>
    %c0_63 = arith.constant 0 : index
    %c0_64 = arith.constant 0 : index
    %55 = vector.load %arg3[%c0_63, %c0_64] : memref<1x16xf32, #tpu.memory_space<vmem>>, vector<1x16xf32>
    %56 = vector.broadcast %55 : vector<1x16xf32> to vector<20x16xf32>
    %57 = arith.addf %54, %56 : vector<20x16xf32>
    %cst_65 = arith.constant 0.000000e+00 : f32
    %58 = vector.broadcast %cst_65 : f32 to vector<20x16xf32>
    %59 = arith.maximumf %57, %58 : vector<20x16xf32>
    %60 = arith.truncf %59 : vector<20x16xf32> to vector<20x16xbf16>
    %c0_66 = arith.constant 0 : index
    %c0_67 = arith.constant 0 : index
    %c0_68 = arith.constant 0 : index
    %61 = vector.load %arg4[%c0_66, %c0_67, %c0_68] : memref<1x20x16xbf16, #tpu.memory_space<vmem>>, vector<1x20x16xbf16>
    %62 = vector.shape_cast %61 : vector<1x20x16xbf16> to vector<20x16xbf16>
    %63 = vector.shape_cast %60 : vector<20x16xbf16> to vector<1x20x16xbf16>
    tpu.vector_store %arg4[%c0_66, %c0_67, %c0_68], %63 {strides = array<i32>} : memref<1x20x16xbf16, #tpu.memory_space<vmem>>, vector<1x20x16xbf16>,
    return
  }
  func.func @transform_0(%arg0: i32) -> (i32, i32, i32, i32) {
    %c0_i32 = arith.constant 0 : i32
    %c0_i32_0 = arith.constant 0 : i32
    %c0_i32_1 = arith.constant 0 : i32
    %c0_i32_2 = arith.constant 0 : i32
    return %arg0, %c0_i32, %c0_i32_0, %c0_i32_1 : i32, i32, i32, i32
  }
  func.func @transform_1(%arg0: i32) -> (i32, i32, i32) {
    %c0_i32 = arith.constant 0 : i32
    %c0_i32_0 = arith.constant 0 : i32
    %c0_i32_1 = arith.constant 0 : i32
    %c0_i32_2 = arith.constant 0 : i32
    return %c0_i32, %c0_i32_0, %c0_i32_1 : i32, i32, i32
  }
  func.func @transform_2(%arg0: i32) -> (i32, i32) {
    %c0_i32 = arith.constant 0 : i32
    %c0_i32_0 = arith.constant 0 : i32
    %c0_i32_1 = arith.constant 0 : i32
    return %c0_i32, %c0_i32_0 : i32, i32
  }
  func.func @transform_3(%arg0: i32) -> (i32, i32, i32) {
    %c0_i32 = arith.constant 0 : i32
    %c0_i32_0 = arith.constant 0 : i32
    %c0_i32_1 = arith.constant 0 : i32
    return %arg0, %c0_i32, %c0_i32_0 : i32, i32, i32
  }
}

module attributes {stable_mosaic.version = 11 : i64} {
  func.func @_conv3x3_kernel(%arg0: i32, %arg1: memref<1x1x48x16xbf16, #tpu.memory_space<vmem>>, %arg2: memref<9x16x42xbf16, #tpu.memory_space<vmem>>, %arg3: memref<1x42xf32, #tpu.memory_space<vmem>>, %arg4: memref<1x24x42xf32, #tpu.memory_space<vmem>>) attributes {dimension_semantics = [#tpu.dimension_semantics<parallel>], iteration_bounds = array<i64: 2>, scalar_prefetch = 0 : i64, scratch_operands = 0 : i64, tpu.core_type = #tpu.core_type<tc>, window_params = [{transform_indices = @transform_0, window_bounds = array<i64: 1, 1, 48, 16>}, {pipeline_mode = #tpu.pipeline_mode<synchronous>, transform_indices = @transform_1, window_bounds = array<i64: 9, 16, 42>}, {pipeline_mode = #tpu.pipeline_mode<synchronous>, transform_indices = @transform_2, window_bounds = array<i64: 1, 42>}, {transform_indices = @transform_3, window_bounds = array<i64: 1, 24, 42>}]} {
    %cst = arith.constant 0.000000e+00 : f32
    %0 = vector.broadcast %cst : f32 to vector<24x42xf32>
    %c0 = arith.constant 0 : index
    %c0_0 = arith.constant 0 : index
    %c0_1 = arith.constant 0 : index
    %c0_2 = arith.constant 0 : index
    %1 = vector.load %arg1[%c0, %c0_0, %c0_1, %c0_2] : memref<1x1x48x16xbf16, #tpu.memory_space<vmem>>, vector<1x1x24x16xbf16>
    %2 = vector.shape_cast %1 : vector<1x1x24x16xbf16> to vector<24x16xbf16>
    %c0_3 = arith.constant 0 : index
    %c0_4 = arith.constant 0 : index
    %c0_5 = arith.constant 0 : index
    %3 = vector.load %arg2[%c0_3, %c0_4, %c0_5] : memref<9x16x42xbf16, #tpu.memory_space<vmem>>, vector<1x16x42xbf16>
    %4 = vector.shape_cast %3 : vector<1x16x42xbf16> to vector<16x42xbf16>
    %cst_6 = arith.constant dense<0.000000e+00> : vector<24x42xf32>
    %5 = tpu.matmul %2, %4, %cst_6 {dimension_numbers = #tpu.dot_dimension_numbers<[1], [0], [0], [1], [0, 0, 1, 1], [], []>} : vector<24x16xbf16>, vector<16x42xbf16>, vector<24x42xf32> -> vector<24x42xf32>
    %6 = arith.addf %0, %5 : vector<24x42xf32>
    %c0_7 = arith.constant 0 : index
    %c0_8 = arith.constant 0 : index
    %c1 = arith.constant 1 : index
    %c0_9 = arith.constant 0 : index
    %7 = vector.load %arg1[%c0_7, %c0_8, %c1, %c0_9] : memref<1x1x48x16xbf16, #tpu.memory_space<vmem>>, vector<1x1x24x16xbf16>
    %8 = vector.shape_cast %7 : vector<1x1x24x16xbf16> to vector<24x16xbf16>
    %c1_10 = arith.constant 1 : index
    %c0_11 = arith.constant 0 : index
    %c0_12 = arith.constant 0 : index
    %9 = vector.load %arg2[%c1_10, %c0_11, %c0_12] : memref<9x16x42xbf16, #tpu.memory_space<vmem>>, vector<1x16x42xbf16>
    %10 = vector.shape_cast %9 : vector<1x16x42xbf16> to vector<16x42xbf16>
    %cst_13 = arith.constant dense<0.000000e+00> : vector<24x42xf32>
    %11 = tpu.matmul %8, %10, %cst_13 {dimension_numbers = #tpu.dot_dimension_numbers<[1], [0], [0], [1], [0, 0, 1, 1], [], []>} : vector<24x16xbf16>, vector<16x42xbf16>, vector<24x42xf32> -> vector<24x42xf32>
    %12 = arith.addf %6, %11 : vector<24x42xf32>
    %c0_14 = arith.constant 0 : index
    %c0_15 = arith.constant 0 : index
    %c2 = arith.constant 2 : index
    %c0_16 = arith.constant 0 : index
    %13 = vector.load %arg1[%c0_14, %c0_15, %c2, %c0_16] : memref<1x1x48x16xbf16, #tpu.memory_space<vmem>>, vector<1x1x24x16xbf16>
    %14 = vector.shape_cast %13 : vector<1x1x24x16xbf16> to vector<24x16xbf16>
    %c2_17 = arith.constant 2 : index
    %c0_18 = arith.constant 0 : index
    %c0_19 = arith.constant 0 : index
    %15 = vector.load %arg2[%c2_17, %c0_18, %c0_19] : memref<9x16x42xbf16, #tpu.memory_space<vmem>>, vector<1x16x42xbf16>
    %16 = vector.shape_cast %15 : vector<1x16x42xbf16> to vector<16x42xbf16>
    %cst_20 = arith.constant dense<0.000000e+00> : vector<24x42xf32>
    %17 = tpu.matmul %14, %16, %cst_20 {dimension_numbers = #tpu.dot_dimension_numbers<[1], [0], [0], [1], [0, 0, 1, 1], [], []>} : vector<24x16xbf16>, vector<16x42xbf16>, vector<24x42xf32> -> vector<24x42xf32>
    %18 = arith.addf %12, %17 : vector<24x42xf32>
    %c0_21 = arith.constant 0 : index
    %c0_22 = arith.constant 0 : index
    %c6 = arith.constant 6 : index
    %c0_23 = arith.constant 0 : index
    %19 = vector.load %arg1[%c0_21, %c0_22, %c6, %c0_23] : memref<1x1x48x16xbf16, #tpu.memory_space<vmem>>, vector<1x1x24x16xbf16>
    %20 = vector.shape_cast %19 : vector<1x1x24x16xbf16> to vector<24x16xbf16>
    %c3 = arith.constant 3 : index
    %c0_24 = arith.constant 0 : index
    %c0_25 = arith.constant 0 : index
    %21 = vector.load %arg2[%c3, %c0_24, %c0_25] : memref<9x16x42xbf16, #tpu.memory_space<vmem>>, vector<1x16x42xbf16>
    %22 = vector.shape_cast %21 : vector<1x16x42xbf16> to vector<16x42xbf16>
    %cst_26 = arith.constant dense<0.000000e+00> : vector<24x42xf32>
    %23 = tpu.matmul %20, %22, %cst_26 {dimension_numbers = #tpu.dot_dimension_numbers<[1], [0], [0], [1], [0, 0, 1, 1], [], []>} : vector<24x16xbf16>, vector<16x42xbf16>, vector<24x42xf32> -> vector<24x42xf32>
    %24 = arith.addf %18, %23 : vector<24x42xf32>
    %c0_27 = arith.constant 0 : index
    %c0_28 = arith.constant 0 : index
    %c7 = arith.constant 7 : index
    %c0_29 = arith.constant 0 : index
    %25 = vector.load %arg1[%c0_27, %c0_28, %c7, %c0_29] : memref<1x1x48x16xbf16, #tpu.memory_space<vmem>>, vector<1x1x24x16xbf16>
    %26 = vector.shape_cast %25 : vector<1x1x24x16xbf16> to vector<24x16xbf16>
    %c4 = arith.constant 4 : index
    %c0_30 = arith.constant 0 : index
    %c0_31 = arith.constant 0 : index
    %27 = vector.load %arg2[%c4, %c0_30, %c0_31] : memref<9x16x42xbf16, #tpu.memory_space<vmem>>, vector<1x16x42xbf16>
    %28 = vector.shape_cast %27 : vector<1x16x42xbf16> to vector<16x42xbf16>
    %cst_32 = arith.constant dense<0.000000e+00> : vector<24x42xf32>
    %29 = tpu.matmul %26, %28, %cst_32 {dimension_numbers = #tpu.dot_dimension_numbers<[1], [0], [0], [1], [0, 0, 1, 1], [], []>} : vector<24x16xbf16>, vector<16x42xbf16>, vector<24x42xf32> -> vector<24x42xf32>
    %30 = arith.addf %24, %29 : vector<24x42xf32>
    %c0_33 = arith.constant 0 : index
    %c0_34 = arith.constant 0 : index
    %c8 = arith.constant 8 : index
    %c0_35 = arith.constant 0 : index
    %31 = vector.load %arg1[%c0_33, %c0_34, %c8, %c0_35] : memref<1x1x48x16xbf16, #tpu.memory_space<vmem>>, vector<1x1x24x16xbf16>
    %32 = vector.shape_cast %31 : vector<1x1x24x16xbf16> to vector<24x16xbf16>
    %c5 = arith.constant 5 : index
    %c0_36 = arith.constant 0 : index
    %c0_37 = arith.constant 0 : index
    %33 = vector.load %arg2[%c5, %c0_36, %c0_37] : memref<9x16x42xbf16, #tpu.memory_space<vmem>>, vector<1x16x42xbf16>
    %34 = vector.shape_cast %33 : vector<1x16x42xbf16> to vector<16x42xbf16>
    %cst_38 = arith.constant dense<0.000000e+00> : vector<24x42xf32>
    %35 = tpu.matmul %32, %34, %cst_38 {dimension_numbers = #tpu.dot_dimension_numbers<[1], [0], [0], [1], [0, 0, 1, 1], [], []>} : vector<24x16xbf16>, vector<16x42xbf16>, vector<24x42xf32> -> vector<24x42xf32>
    %36 = arith.addf %30, %35 : vector<24x42xf32>
    %c0_39 = arith.constant 0 : index
    %c0_40 = arith.constant 0 : index
    %c12 = arith.constant 12 : index
    %c0_41 = arith.constant 0 : index
    %37 = vector.load %arg1[%c0_39, %c0_40, %c12, %c0_41] : memref<1x1x48x16xbf16, #tpu.memory_space<vmem>>, vector<1x1x24x16xbf16>
    %38 = vector.shape_cast %37 : vector<1x1x24x16xbf16> to vector<24x16xbf16>
    %c6_42 = arith.constant 6 : index
    %c0_43 = arith.constant 0 : index
    %c0_44 = arith.constant 0 : index
    %39 = vector.load %arg2[%c6_42, %c0_43, %c0_44] : memref<9x16x42xbf16, #tpu.memory_space<vmem>>, vector<1x16x42xbf16>
    %40 = vector.shape_cast %39 : vector<1x16x42xbf16> to vector<16x42xbf16>
    %cst_45 = arith.constant dense<0.000000e+00> : vector<24x42xf32>
    %41 = tpu.matmul %38, %40, %cst_45 {dimension_numbers = #tpu.dot_dimension_numbers<[1], [0], [0], [1], [0, 0, 1, 1], [], []>} : vector<24x16xbf16>, vector<16x42xbf16>, vector<24x42xf32> -> vector<24x42xf32>
    %42 = arith.addf %36, %41 : vector<24x42xf32>
    %c0_46 = arith.constant 0 : index
    %c0_47 = arith.constant 0 : index
    %c13 = arith.constant 13 : index
    %c0_48 = arith.constant 0 : index
    %43 = vector.load %arg1[%c0_46, %c0_47, %c13, %c0_48] : memref<1x1x48x16xbf16, #tpu.memory_space<vmem>>, vector<1x1x24x16xbf16>
    %44 = vector.shape_cast %43 : vector<1x1x24x16xbf16> to vector<24x16xbf16>
    %c7_49 = arith.constant 7 : index
    %c0_50 = arith.constant 0 : index
    %c0_51 = arith.constant 0 : index
    %45 = vector.load %arg2[%c7_49, %c0_50, %c0_51] : memref<9x16x42xbf16, #tpu.memory_space<vmem>>, vector<1x16x42xbf16>
    %46 = vector.shape_cast %45 : vector<1x16x42xbf16> to vector<16x42xbf16>
    %cst_52 = arith.constant dense<0.000000e+00> : vector<24x42xf32>
    %47 = tpu.matmul %44, %46, %cst_52 {dimension_numbers = #tpu.dot_dimension_numbers<[1], [0], [0], [1], [0, 0, 1, 1], [], []>} : vector<24x16xbf16>, vector<16x42xbf16>, vector<24x42xf32> -> vector<24x42xf32>
    %48 = arith.addf %42, %47 : vector<24x42xf32>
    %c0_53 = arith.constant 0 : index
    %c0_54 = arith.constant 0 : index
    %c14 = arith.constant 14 : index
    %c0_55 = arith.constant 0 : index
    %49 = vector.load %arg1[%c0_53, %c0_54, %c14, %c0_55] : memref<1x1x48x16xbf16, #tpu.memory_space<vmem>>, vector<1x1x24x16xbf16>
    %50 = vector.shape_cast %49 : vector<1x1x24x16xbf16> to vector<24x16xbf16>
    %c8_56 = arith.constant 8 : index
    %c0_57 = arith.constant 0 : index
    %c0_58 = arith.constant 0 : index
    %51 = vector.load %arg2[%c8_56, %c0_57, %c0_58] : memref<9x16x42xbf16, #tpu.memory_space<vmem>>, vector<1x16x42xbf16>
    %52 = vector.shape_cast %51 : vector<1x16x42xbf16> to vector<16x42xbf16>
    %cst_59 = arith.constant dense<0.000000e+00> : vector<24x42xf32>
    %53 = tpu.matmul %50, %52, %cst_59 {dimension_numbers = #tpu.dot_dimension_numbers<[1], [0], [0], [1], [0, 0, 1, 1], [], []>} : vector<24x16xbf16>, vector<16x42xbf16>, vector<24x42xf32> -> vector<24x42xf32>
    %54 = arith.addf %48, %53 : vector<24x42xf32>
    %c0_60 = arith.constant 0 : index
    %c0_61 = arith.constant 0 : index
    %55 = vector.load %arg3[%c0_60, %c0_61] : memref<1x42xf32, #tpu.memory_space<vmem>>, vector<1x42xf32>
    %56 = vector.broadcast %55 : vector<1x42xf32> to vector<24x42xf32>
    %57 = arith.addf %54, %56 : vector<24x42xf32>
    %c0_62 = arith.constant 0 : index
    %c0_63 = arith.constant 0 : index
    %c0_64 = arith.constant 0 : index
    %58 = vector.load %arg4[%c0_62, %c0_63, %c0_64] : memref<1x24x42xf32, #tpu.memory_space<vmem>>, vector<1x24x42xf32>
    %59 = vector.shape_cast %58 : vector<1x24x42xf32> to vector<24x42xf32>
    %60 = vector.shape_cast %57 : vector<24x42xf32> to vector<1x24x42xf32>
    tpu.vector_store %arg4[%c0_62, %c0_63, %c0_64], %60 {strides = array<i32>} : memref<1x24x42xf32, #tpu.memory_space<vmem>>, vector<1x24x42xf32>,
    return
  }
  func.func @transform_0(%arg0: i32) -> (i32, i32, i32, i32) {
    %c0_i32 = arith.constant 0 : i32
    %c0_i32_0 = arith.constant 0 : i32
    %c0_i32_1 = arith.constant 0 : i32
    %c0_i32_2 = arith.constant 0 : i32
    return %arg0, %c0_i32, %c0_i32_0, %c0_i32_1 : i32, i32, i32, i32
  }
  func.func @transform_1(%arg0: i32) -> (i32, i32, i32) {
    %c0_i32 = arith.constant 0 : i32
    %c0_i32_0 = arith.constant 0 : i32
    %c0_i32_1 = arith.constant 0 : i32
    %c0_i32_2 = arith.constant 0 : i32
    return %c0_i32, %c0_i32_0, %c0_i32_1 : i32, i32, i32
  }
  func.func @transform_2(%arg0: i32) -> (i32, i32) {
    %c0_i32 = arith.constant 0 : i32
    %c0_i32_0 = arith.constant 0 : i32
    %c0_i32_1 = arith.constant 0 : i32
    return %c0_i32, %c0_i32_0 : i32, i32
  }
  func.func @transform_3(%arg0: i32) -> (i32, i32, i32) {
    %c0_i32 = arith.constant 0 : i32
    %c0_i32_0 = arith.constant 0 : i32
    %c0_i32_1 = arith.constant 0 : i32
    return %arg0, %c0_i32, %c0_i32_0 : i32, i32, i32
  }
}

module attributes {stable_mosaic.version = 11 : i64} {
  func.func @_conv3x3_kernel(%arg0: i32, %arg1: memref<1x1x112x8xbf16, #tpu.memory_space<vmem>>, %arg2: memref<9x8x28xbf16, #tpu.memory_space<vmem>>, %arg3: memref<1x28xf32, #tpu.memory_space<vmem>>, %arg4: memref<1x80x28xf32, #tpu.memory_space<vmem>>) attributes {dimension_semantics = [#tpu.dimension_semantics<parallel>], iteration_bounds = array<i64: 2>, scalar_prefetch = 0 : i64, scratch_operands = 0 : i64, tpu.core_type = #tpu.core_type<tc>, window_params = [{transform_indices = @transform_0, window_bounds = array<i64: 1, 1, 112, 8>}, {pipeline_mode = #tpu.pipeline_mode<synchronous>, transform_indices = @transform_1, window_bounds = array<i64: 9, 8, 28>}, {pipeline_mode = #tpu.pipeline_mode<synchronous>, transform_indices = @transform_2, window_bounds = array<i64: 1, 28>}, {transform_indices = @transform_3, window_bounds = array<i64: 1, 80, 28>}]} {
    %cst = arith.constant 0.000000e+00 : f32
    %0 = vector.broadcast %cst : f32 to vector<80x28xf32>
    %c0 = arith.constant 0 : index
    %c0_0 = arith.constant 0 : index
    %c0_1 = arith.constant 0 : index
    %c0_2 = arith.constant 0 : index
    %1 = vector.load %arg1[%c0, %c0_0, %c0_1, %c0_2] : memref<1x1x112x8xbf16, #tpu.memory_space<vmem>>, vector<1x1x80x8xbf16>
    %2 = vector.shape_cast %1 : vector<1x1x80x8xbf16> to vector<80x8xbf16>
    %c0_3 = arith.constant 0 : index
    %c0_4 = arith.constant 0 : index
    %c0_5 = arith.constant 0 : index
    %3 = vector.load %arg2[%c0_3, %c0_4, %c0_5] : memref<9x8x28xbf16, #tpu.memory_space<vmem>>, vector<1x8x28xbf16>
    %4 = vector.shape_cast %3 : vector<1x8x28xbf16> to vector<8x28xbf16>
    %cst_6 = arith.constant dense<0.000000e+00> : vector<80x28xf32>
    %5 = tpu.matmul %2, %4, %cst_6 {dimension_numbers = #tpu.dot_dimension_numbers<[1], [0], [0], [1], [0, 0, 1, 1], [], []>} : vector<80x8xbf16>, vector<8x28xbf16>, vector<80x28xf32> -> vector<80x28xf32>
    %6 = arith.addf %0, %5 : vector<80x28xf32>
    %c0_7 = arith.constant 0 : index
    %c0_8 = arith.constant 0 : index
    %c1 = arith.constant 1 : index
    %c0_9 = arith.constant 0 : index
    %7 = vector.load %arg1[%c0_7, %c0_8, %c1, %c0_9] : memref<1x1x112x8xbf16, #tpu.memory_space<vmem>>, vector<1x1x80x8xbf16>
    %8 = vector.shape_cast %7 : vector<1x1x80x8xbf16> to vector<80x8xbf16>
    %c1_10 = arith.constant 1 : index
    %c0_11 = arith.constant 0 : index
    %c0_12 = arith.constant 0 : index
    %9 = vector.load %arg2[%c1_10, %c0_11, %c0_12] : memref<9x8x28xbf16, #tpu.memory_space<vmem>>, vector<1x8x28xbf16>
    %10 = vector.shape_cast %9 : vector<1x8x28xbf16> to vector<8x28xbf16>
    %cst_13 = arith.constant dense<0.000000e+00> : vector<80x28xf32>
    %11 = tpu.matmul %8, %10, %cst_13 {dimension_numbers = #tpu.dot_dimension_numbers<[1], [0], [0], [1], [0, 0, 1, 1], [], []>} : vector<80x8xbf16>, vector<8x28xbf16>, vector<80x28xf32> -> vector<80x28xf32>
    %12 = arith.addf %6, %11 : vector<80x28xf32>
    %c0_14 = arith.constant 0 : index
    %c0_15 = arith.constant 0 : index
    %c2 = arith.constant 2 : index
    %c0_16 = arith.constant 0 : index
    %13 = vector.load %arg1[%c0_14, %c0_15, %c2, %c0_16] : memref<1x1x112x8xbf16, #tpu.memory_space<vmem>>, vector<1x1x80x8xbf16>
    %14 = vector.shape_cast %13 : vector<1x1x80x8xbf16> to vector<80x8xbf16>
    %c2_17 = arith.constant 2 : index
    %c0_18 = arith.constant 0 : index
    %c0_19 = arith.constant 0 : index
    %15 = vector.load %arg2[%c2_17, %c0_18, %c0_19] : memref<9x8x28xbf16, #tpu.memory_space<vmem>>, vector<1x8x28xbf16>
    %16 = vector.shape_cast %15 : vector<1x8x28xbf16> to vector<8x28xbf16>
    %cst_20 = arith.constant dense<0.000000e+00> : vector<80x28xf32>
    %17 = tpu.matmul %14, %16, %cst_20 {dimension_numbers = #tpu.dot_dimension_numbers<[1], [0], [0], [1], [0, 0, 1, 1], [], []>} : vector<80x8xbf16>, vector<8x28xbf16>, vector<80x28xf32> -> vector<80x28xf32>
    %18 = arith.addf %12, %17 : vector<80x28xf32>
    %c0_21 = arith.constant 0 : index
    %c0_22 = arith.constant 0 : index
    %c10 = arith.constant 10 : index
    %c0_23 = arith.constant 0 : index
    %19 = vector.load %arg1[%c0_21, %c0_22, %c10, %c0_23] : memref<1x1x112x8xbf16, #tpu.memory_space<vmem>>, vector<1x1x80x8xbf16>
    %20 = vector.shape_cast %19 : vector<1x1x80x8xbf16> to vector<80x8xbf16>
    %c3 = arith.constant 3 : index
    %c0_24 = arith.constant 0 : index
    %c0_25 = arith.constant 0 : index
    %21 = vector.load %arg2[%c3, %c0_24, %c0_25] : memref<9x8x28xbf16, #tpu.memory_space<vmem>>, vector<1x8x28xbf16>
    %22 = vector.shape_cast %21 : vector<1x8x28xbf16> to vector<8x28xbf16>
    %cst_26 = arith.constant dense<0.000000e+00> : vector<80x28xf32>
    %23 = tpu.matmul %20, %22, %cst_26 {dimension_numbers = #tpu.dot_dimension_numbers<[1], [0], [0], [1], [0, 0, 1, 1], [], []>} : vector<80x8xbf16>, vector<8x28xbf16>, vector<80x28xf32> -> vector<80x28xf32>
    %24 = arith.addf %18, %23 : vector<80x28xf32>
    %c0_27 = arith.constant 0 : index
    %c0_28 = arith.constant 0 : index
    %c11 = arith.constant 11 : index
    %c0_29 = arith.constant 0 : index
    %25 = vector.load %arg1[%c0_27, %c0_28, %c11, %c0_29] : memref<1x1x112x8xbf16, #tpu.memory_space<vmem>>, vector<1x1x80x8xbf16>
    %26 = vector.shape_cast %25 : vector<1x1x80x8xbf16> to vector<80x8xbf16>
    %c4 = arith.constant 4 : index
    %c0_30 = arith.constant 0 : index
    %c0_31 = arith.constant 0 : index
    %27 = vector.load %arg2[%c4, %c0_30, %c0_31] : memref<9x8x28xbf16, #tpu.memory_space<vmem>>, vector<1x8x28xbf16>
    %28 = vector.shape_cast %27 : vector<1x8x28xbf16> to vector<8x28xbf16>
    %cst_32 = arith.constant dense<0.000000e+00> : vector<80x28xf32>
    %29 = tpu.matmul %26, %28, %cst_32 {dimension_numbers = #tpu.dot_dimension_numbers<[1], [0], [0], [1], [0, 0, 1, 1], [], []>} : vector<80x8xbf16>, vector<8x28xbf16>, vector<80x28xf32> -> vector<80x28xf32>
    %30 = arith.addf %24, %29 : vector<80x28xf32>
    %c0_33 = arith.constant 0 : index
    %c0_34 = arith.constant 0 : index
    %c12 = arith.constant 12 : index
    %c0_35 = arith.constant 0 : index
    %31 = vector.load %arg1[%c0_33, %c0_34, %c12, %c0_35] : memref<1x1x112x8xbf16, #tpu.memory_space<vmem>>, vector<1x1x80x8xbf16>
    %32 = vector.shape_cast %31 : vector<1x1x80x8xbf16> to vector<80x8xbf16>
    %c5 = arith.constant 5 : index
    %c0_36 = arith.constant 0 : index
    %c0_37 = arith.constant 0 : index
    %33 = vector.load %arg2[%c5, %c0_36, %c0_37] : memref<9x8x28xbf16, #tpu.memory_space<vmem>>, vector<1x8x28xbf16>
    %34 = vector.shape_cast %33 : vector<1x8x28xbf16> to vector<8x28xbf16>
    %cst_38 = arith.constant dense<0.000000e+00> : vector<80x28xf32>
    %35 = tpu.matmul %32, %34, %cst_38 {dimension_numbers = #tpu.dot_dimension_numbers<[1], [0], [0], [1], [0, 0, 1, 1], [], []>} : vector<80x8xbf16>, vector<8x28xbf16>, vector<80x28xf32> -> vector<80x28xf32>
    %36 = arith.addf %30, %35 : vector<80x28xf32>
    %c0_39 = arith.constant 0 : index
    %c0_40 = arith.constant 0 : index
    %c20 = arith.constant 20 : index
    %c0_41 = arith.constant 0 : index
    %37 = vector.load %arg1[%c0_39, %c0_40, %c20, %c0_41] : memref<1x1x112x8xbf16, #tpu.memory_space<vmem>>, vector<1x1x80x8xbf16>
    %38 = vector.shape_cast %37 : vector<1x1x80x8xbf16> to vector<80x8xbf16>
    %c6 = arith.constant 6 : index
    %c0_42 = arith.constant 0 : index
    %c0_43 = arith.constant 0 : index
    %39 = vector.load %arg2[%c6, %c0_42, %c0_43] : memref<9x8x28xbf16, #tpu.memory_space<vmem>>, vector<1x8x28xbf16>
    %40 = vector.shape_cast %39 : vector<1x8x28xbf16> to vector<8x28xbf16>
    %cst_44 = arith.constant dense<0.000000e+00> : vector<80x28xf32>
    %41 = tpu.matmul %38, %40, %cst_44 {dimension_numbers = #tpu.dot_dimension_numbers<[1], [0], [0], [1], [0, 0, 1, 1], [], []>} : vector<80x8xbf16>, vector<8x28xbf16>, vector<80x28xf32> -> vector<80x28xf32>
    %42 = arith.addf %36, %41 : vector<80x28xf32>
    %c0_45 = arith.constant 0 : index
    %c0_46 = arith.constant 0 : index
    %c21 = arith.constant 21 : index
    %c0_47 = arith.constant 0 : index
    %43 = vector.load %arg1[%c0_45, %c0_46, %c21, %c0_47] : memref<1x1x112x8xbf16, #tpu.memory_space<vmem>>, vector<1x1x80x8xbf16>
    %44 = vector.shape_cast %43 : vector<1x1x80x8xbf16> to vector<80x8xbf16>
    %c7 = arith.constant 7 : index
    %c0_48 = arith.constant 0 : index
    %c0_49 = arith.constant 0 : index
    %45 = vector.load %arg2[%c7, %c0_48, %c0_49] : memref<9x8x28xbf16, #tpu.memory_space<vmem>>, vector<1x8x28xbf16>
    %46 = vector.shape_cast %45 : vector<1x8x28xbf16> to vector<8x28xbf16>
    %cst_50 = arith.constant dense<0.000000e+00> : vector<80x28xf32>
    %47 = tpu.matmul %44, %46, %cst_50 {dimension_numbers = #tpu.dot_dimension_numbers<[1], [0], [0], [1], [0, 0, 1, 1], [], []>} : vector<80x8xbf16>, vector<8x28xbf16>, vector<80x28xf32> -> vector<80x28xf32>
    %48 = arith.addf %42, %47 : vector<80x28xf32>
    %c0_51 = arith.constant 0 : index
    %c0_52 = arith.constant 0 : index
    %c22 = arith.constant 22 : index
    %c0_53 = arith.constant 0 : index
    %49 = vector.load %arg1[%c0_51, %c0_52, %c22, %c0_53] : memref<1x1x112x8xbf16, #tpu.memory_space<vmem>>, vector<1x1x80x8xbf16>
    %50 = vector.shape_cast %49 : vector<1x1x80x8xbf16> to vector<80x8xbf16>
    %c8 = arith.constant 8 : index
    %c0_54 = arith.constant 0 : index
    %c0_55 = arith.constant 0 : index
    %51 = vector.load %arg2[%c8, %c0_54, %c0_55] : memref<9x8x28xbf16, #tpu.memory_space<vmem>>, vector<1x8x28xbf16>
    %52 = vector.shape_cast %51 : vector<1x8x28xbf16> to vector<8x28xbf16>
    %cst_56 = arith.constant dense<0.000000e+00> : vector<80x28xf32>
    %53 = tpu.matmul %50, %52, %cst_56 {dimension_numbers = #tpu.dot_dimension_numbers<[1], [0], [0], [1], [0, 0, 1, 1], [], []>} : vector<80x8xbf16>, vector<8x28xbf16>, vector<80x28xf32> -> vector<80x28xf32>
    %54 = arith.addf %48, %53 : vector<80x28xf32>
    %c0_57 = arith.constant 0 : index
    %c0_58 = arith.constant 0 : index
    %55 = vector.load %arg3[%c0_57, %c0_58] : memref<1x28xf32, #tpu.memory_space<vmem>>, vector<1x28xf32>
    %56 = vector.broadcast %55 : vector<1x28xf32> to vector<80x28xf32>
    %57 = arith.addf %54, %56 : vector<80x28xf32>
    %c0_59 = arith.constant 0 : index
    %c0_60 = arith.constant 0 : index
    %c0_61 = arith.constant 0 : index
    %58 = vector.load %arg4[%c0_59, %c0_60, %c0_61] : memref<1x80x28xf32, #tpu.memory_space<vmem>>, vector<1x80x28xf32>
    %59 = vector.shape_cast %58 : vector<1x80x28xf32> to vector<80x28xf32>
    %60 = vector.shape_cast %57 : vector<80x28xf32> to vector<1x80x28xf32>
    tpu.vector_store %arg4[%c0_59, %c0_60, %c0_61], %60 {strides = array<i32>} : memref<1x80x28xf32, #tpu.memory_space<vmem>>, vector<1x80x28xf32>,
    return
  }
  func.func @transform_0(%arg0: i32) -> (i32, i32, i32, i32) {
    %c0_i32 = arith.constant 0 : i32
    %c0_i32_0 = arith.constant 0 : i32
    %c0_i32_1 = arith.constant 0 : i32
    %c0_i32_2 = arith.constant 0 : i32
    return %arg0, %c0_i32, %c0_i32_0, %c0_i32_1 : i32, i32, i32, i32
  }
  func.func @transform_1(%arg0: i32) -> (i32, i32, i32) {
    %c0_i32 = arith.constant 0 : i32
    %c0_i32_0 = arith.constant 0 : i32
    %c0_i32_1 = arith.constant 0 : i32
    %c0_i32_2 = arith.constant 0 : i32
    return %c0_i32, %c0_i32_0, %c0_i32_1 : i32, i32, i32
  }
  func.func @transform_2(%arg0: i32) -> (i32, i32) {
    %c0_i32 = arith.constant 0 : i32
    %c0_i32_0 = arith.constant 0 : i32
    %c0_i32_1 = arith.constant 0 : i32
    return %c0_i32, %c0_i32_0 : i32, i32
  }
  func.func @transform_3(%arg0: i32) -> (i32, i32, i32) {
    %c0_i32 = arith.constant 0 : i32
    %c0_i32_0 = arith.constant 0 : i32
    %c0_i32_1 = arith.constant 0 : i32
    return %arg0, %c0_i32, %c0_i32_0 : i32, i32, i32
  }
}

</mosaic_0001>

<bundles_post_ra>
// kernel: generalized_ssd_forward.4
= control target key start
LH: loop header
LB: loop body
LE: loop exit
PB: predicated region body
PF: predicated region fallthrough
CT: control target
= control target key end

     0   :  { %s1585_s12 = smov 0   ;;  %s1826_s0 = inlined_call_operand.vmem [shape: bf16[2,4,96,3], index: 0, kind: input, shape index: {}]   ;;  %s1827_s1 = inlined_call_operand.vmem [shape: bf16[9,3,8], index: 1, kind: input, shape index: {}]   ;;  %s1828_s2 = inlined_call_operand.vmem [shape: f32[1,8], index: 2, kind: input, shape index: {}]   ;;  %s1829_s3 = inlined_call_operand.vmem [shape: bf16[2,72,8], index: 3, kind: output, shape index: {}]  }
   0x1 LB: > { %s1254_s13 = sadd.s32 4294967295, %s1562_s12   ;;  %p1258_p0 = scmp.ge.s32.totalorder %s1562_s12, 1  ;;  %s1562_s12 = sphi %s1585_s12, %s13_s12  }
   0x2   : > { %p137_p1 = scmp.lt.s32.totalorder %s1562_s12, 3 }
   0x4   : > { %p138_p2 = pnand %p1258_p0, %p137_p1 }
   0x5   : > { %p161_p3 = scmp.lt.s32.totalorder (!%p138_p2), %s1254_s13, 1 }
   0x6   : > { %141 = sbr.rel (%p138_p2) target bundleno = 340 (0x154), region = 32 }
   0xb   : > { %v1270_v0 = vld [vmem:[%s1827_s1 + $0x2] sm:$0x3]  ;;  %vm233_vm0 = vcmask 1040384   ;;  %vm234_vm1 = vcmask 1041408   ;;  %v1564_v1 = vmov 65535   ;;  %s1831_s13 = smov (!%p161_p3, %s1254_s13), 1 }
   0xc   : > { %v235_v2 = vsel %vm233_vm0, 4294967295, %v1564_v1  ;;  %v1313_v3 = vld [vmem:[%s1827_s1 + $0x4] sm:$0x3]  ;;  %v181_v4 = vld [vmem:[%s1827_s1] sm:$0x3]  ;;  %s1541_s24 = smul.u32 192, %s1831_s13 }
   0xd   : > { %v236_v5 = vsel %vm234_vm1, %v235_v2, 0  ;;  %v1348_v6 = vld [vmem:[%s1827_s1 + $0x6] sm:$0x3]  ;;  %v1379_v7 = vld [vmem:[%s1827_s1 + $0x8] sm:$0x3]  ;;  %vm217_vm2 = vcmask 23552  }
   0xe   : > { %v238_v8 = vand.u32 %v1270_v0, %v236_v5  ;;  %v440_v9 = vand.u32 %v1313_v3, %v236_v5  ;;  %v312_v10 = vand.u32 %v236_v5, %v181_v4  ;;  %v535_v11 = vand.u32 %v1348_v6, %v236_v5  ;;  %s1614_s27 = scalar_lea.vmem %s1826_s0, %s1541_s24  ;;  %v1437_v19 = vld [vmem:[%s1827_s1 + $0xc] sm:$0x3]  ;;  %v1469_v21 = vld [vmem:[%s1827_s1 + $0xe] sm:$0x3]  ;;  %v1411_v22 = vld [vmem:[%s1827_s1 + $0xa] sm:$0x3] }
   0xf   : > { %v630_v12 = vand.u32 %v1379_v7, %v236_v5  ;;  %v1508_v13 = vld [vmem:[%s1614_s27 + $0x38] sm:$0xff]  ;;  %v1509_v14 = vld [vmem:[%s1614_s27 + $0x40] sm:$0xff]  ;;  %v1269_v15 = vld [vmem:[%s1614_s27 + $0x50] sm:$0xf]  ;;  %v902_v20 = vand.u32 %v1437_v19, %v236_v5  ;;  %v1038_v23 = vand.u32 %v1469_v21, %v236_v5  ;;  %v766_v24 = vand.u32 %v1411_v22, %v236_v5  ;;  %s1542_s11 = smul.u32 36, %s1831_s13 }
  0x10   : > { %1538 = vmatpush.bf16.msra.mxu1 %v238_v8  ;;  %1539 = vmatpush.bf16.msra.mxu2 %v238_v8  ;;  %v211_v16 = vunpack.c.l.b16 %v1269_v15  ;;  %v1507_v17 = vld [vmem:[%s1614_s27 + $0x30] sm:$0xff]  ;;  %v1510_v27 = vld [vmem:[%s1614_s27 + $0x48] sm:$0xff]  ;;  %v1503_v28 = vld [vmem:[%s1614_s27] sm:$0xff]  ;;  %vm384_vm3 = vsmask.f32 7424  ;;  %vm1088_vm4 = vcmask 1046528  }
  0x11   : > { %1540 = vmatpush.bf16.msra.mxu3 %v238_v8  ;;  %247 = vmatpush.bf16.msra.mxu0 %v238_v8  ;;  %v1495_v25 = vld [vmem:[%s1827_s1 + $0x10] sm:$0x3]  ;;  %v1511_v29 = vld [vmem:[%s1614_s27] sm:$0xff]  ;;  %v1512_v32 = vld [vmem:[%s1614_s27 + $0x8] sm:$0xff]  ;;  %s1788_s16 = scalar_lea.vmem %s1829_s3, %s1542_s11  ;;  %vm1189_vm5 = vcmask 60416  }
  0x12   : > { %v216_v18 = vpack.c.b16 %v211_v16, %v211_v16  ;;  %v1114_v26 = vand.u32 %v1495_v25, %v236_v5  ;;  %v1520_v30 = vld [vmem:[%s1614_s27 + $0x90] sm:$0xff]  ;;  %v1516_v31 = vld [vmem:[%s1614_s27 + $0x60] sm:$0xff]  ;;  %v388_v33 = vshll.u32 %v1511_v29, 16  ;;  %v386_v34 = vshrl.u32 %v1511_v29, 16  ;;  %v1504_v39 = vld [vmem:[%s1614_s27 + $0x8] sm:$0xff] }
  0x13   : > { %1288 = vmatmul.msk.bf16.vlgmr.msra.gmra.mxu1 %vm217_vm2, %v1508_v13  ;;  %1289 = vmatmul.msk.bf16.vlgmr.msra.gmra.mxu2 %vm217_vm2, %v1509_v14  ;;  %v393_v36 = vshll.u32 %v1512_v32, 16  ;;  %v1521_v41 = vld [vmem:[%s1614_s27 + $0x98] sm:$0xff]  ;;  %v1517_v42 = vld [vmem:[%s1614_s27 + $0x68] sm:$0xff]  ;;  %v1513_v43 = vld [vmem:[%s1614_s27 + $0x10] sm:$0xff]  ;;  %v397_v44 = vshrl.u32 %v1512_v32, 16 }
  0x14   : > { %449 = vmatpush.bf16.msrb.mxu2 %v440_v9  ;;  %321 = vmatpush.bf16.msrb.mxu1 %v312_v10  ;;  %v390_v35 = vrot.slane %v388_v33, 1  ;;  %v401_v45 = vshll.u32 %v1513_v43, 16  ;;  %v1505_v48 = vld [vmem:[%s1614_s27 + $0x10] sm:$0xff]  ;;  %v1522_v50 = vld [vmem:[%s1614_s27 + $0xa0] sm:$0xff]  ;;  %v1514_v52 = vld [vmem:[%s1614_s27 + $0x18] sm:$0xff]  ;;  %v405_v53 = vshrl.u32 %v1513_v43, 16 }
  0x15   : > { %544 = vmatpush.bf16.msrb.mxu3 %v535_v11  ;;  %639 = vmatpush.bf16.msrb.mxu0 %v630_v12  ;;  %v395_v38 = vrot.slane %v393_v36, 1  ;;  %v1518_v51 = vld [vmem:[%s1614_s27 + $0x70] sm:$0xff]  ;;  %v409_v54 = vshll.u32 %v1514_v52, 16  ;;  %v1506_v57 = vld [vmem:[%s1614_s27 + $0x18] sm:$0xff]  ;;  %v1523_v59 = vld [vmem:[%s1614_s27 + $0xa8] sm:$0xff]  ;;  %v413_v1 = vshrl.u32 %v1514_v52, 16 }
  0x16   : > { %1287 = vmatmul.msk.bf16.vlgmr.msra.gmra.mxu0 %vm217_vm2, %v1507_v17  ;;  %1291 = vmatmul.msk.bf16.vlgmr.msra.gmra.mxu3 %vm217_vm2, %v216_v18  ;;  %v391_v37 = vor.u32 %v390_v35, %v386_v34  ;;  %v403_v47 = vrot.slane %v401_v45, 1  ;;  %v1332_v60 = vld [vmem:[%s1614_s27 + $0x20] sm:$0xf]  ;;  %v1515_v61 = vld [vmem:[%s1614_s27 + $0x20] sm:$0x10]  ;;  %v1519_v62 = vld [vmem:[%s1614_s27 + $0x78] sm:$0xff] }
  0x17   : > { %v399_v46 = vor.u32 %v397_v44, %v395_v38  ;;  %v411_v56 = vrot.slane %v409_v54, 1  ;;  %v1333_v63 = vor.u32 %v1515_v61, %v1332_v60  ;;  %v180_v0 = vld [vmem:[%s1614_s27 + $0x20] sm:$0xf]  ;;  %v1378_v3 = vld [vmem:[%s1614_s27 + $0xb0] sm:$0xf]  ;;  %v1533_v16 = vld [vmem:[%s1614_s27 + $0x34] sm:$0xff] }
  0x18   : > { %911 = vmatpush.bf16.msra.mxu2 %v902_v20  ;;  %775 = vmatpush.bf16.msra.mxu1 %v766_v24  ;;  %v396_v40 = vsel %vm384_vm3, %v391_v37, %v395_v38  ;;  %v407_v55 = vor.u32 %v405_v53, %v403_v47  ;;  %v290_v4 = vunpack.c.l.b16 %v180_v0  ;;  %v1347_v5 = vld [vmem:[%s1614_s27 + $0x80] sm:$0xf]  ;;  %v608_v8 = vunpack.c.l.b16 %v1378_v3  ;;  %v1558_v15 = vld [vmem:[%s1614_s27 + $0x4] sm:$0xe]  ;;  %v1525_v17 = vld [vmem:[%s1614_s27 + $0x68] sm:$0xff] }
  0x19   : > { %1047 = vmatpush.bf16.msra.mxu3 %v1038_v23  ;;  %1123 = vmatpush.bf16.msra.mxu0 %v1114_v26  ;;  %v404_v49 = vsel %vm384_vm3, %v399_v46, %v403_v47  ;;  %v417_v2 = vshll.u32 %v1333_v63, 16  ;;  %v415_v6 = vor.u32 %v413_v1, %v411_v56  ;;  %v513_v9 = vunpack.c.l.b16 %v1347_v5  ;;  %v1524_v12 = vld [vmem:[%s1614_s27 + $0x60] sm:$0xff]  ;;  %v1557_v20 = vld [vmem:[%s1614_s27 + $0x4] sm:$0xf0]  ;;  %v1700_v52 = vld [vmem:[%s1614_s27 + $0x14] sm:$0xff] }
  0x1a   : > { %v412_v58 = vsel %vm384_vm3, %v407_v55, %v411_v56  ;;  %v295_v10 = vpack.c.b16 %v290_v4, %v290_v4  ;;  %v613_v13 = vpack.c.b16 %v608_v8, %v608_v8  ;;  %v714_v18 = vshll.u32 %v1524_v12, 16  ;;  %v810_v19 = vld [vmem:[%s1614_s27 + $0x4] sm:$0xff]   ;;  %v1534_v21 = vld [vmem:[%s1614_s27 + $0x3c] sm:$0xff]  ;;  %v1536_v1 = vld [vmem:[%s1614_s27 + $0x4c] sm:$0xff] }
  0x1b   : > { %v419_v7 = vrot.slane %v417_v2, 1  ;;  %v518_v14 = vpack.c.b16 %v513_v9, %v513_v9  ;;  %v986_v22 = vshll.u32 %v1533_v16, 16  ;;  %v712_v23 = vshrl.u32 %v1524_v12, 16  ;;  %v1535_v45 = vld [vmem:[%s1614_s27 + $0x44] sm:$0xff]  ;;  %v1527_v0 = vld [vmem:[%s1614_s27 + $0x78] sm:$0xff] }
  0x1c   : > { %v716_v24 = vrot.slane %v714_v18, 1  ;;  %v719_v25 = vshll.u32 %v1525_v17, 16  ;;  %v1559_v26 = vor.u32 %v1558_v15, %v1557_v20  ;;  %v850_v43 = vshll.u32 %v810_v19, 16  ;;  %v1715_v8 = vld [vmem:[%s1614_s27 + $0x1c] sm:$0xff]  ;;  %v1528_v20 = vld [vmem:[%s1614_s27 + $0x80] sm:$0x10] }
  0x1d   : > { %v420_v11 = vsel %vm384_vm3, %v415_v6, %v419_v7  ;;  %v988_v29 = vrot.slane %v986_v22, 1  ;;  %v723_v44 = vshrl.u32 %v1525_v17, 16  ;;  %v848_v47 = vshrl.u32 %v810_v19, 16  ;;  %v1430_v19 = vld [vmem:[%s1614_s27 + $0x80] sm:$0xf] }
  0x1e   : > { %v717_v32 = vor.u32 %v716_v24, %v712_v23  ;;  %v721_v33 = vrot.slane %v719_v25, 1  ;;  %v1089_v34 = vrot.slane %v1559_v26, 1  ;;  %v735_v3 = vshll.u32 %v1527_v0, 16  ;;  %v1488_v25 = vld [vmem:[%s1614_s27 + $0x54] sm:$0xf] }
  0x1f   : > { %v863_v5 = vshll.u32 %v1700_v52, 16  ;;  %v1003_v6 = vshrl.u32 %v1535_v45, 16  ;;  %v1431_v24 = vor.u32 %v1528_v20, %v1430_v19  ;;  %v1537_v26 = vld [vmem:[%s1614_s27 + $0x54] sm:$0x10] }
  0x20   : > { %v725_v53 = vor.u32 %v723_v44, %v721_v33 }
  0x21   : > { %v865_v12 = vrot.slane %v863_v5, 1 }
  0x23   : > { %1290 = vmatmul.msk.bf16.gmra.mxu2 %vm217_vm2, %v1510_v27  ;;  %1308 = vmatmul.msk.bf16.vlgmr.msrb.gmra.mxu1 %vm217_vm2, %v1503_v28  ;;  %v421_v27 = vshrl.u32 %v1333_v63, 16  ;;  %v984_v28 = vshrl.u32 %v1533_v16, 16 }
  0x25   : > { %v423_v36 = vor.u32 %v421_v27, %v419_v7  ;;  %v989_v37 = vor.u32 %v988_v29, %v984_v28  ;;  %v1007_v7 = vshll.u32 %v1536_v1, 16  ;;  %v739_v28 = vshrl.u32 %v1527_v0, 16 }
  0x26   : > { %1396 = vmatmul.msk.bf16.vlgmr.msrb.gmra.mxu0 %vm217_vm2, %v1520_v30  ;;  %1365 = vmatmul.msk.bf16.vlgmr.msrb.gmra.mxu3 %vm217_vm2, %v1516_v31  ;;  %v991_v30 = vshll.u32 %v1534_v21, 16  ;;  %v1529_v31 = vld [vmem:[%s1614_s27 + $0xc] sm:$0xff]  ;;  %v743_v29 = vshll.u32 %v1431_v24, 16  ;;  %v747_v0 = vshrl.u32 %v1431_v24, 16 }
  0x27   : > { %v1090_v35 = vrot.slane %v1529_v31, 1  ;;  %v859_v4 = vshrl.u32 %v1529_v31, 16  ;;  %v1009_v15 = vrot.slane %v1007_v7, 1 }
  0x28   : > { %v993_v38 = vrot.slane %v991_v30, 1  ;;  %v1489_v30 = vor.u32 %v1537_v26, %v1488_v25 }
  0x33   : > { %1309 = vmatmul.msk.bf16.gmra.mxu1 %vm217_vm2, %v1504_v39  ;;  %1334 = vmatmul.msk.bf16.vlgmr.msrb.gmra.mxu2 %vm217_vm2, %v396_v40  ;;  %v722_v39 = vsel %vm384_vm3, %v717_v32, %v721_v33  ;;  %v1091_v40 = vsel %vm1088_vm4, %v1089_v34, %v1090_v35  ;;  %v867_v32 = vshrl.u32 %v1700_v52, 16  ;;  %v871_v33 = vshll.u32 %v1715_v8, 16  ;;  %v1452_v34 = vld [vmem:[%s1614_s27 + $0x24] sm:$0xf] }
  0x35   : > { %v873_v44 = vrot.slane %v871_v33, 1 }
  0x36   : > { %1397 = vmatmul.msk.bf16.gmra.mxu0 %vm217_vm2, %v1521_v41  ;;  %1366 = vmatmul.msk.bf16.gmra.mxu3 %vm217_vm2, %v1517_v42  ;;  %v994_v41 = vsel %vm384_vm3, %v989_v37, %v993_v38  ;;  %v1526_v42 = vld [vmem:[%s1614_s27 + $0x70] sm:$0xff] }
  0x37   : > { %v727_v46 = vshll.u32 %v1526_v42, 16  ;;  %v731_v2 = vshrl.u32 %v1526_v42, 16  ;;  %v745_v42 = vrot.slane %v743_v29, 1 }
  0x39   : > { %v729_v54 = vrot.slane %v727_v46, 1  ;;  %v749_v5 = vor.u32 %v747_v0, %v745_v42 }
  0x3b   : > { %v730_v60 = vsel %vm384_vm3, %v725_v53, %v729_v54  ;;  %v733_v9 = vor.u32 %v731_v2, %v729_v54 }
  0x43   : > { %1310 = vmatmul.msk.bf16.gmra.mxu1 %vm217_vm2, %v1505_v48  ;;  %1335 = vmatmul.msk.bf16.gmra.mxu2 %vm217_vm2, %v404_v49  ;;  %v852_v48 = vrot.slane %v850_v43, 1  ;;  %v855_v49 = vshll.u32 %v1529_v31, 16  ;;  %v869_v43 = vor.u32 %v867_v32, %v865_v12 }
  0x45   : > { %v853_v55 = vor.u32 %v852_v48, %v848_v47  ;;  %v857_v56 = vrot.slane %v855_v49, 1 }
  0x46   : > { %1398 = vmatmul.msk.bf16.gmra.mxu0 %vm217_vm2, %v1522_v50  ;;  %1367 = vmatmul.msk.bf16.gmra.mxu3 %vm217_vm2, %v1518_v51  ;;  %v995_v50 = vshrl.u32 %v1534_v21, 16  ;;  %v999_v51 = vshll.u32 %v1535_v45, 16 }
  0x47   : > { %v858_v61 = vsel %vm384_vm3, %v853_v55, %v857_v56 }
  0x53   : > { %1311 = vmatmul.msk.bf16.gmra.mxu1 %vm217_vm2, %v1506_v57  ;;  %1336 = vmatmul.msk.bf16.gmra.mxu2 %vm217_vm2, %v412_v58  ;;  %v1092_v57 = vrot.slane %v1700_v52, 1  ;;  %v997_v58 = vor.u32 %v995_v50, %v993_v38  ;;  %v1011_v38 = vshrl.u32 %v1536_v1, 16 }
  0x55   : > { %v1013_v47 = vor.u32 %v1011_v38, %v1009_v15 }
  0x56   : > { %1399 = vmatmul.msk.bf16.gmra.mxu0 %vm217_vm2, %v1523_v59  ;;  %1368 = vmatmul.msk.bf16.gmra.mxu3 %vm217_vm2, %v1519_v62  ;;  %v1001_v59 = vrot.slane %v999_v51, 1  ;;  %v1093_v62 = vsel %vm1088_vm4, %v1090_v35, %v1092_v57  ;;  %v1532_v35 = vld [vmem:[%s1614_s27 + $0x24] sm:$0x10]  ;;  %v874_v51 = vsel %vm384_vm3, %v869_v43, %v873_v44 }
  0x58   : > { %v1002_v63 = vsel %vm384_vm3, %v997_v58, %v1001_v59 }
  0x63   : > { %1312 = vmatmul.msk.bf16.gmra.mxu1 %vm217_vm2, %v295_v10  ;;  %1337 = vmatmul.msk.bf16.gmra.mxu2 %vm217_vm2, %v420_v11  ;;  %v737_v10 = vrot.slane %v735_v3, 1  ;;  %v861_v11 = vor.u32 %v859_v4, %v857_v56  ;;  %v1019_v4 = vshrl.u32 %v1489_v30, 16 }
  0x65   : > { %v738_v17 = vsel %vm384_vm3, %v733_v9, %v737_v10  ;;  %v866_v18 = vsel %vm384_vm3, %v861_v11, %v865_v12 }
  0x66   : > { %1400 = vmatmul.msk.bf16.gmra.mxu0 %vm217_vm2, %v613_v13  ;;  %1369 = vmatmul.msk.bf16.gmra.mxu3 %vm217_vm2, %v518_v14  ;;  %v1094_v13 = vrot.slane %v1715_v8, 1  ;;  %v1005_v14 = vor.u32 %v1003_v6, %v1001_v59  ;;  %v875_v59 = vshrl.u32 %v1715_v8, 16 }
  0x68   : > { %v1095_v22 = vsel %vm1088_vm4, %v1092_v57, %v1094_v13  ;;  %v1010_v23 = vsel %vm384_vm3, %v1005_v14, %v1009_v15  ;;  %v877_v1 = vor.u32 %v875_v59, %v873_v44 }
  0x73   : > { %1338 = vmatmul.msk.bf16.gmra.mxu2 %vm217_vm2, %v423_v36  ;;  %1432 = vmatmul.msk.bf16.vlgmr.msra.gmra.mxu1 %vm217_vm2, %v722_v39  ;;  %v1015_v39 = vshll.u32 %v1489_v30, 16 }
  0x75   : > { %v1017_v48 = vrot.slane %v1015_v39, 1 }
  0x76   : > { %1496 = vmatmul.msk.bf16.vlgmr.msra.gmra.mxu0 %vm217_vm2, %v1091_v40  ;;  %1490 = vmatmul.msk.bf16.vlgmr.msra.gmra.mxu3 %vm217_vm2, %v994_v41  ;;  %v1453_v40 = vor.u32 %v1532_v35, %v1452_v34  ;;  %v741_v41 = vor.u32 %v739_v28, %v737_v10 }
  0x77   : > { %v1018_v56 = vsel %vm384_vm3, %v1013_v47, %v1017_v48  ;;  %v1021_v12 = vor.u32 %v1019_v4, %v1017_v48 }
  0x78   : > { %v1096_v45 = vrot.slane %v1453_v40, 1  ;;  %v746_v50 = vsel %vm384_vm3, %v741_v41, %v745_v42  ;;  %v883_v20 = vshrl.u32 %v1453_v40, 16 }
  0x7a   : > { %v1097_v55 = vsel %vm1088_vm4, %v1094_v13, %v1096_v45 }
  0x83   : > { %1433 = vmatmul.msk.bf16.gmra.mxu1 %vm217_vm2, %v730_v60  ;;  %1454 = vmatmul.msk.bf16.vlgmr.msra.gmra.mxu2 %vm217_vm2, %v858_v61  ;;  %v879_v60 = vshll.u32 %v1453_v40, 16 }
  0x85   : > { %v881_v2 = vrot.slane %v879_v60, 1 }
  0x86   : > { %1497 = vmatmul.msk.bf16.gmra.mxu0 %vm217_vm2, %v1093_v62  ;;  %1491 = vmatmul.msk.bf16.gmra.mxu3 %vm217_vm2, %v1002_v63 }
  0x87   : > { %v882_v7 = vsel %vm384_vm3, %v877_v1, %v881_v2 }
  0x90   : > { %v1718_v16 = vpop.f32.mrf.mxu1 }
  0x93   : > { %v249_v21 = vpop.f32.mrf.mxu0  ;;  %1434 = vmatmul.msk.bf16.gmra.mxu1 %vm217_vm2, %v738_v17  ;;  %1455 = vmatmul.msk.bf16.gmra.mxu2 %vm217_vm2, %v866_v18 }
  0x96   : > { %1498 = vmatmul.msk.bf16.gmra.mxu0 %vm217_vm2, %v1095_v22  ;;  %v1731_v27 = vpop.f32.mrf.mxu2  ;;  %1492 = vmatmul.msk.bf16.gmra.mxu3 %vm217_vm2, %v1010_v23  ;;  %v885_v23 = vor.u32 %v883_v20, %v881_v2 }
  0x98   : > { %v256_v31 = vpop.f32.mrf.mxu1 }
  0x99   : > { %v1738_v36 = vpop.f32.mrf.mxu3 }
  0x9b   : > { %v251_v37 = vpop.f32.mrf.mxu0 }
  0x9e   : > { %v261_v46 = vpop.f32.mrf.mxu2 }
  0xa0   : > { %v323_v49 = vpop.f32.mrf.mxu1 }
  0xa1   : > { %v324_v52 = vadd.f32 %v323_v49, %v249_v21  ;;  %v271_v53 = vpop.f32.mrf.mxu3 }
  0xa3   : > { %v641_v54 = vpop.f32.mrf.mxu0  ;;  %1435 = vmatmul.msk.bf16.gmra.mxu1 %vm217_vm2, %v746_v50  ;;  %1456 = vmatmul.msk.bf16.gmra.mxu2 %vm217_vm2, %v874_v51 }
  0xa6   : > { %1499 = vmatmul.msk.bf16.gmra.mxu0 %vm217_vm2, %v1097_v55  ;;  %v264_v57 = vpop.f32.mrf.mxu2  ;;  %1493 = vmatmul.msk.bf16.gmra.mxu3 %vm217_vm2, %v1018_v56 }
  0xa8   : > { %v325_v58 = vpop.f32.mrf.mxu1 }
  0xa9   : > { %v326_v61 = vadd.f32 %v325_v58, %v251_v37  ;;  %v546_v62 = vpop.f32.mrf.mxu3 }
  0xab   : > { %v643_v63 = vpop.f32.mrf.mxu0 }
  0xae   : > { %v266_v3 = vpop.f32.mrf.mxu2 }
  0xb0   : > { %v328_v6 = vpop.f32.mrf.mxu1 }
  0xb1   : > { %v329_v9 = vadd.f32 %v328_v6, %v1718_v16  ;;  %v548_v10 = vpop.f32.mrf.mxu3 }
  0xb3   : > { %v646_v11 = vpop.f32.mrf.mxu0  ;;  %1436 = vmatmul.msk.bf16.gmra.mxu1 %vm217_vm2, %v749_v5  ;;  %1457 = vmatmul.msk.bf16.gmra.mxu2 %vm217_vm2, %v882_v7 }
  0xb6   : > { %1500 = vmatmul.msk.bf16.gmra.mxu0 %vm217_vm2, %v1096_v45  ;;  %v451_v8 = vpop.f32.mrf.mxu2  ;;  %1494 = vmatmul.msk.bf16.gmra.mxu3 %vm217_vm2, %v1021_v12 }
  0xb7   : > { %v475_v13 = vadd.f32 %v451_v8, %v324_v52 }
  0xb8   : > { %v330_v14 = vpop.f32.mrf.mxu1 }
  0xb9   : > { %v570_v15 = vadd.f32 %v546_v62, %v475_v13  ;;  %v331_v17 = vadd.f32 %v330_v14, %v256_v31  ;;  %v551_v18 = vpop.f32.mrf.mxu3 }
  0xbb   : > { %v648_v19 = vpop.f32.mrf.mxu0  ;;  %v1755_v16 = vadd.f32 %v641_v54, %v570_v15 }
  0xbe   : > { %v453_v21 = vpop.f32.mrf.mxu2 }
  0xbf   : > { %v476_v22 = vadd.f32 %v453_v21, %v326_v61 }
  0xc0   : > { %v333_v24 = vpop.f32.mrf.mxu1 }
  0xc1   : > { %v571_v25 = vadd.f32 %v548_v10, %v476_v22  ;;  %v334_v26 = vadd.f32 %v333_v24, %v1731_v27  ;;  %v553_v28 = vpop.f32.mrf.mxu3 }
  0xc3   : > { %v651_v29 = vpop.f32.mrf.mxu0  ;;  %1458 = vmatmul.msk.bf16.gmra.mxu2 %vm217_vm2, %v885_v23  ;;  %v1759_v30 = vadd.f32 %v643_v63, %v571_v25 }
  0xc6   : > { %v456_v32 = vpop.f32.mrf.mxu2 }
  0xc7   : > { %v477_v31 = vadd.f32 %v456_v32, %v329_v9  ;;  %v1780_v32 = vld [vmem:[%s1828_s2] ss:$0 sm:$0xff] }
  0xc8   : > { %v335_v33 = vpop.f32.mrf.mxu1 }
  0xc9   : > { %v572_v34 = vadd.f32 %v551_v18, %v477_v31  ;;  %v336_v35 = vadd.f32 %v335_v33, %v261_v46  ;;  %v556_v37 = vpop.f32.mrf.mxu3 }
  0xcb   : > { %v653_v38 = vpop.f32.mrf.mxu0  ;;  %v1761_v39 = vadd.f32 %v646_v11, %v572_v34 }
  0xce   : > { %v458_v40 = vpop.f32.mrf.mxu2 }
  0xcf   : > { %v478_v41 = vadd.f32 %v458_v40, %v331_v17 }
  0xd0   : > { %v338_v42 = vpop.f32.mrf.mxu1 }
  0xd1   : > { %v573_v43 = vadd.f32 %v553_v28, %v478_v41  ;;  %v339_v27 = vadd.f32 %v338_v42, %v264_v57  ;;  %v558_v44 = vpop.f32.mrf.mxu3 }
  0xd3   : > { %v656_v45 = vpop.f32.mrf.mxu0  ;;  %v1763_v47 = vadd.f32 %v648_v19, %v573_v43 }
  0xd6   : > { %v461_v48 = vpop.f32.mrf.mxu2 }
  0xd7   : > { %v479_v49 = vadd.f32 %v461_v48, %v334_v26 }
  0xd8   : > { %v340_v50 = vpop.f32.mrf.mxu1 }
  0xd9   : > { %v574_v51 = vadd.f32 %v556_v37, %v479_v49  ;;  %v341_v52 = vadd.f32 %v340_v50, %v266_v3  ;;  %v561_v53 = vpop.f32.mrf.mxu3 }
  0xdb   : > { %v658_v46 = vpop.f32.mrf.mxu0  ;;  %v1765_v54 = vadd.f32 %v651_v29, %v574_v51 }
  0xde   : > { %v463_v55 = vpop.f32.mrf.mxu2 }
  0xdf   : > { %v480_v56 = vadd.f32 %v463_v55, %v336_v35 }
  0xe0   : > { %v343_v58 = vpop.f32.mrf.mxu1 }
  0xe1   : > { %v575_v59 = vadd.f32 %v558_v44, %v480_v56  ;;  %v344_v60 = vadd.f32 %v343_v58, %v1738_v36  ;;  %v563_v57 = vpop.f32.mrf.mxu3 }
  0xe3   : > { %v661_v61 = vpop.f32.mrf.mxu0  ;;  %v1768_v62 = vadd.f32 %v653_v38, %v575_v59 }
  0xe6   : > { %v466_v63 = vpop.f32.mrf.mxu2 }
  0xe7   : > { %v481_v0 = vadd.f32 %v466_v63, %v339_v27 }
  0xe8   : > { %v345_v1 = vpop.f32.mrf.mxu1 }
  0xe9   : > { %v576_v2 = vadd.f32 %v561_v53, %v481_v0  ;;  %v566_v4 = vpop.f32.mrf.mxu3 }
  0xeb   : > { %v663_v3 = vpop.f32.mrf.mxu0  ;;  %v1770_v5 = vadd.f32 %v656_v45, %v576_v2 }
  0xee   : > { %v468_v6 = vpop.f32.mrf.mxu2 }
  0xef   : > { %v482_v7 = vadd.f32 %v468_v6, %v341_v52 }
  0xf0   : > { %v777_v9 = vpop.f32.mrf.mxu1 }
  0xf1   : > { %v577_v10 = vadd.f32 %v563_v57, %v482_v7  ;;  %v568_v11 = vpop.f32.mrf.mxu3  ;;  %v801_v24 = vadd.f32 %v777_v9, %v1755_v16 }
  0xf3   : > { %v1125_v12 = vpop.f32.mrf.mxu0  ;;  %v1772_v8 = vadd.f32 %v658_v46, %v577_v10 }
  0xf6   : > { %v471_v36 = vpop.f32.mrf.mxu2 }
  0xf7   : > { %v483_v13 = vadd.f32 %v471_v36, %v344_v60 }
  0xf8   : > { %v779_v14 = vpop.f32.mrf.mxu1 }
  0xf9   : > { %v578_v15 = vadd.f32 %v566_v4, %v483_v13  ;;  %v1049_v17 = vpop.f32.mrf.mxu3  ;;  %v802_v35 = vadd.f32 %v779_v14, %v1759_v30 }
  0xfb   : > { %v1127_v18 = vpop.f32.mrf.mxu0  ;;  %v1774_v19 = vadd.f32 %v661_v61, %v578_v15 }
  0xfe   : > { %v473_v20 = vpop.f32.mrf.mxu2 }
 0x100   : > { %v782_v21 = vpop.f32.mrf.mxu1 }
 0x101   : > { %v1051_v22 = vpop.f32.mrf.mxu3  ;;  %v803_v45 = vadd.f32 %v782_v21, %v1761_v39 }
 0x103   : > { %v1130_v23 = vpop.f32.mrf.mxu0 }
 0x106   : > { %v913_v25 = vpop.f32.mrf.mxu2 }
 0x107   : > { %v937_v26 = vadd.f32 %v913_v25, %v801_v24 }
 0x108   : > { %v784_v28 = vpop.f32.mrf.mxu1 }
 0x109   : > { %v1073_v29 = vadd.f32 %v1049_v17, %v937_v26  ;;  %v1054_v31 = vpop.f32.mrf.mxu3  ;;  %v804_v59 = vadd.f32 %v784_v28, %v1763_v47 }
 0x10b   : > { %v1132_v33 = vpop.f32.mrf.mxu0  ;;  %v1149_v34 = vadd.f32 %v1125_v12, %v1073_v29 }
 0x10d   : > { %v1162_v37 = vadd.f32 %v1780_v32, %v1149_v34 }
 0x10e   : > { %v915_v38 = vpop.f32.mrf.mxu2 }
 0x10f   : > { %v1171_v40 = vmax.f32 %v1162_v37, 0.0  ;;  %v938_v16 = vadd.f32 %v915_v38, %v802_v35 }
 0x110   : > { %v787_v41 = vpop.f32.mrf.mxu1 }
 0x111   : > { %v1180_v42 = vpack.c.bf16 %v1171_v40, %v1171_v40  ;;  %v1074_v43 = vadd.f32 %v1051_v22, %v938_v16  ;;  %v1056_v27 = vpop.f32.mrf.mxu3  ;;  %v805_v6 = vadd.f32 %v787_v41, %v1765_v54 }
 0x113   : > { %v1135_v44 = vpop.f32.mrf.mxu0  ;;  %1190 = vst.msk [vmem:[%s1788_s16] sm:$0xf] %vm1189_vm5, %v1180_v42  ;;  %v1150_v30 = vadd.f32 %v1127_v18, %v1074_v43 }
 0x115   : > { %v1163_v48 = vadd.f32 %v1780_v32, %v1150_v30 }
 0x116   : > { %v918_v49 = vpop.f32.mrf.mxu2 }
 0x117   : > { %v1172_v50 = vmax.f32 %v1163_v48, 0.0  ;;  %v939_v51 = vadd.f32 %v918_v49, %v803_v45 }
 0x118   : > { %v789_v52 = vpop.f32.mrf.mxu1 }
 0x119   : > { %v1181_v53 = vpack.c.bf16 %v1172_v50, %v1172_v50  ;;  %v1075_v46 = vadd.f32 %v1054_v31, %v939_v51  ;;  %v1059_v55 = vpop.f32.mrf.mxu3  ;;  %v806_v17 = vadd.f32 %v789_v52, %v1768_v62 }
 0x11b   : > { %v1137_v56 = vpop.f32.mrf.mxu0  ;;  %1191 = vst.msk [vmem:[%s1788_s16 + $0x4] sm:$0xf] %vm1189_vm5, %v1181_v53  ;;  %v1151_v58 = vadd.f32 %v1130_v23, %v1075_v46 }
 0x11d   : > { %v1164_v60 = vadd.f32 %v1780_v32, %v1151_v58 }
 0x11e   : > { %v920_v57 = vpop.f32.mrf.mxu2 }
 0x11f   : > { %v1173_v39 = vmax.f32 %v1164_v60, 0.0  ;;  %v940_v61 = vadd.f32 %v920_v57, %v804_v59 }
 0x120   : > { %v792_v63 = vpop.f32.mrf.mxu1 }
 0x121   : > { %v1182_v0 = vpack.c.bf16 %v1173_v39, %v1173_v39  ;;  %v1076_v1 = vadd.f32 %v1056_v27, %v940_v61  ;;  %v1061_v2 = vpop.f32.mrf.mxu3  ;;  %v807_v29 = vadd.f32 %v792_v63, %v1770_v5 }
 0x123   : > { %v1140_v4 = vpop.f32.mrf.mxu0  ;;  %1192 = vst.msk [vmem:[%s1788_s16 + $0x8] sm:$0xf] %vm1189_vm5, %v1182_v0  ;;  %v1152_v3 = vadd.f32 %v1132_v33, %v1076_v1 }
 0x125   : > { %v1165_v7 = vadd.f32 %v1780_v32, %v1152_v3 }
 0x126   : > { %v923_v9 = vpop.f32.mrf.mxu2 }
 0x127   : > { %v1174_v47 = vmax.f32 %v1165_v7, 0.0  ;;  %v941_v10 = vadd.f32 %v923_v9, %v805_v6 }
 0x128   : > { %v794_v11 = vpop.f32.mrf.mxu1 }
 0x129   : > { %v1183_v12 = vpack.c.bf16 %v1174_v47, %v1174_v47  ;;  %v1077_v36 = vadd.f32 %v1059_v55, %v941_v10  ;;  %v1064_v13 = vpop.f32.mrf.mxu3  ;;  %v808_v42 = vadd.f32 %v794_v11, %v1772_v8 }
 0x12b   : > { %v1142_v14 = vpop.f32.mrf.mxu0  ;;  %1193 = vst.msk [vmem:[%s1788_s16 + $0xc] sm:$0xf] %vm1189_vm5, %v1183_v12  ;;  %v1153_v15 = vadd.f32 %v1135_v44, %v1077_v36 }
 0x12d   : > { %v1166_v18 = vadd.f32 %v1780_v32, %v1153_v15 }
 0x12e   : > { %v925_v20 = vpop.f32.mrf.mxu2 }
 0x12f   : > { %v1175_v54 = vmax.f32 %v1166_v18, 0.0  ;;  %v942_v21 = vadd.f32 %v925_v20, %v806_v17 }
 0x130   : > { %v797_v22 = vpop.f32.mrf.mxu1 }
 0x131   : > { %v1184_v23 = vpack.c.bf16 %v1175_v54, %v1175_v54  ;;  %v1078_v24 = vadd.f32 %v1061_v2, %v942_v21  ;;  %v1066_v25 = vpop.f32.mrf.mxu3  ;;  %v809_v50 = vadd.f32 %v797_v22, %v1774_v19 }
 0x133   : > { %v1145_v26 = vpop.f32.mrf.mxu0  ;;  %1194 = vst.msk [vmem:[%s1788_s16 + $0x10] sm:$0xf] %vm1189_vm5, %v1184_v23  ;;  %v1154_v28 = vadd.f32 %v1137_v56, %v1078_v24 }
 0x135   : > { %v1167_v31 = vadd.f32 %v1780_v32, %v1154_v28 }
 0x136   : > { %v928_v33 = vpop.f32.mrf.mxu2 }
 0x137   : > { %v1176_v62 = vmax.f32 %v1167_v31, 0.0  ;;  %v943_v34 = vadd.f32 %v928_v33, %v807_v29 }
 0x138   : > { %v799_v35 = vpop.f32.mrf.mxu1 }
 0x139   : > { %v1185_v37 = vpack.c.bf16 %v1176_v62, %v1176_v62  ;;  %v1079_v38 = vadd.f32 %v1064_v13, %v943_v34  ;;  %v1069_v40 = vpop.f32.mrf.mxu3 }
 0x13b   : > { %v1147_v16 = vpop.f32.mrf.mxu0  ;;  %1195 = vst.msk [vmem:[%s1788_s16 + $0x14] sm:$0xf] %vm1189_vm5, %v1185_v37  ;;  %v1155_v41 = vadd.f32 %v1140_v4, %v1079_v38 }
 0x13d   : > { %v1168_v43 = vadd.f32 %v1780_v32, %v1155_v41 }
 0x13e   : > { %v930_v5 = vpop.f32.mrf.mxu2 }
 0x13f   : > { %v1177_v27 = vmax.f32 %v1168_v43, 0.0  ;;  %v944_v44 = vadd.f32 %v930_v5, %v808_v42 }
 0x141   : > { %v1186_v30 = vpack.c.bf16 %v1177_v27, %v1177_v27  ;;  %v1080_v45 = vadd.f32 %v1066_v25, %v944_v44  ;;  %v1071_v48 = vpop.f32.mrf.mxu3 }
 0x143   : > { %1196 = vst.msk [vmem:[%s1788_s16 + $0x18] sm:$0xf] %vm1189_vm5, %v1186_v30  ;;  %v1156_v49 = vadd.f32 %v1142_v14, %v1080_v45 }
 0x145   : > { %v1169_v51 = vadd.f32 %v1780_v32, %v1156_v49 }
 0x146   : > { %v933_v52 = vpop.f32.mrf.mxu2 }
 0x147   : > { %v1178_v53 = vmax.f32 %v1169_v51, 0.0  ;;  %v945_v8 = vadd.f32 %v933_v52, %v809_v50 }
 0x149   : > { %v1187_v46 = vpack.c.bf16 %v1178_v53, %v1178_v53  ;;  %v1081_v55 = vadd.f32 %v1069_v40, %v945_v8 }
 0x14b   : > { %1197 = vst.msk [vmem:[%s1788_s16 + $0x1c] sm:$0xf] %vm1189_vm5, %v1187_v46  ;;  %v1157_v56 = vadd.f32 %v1145_v26, %v1081_v55 }
 0x14d   : > { %v1170_v58 = vadd.f32 %v1780_v32, %v1157_v56 }
 0x14e   : > { %v935_v59 = vpop.f32.mrf.mxu2 }
 0x14f   : > { %v1179_v60 = vmax.f32 %v1170_v58, 0.0 }
 0x151   : > { %v1188_v57 = vpack.c.bf16 %v1179_v60, %v1179_v60 }
 0x153   : > { %1198 = vst.msk [vmem:[%s1788_s16 + $0x20] sm:$0xf] %vm1189_vm5, %v1188_v57 }
 0x154 PF: > { %s13_s12 = sadd.s32 1, %s1562_s12  }
 0x155   : > { %p10_p4 = scmp.ge.s32.totalorder %s13_s12, 4  }
 0x157   :  { %12 = sbr.rel (!%p10_p4) target bundleno = 1 (0x1), region = 73 }

// kernel: generalized_ssd_forward.5
= control target key start
LH: loop header
LB: loop body
LE: loop exit
PB: predicated region body
PF: predicated region fallthrough
CT: control target
= control target key end

     0   :  { %s808_s12 = smov 0   ;;  %s918_s0 = inlined_call_operand.vmem [shape: bf16[2,4,32,8], index: 0, kind: input, shape index: {}]   ;;  %s919_s1 = inlined_call_operand.vmem [shape: bf16[9,8,16], index: 1, kind: input, shape index: {}]   ;;  %s920_s2 = inlined_call_operand.vmem [shape: f32[1,16], index: 2, kind: input, shape index: {}]   ;;  %s921_s3 = inlined_call_operand.vmem [shape: bf16[2,20,16], index: 3, kind: output, shape index: {}]  }
   0x1 LB: > { %s683_s13 = sadd.s32 4294967295, %s786_s12   ;;  %p687_p0 = scmp.ge.s32.totalorder %s786_s12, 1  ;;  %s786_s12 = sphi %s808_s12, %s13_s12  }
   0x2   : > { %p137_p1 = scmp.lt.s32.totalorder %s786_s12, 3 }
   0x4   : > { %p138_p2 = pnand %p687_p0, %p137_p1 }
   0x5   : > { %p161_p3 = scmp.lt.s32.totalorder (!%p138_p2), %s683_s13, 1 }
   0x6   : > { %141 = sbr.rel (%p138_p2) target bundleno = 226 (0xe2), region = 32 }
   0xb   : > { %v694_v0 = vld [vmem:[%s919_s1 + $0x4] sm:$0xf]  ;;  %vm197_vm0 = vcmask 1043456   ;;  %v175_v2 = vld [vmem:[%s919_s1] sm:$0xf]  ;;  %s923_s13 = smov (!%p161_p3, %s683_s13), 1 }
   0xc   : > { %v199_v1 = vsel %vm197_vm0, %v694_v0, 0  ;;  %v707_v3 = vld [vmem:[%s919_s1 + $0x8] sm:$0xf]  ;;  %v234_v4 = vsel %vm197_vm0, %v175_v2, 0  ;;  %v713_v6 = vld [vmem:[%s919_s1 + $0xc] sm:$0xf] }
   0xd   : > { %208 = vmatpush.bf16.msra.mxu0 %v199_v1  ;;  %769 = vmatpush.bf16.msra.mxu1 %v199_v1  ;;  %v282_v5 = vsel %vm197_vm0, %v707_v3, 0  ;;  %vm190_vm1 = vcmask 64512   ;;  %v326_v7 = vsel %vm197_vm0, %v713_v6, 0  ;;  %v723_v8 = vld [vmem:[%s919_s1 + $0x10] sm:$0xf]  ;;  %s761_s24 = sshll.u32 %s923_s13, 6 }
   0xe   : > { %291 = vmatpush.bf16.msra.mxu2 %v282_v5  ;;  %335 = vmatpush.bf16.msra.mxu3 %v326_v7  ;;  %v370_v9 = vsel %vm197_vm0, %v723_v8, 0  ;;  %v734_v10 = vld [vmem:[%s919_s1 + $0x18] sm:$0xf]  ;;  %v745_v11 = vld [vmem:[%s919_s1 + $0x1c] sm:$0xf]  ;;  %s848_s4 = scalar_lea.vmem %s918_s0, %s761_s24  ;;  %vm576_vm4 = vcmask 1044480  }
   0xf   : > { %v484_v12 = vsel %vm197_vm0, %v734_v10, 0  ;;  %v547_v13 = vsel %vm197_vm0, %v745_v11, 0  ;;  %v731_v14 = vld [vmem:[%s919_s1 + $0x14] sm:$0xf]  ;;  %v756_v15 = vld [vmem:[%s919_s1 + $0x20] sm:$0xf] }
  0x10   : > { %v763_v16 = vld [vmem:[%s848_s4 + $0x10] sm:$0xff]  ;;  %v693_v17 = vld [vmem:[%s848_s4 + $0x18] sm:$0x3]  ;;  %v762_v18 = vld [vmem:[%s848_s4] sm:$0xff]  ;;  %v587_v19 = vsel %vm197_vm0, %v756_v15, 0  ;;  %v420_v27 = vsel %vm197_vm0, %v731_v14, 0 }
  0x11   : > { %243 = vmatpush.bf16.msrb.mxu1 %v234_v4  ;;  %379 = vmatpush.bf16.msrb.mxu0 %v370_v9  ;;  %v187_v20 = vunpack.c.l.b16 %v693_v17  ;;  %v254_v21 = vld [vmem:[%s848_s4 + $0x8] sm:$0x7]  ;;  %v864_v22 = vld [vmem:[%s848_s4 + $0x20] sm:$0xff]  ;;  %v261_v24 = vshrl.u32 %v762_v18, 16  ;;  %v263_v25 = vshll.u32 %v762_v18, 16  ;;  %v765_v40 = vld [vmem:[%s848_s4 + $0x30] sm:$0xff] }
  0x12   : > { %493 = vmatpush.bf16.msrb.mxu2 %v484_v12  ;;  %556 = vmatpush.bf16.msrb.mxu3 %v547_v13  ;;  %v258_v23 = vunpack.c.l.b16 %v254_v21  ;;  %vm260_vm2 = vsmask.f32 7424  ;;  %v712_v33 = vld [vmem:[%s848_s4 + $0x28] sm:$0x3]  ;;  %v748_v36 = vld [vmem:[%s848_s4 + $0x10] sm:$0xc] }
  0x13   : > { %699 = vmatmul.msk.bf16.vlgmr.msra.gmra.mxu0 %vm190_vm1, %v763_v16  ;;  %v189_v26 = vpack.c.b16 %v187_v20, %v187_v20  ;;  %718 = vmatmul.msk.bf16.vlgmr.msra.gmra.mxu3 %vm190_vm1, %v864_v22  ;;  %v265_v29 = vrot.slane %v263_v25, 1  ;;  %v316_v35 = vunpack.c.l.b16 %v712_v33  ;;  %v767_v37 = vld [vmem:[%s848_s4 + $0x10] sm:$0xf0]  ;;  %v752_v38 = vld [vmem:[%s848_s4 + $0x18] sm:$0xf]  ;;  %v401_v21 = vshll.u32 %v864_v22, 16 }
  0x14   : > { %v259_v28 = vpack.c.b16 %v258_v23, %v258_v23  ;;  %v768_v39 = vld [vmem:[%s848_s4 + $0x18] sm:$0x10]  ;;  %v443_v42 = vld [vmem:[%s848_s4] sm:$0xc]  ;;  %v444_v43 = vld [vmem:[%s848_s4 + $0x4] sm:$0xf]  ;;  %v749_v44 = vor.u32 %v767_v37, %v748_v36 }
  0x15   : > { %596 = vmatpush.bf16.msra.mxu0 %v587_v19  ;;  %700 = vmatmul.msk.bf16.vlgmr.msra.gmra.mxu1 %vm190_vm1, %v189_v26  ;;  %v266_v30 = vor.u32 %v265_v29, %v261_v24  ;;  %v318_v41 = vpack.c.b16 %v316_v35, %v316_v35  ;;  %v753_v45 = vor.u32 %v768_v39, %v752_v38  ;;  %v737_v47 = vld [vmem:[%s848_s4 + $0x8] sm:$0xf]  ;;  %v453_v48 = vunpack.c.l.b16 %v443_v42  ;;  %v766_v50 = vld [vmem:[%s848_s4 + $0x8] sm:$0x10]  ;;  %v722_v56 = vld [vmem:[%s848_s4 + $0x38] sm:$0x3] }
  0x16   : > { %v268_v31 = vshll.u32 %v259_v28, 16  ;;  %429 = vmatpush.bf16.msra.mxu1 %v420_v27  ;;  %v272_v46 = vshrl.u32 %v259_v28, 16  ;;  %v454_v49 = vunpack.c.l.b16 %v444_v43  ;;  %v524_v51 = vshrl.u32 %v749_v44, 16  ;;  %v174_v0 = vld [vmem:[%s848_s4 + $0x8] sm:$0x3]  ;;  %s770_s11 = smul.u32 12, %s923_s13 }
  0x17   : > { %v527_v52 = vshll.u32 %v749_v44, 16  ;;  %v532_v53 = vshrl.u32 %v753_v45, 16  ;;  %v535_v54 = vshll.u32 %v753_v45, 16  ;;  %v738_v58 = vor.u32 %v766_v50, %v737_v47  ;;  %v730_v10 = vld [vmem:[%s848_s4 + $0x28] sm:$0x7] }
  0x18   : > { %v270_v32 = vrot.slane %v268_v31, 1  ;;  %v457_v57 = vpack.c.b16 %v454_v49, %v453_v48  ;;  %v526_v59 = vrot.slane %v524_v51, 2  ;;  %v360_v63 = vunpack.c.l.b16 %v722_v56  ;;  %v570_v15 = vld [vmem:[%s848_s4] sm:$0x8]  ;;  %s170_s16 = scalar_lea.vmem %s921_s3, %s770_s11 }
  0x19   : > { %v529_v60 = vrot.slane %v527_v52, 3  ;;  %v534_v61 = vrot.slane %v532_v53, 2  ;;  %v537_v62 = vrot.slane %v535_v54, 3  ;;  %v469_v3 = vshrl.u32 %v738_v58, 16 }
  0x1a   : > { %v271_v34 = vsel %vm260_vm2, %v266_v30, %v270_v32  ;;  %v274_v55 = vor.u32 %v272_v46, %v270_v32  ;;  %v461_v1 = vshrl.u32 %v457_v57, 16  ;;  %v464_v2 = vshll.u32 %v457_v57, 16 }
  0x1b   : > { %708 = vmatmul.msk.bf16.vlgmr.msra.gmra.mxu2 %vm190_vm1, %v271_v34  ;;  %v472_v4 = vshll.u32 %v738_v58, 16  ;;  %v530_v5 = vor.u32 %v529_v60, %v526_v59  ;;  %v538_v6 = vor.u32 %v537_v62, %v534_v61  ;;  %v224_v7 = vunpack.c.l.b16 %v174_v0 }
  0x1c   : > { %vm459_vm3 = vsmask.f32 5376  ;;  %v362_v8 = vpack.c.b16 %v360_v63, %v360_v63  ;;  %v463_v9 = vrot.slane %v461_v1, 2  ;;  %v466_v11 = vrot.slane %v464_v2, 3 }
  0x1d   : > { %v471_v12 = vrot.slane %v469_v3, 2  ;;  %v474_v13 = vrot.slane %v472_v4, 3  ;;  %v539_v14 = vsel %vm459_vm3, %v530_v5, %v538_v6  ;;  %v226_v16 = vpack.c.b16 %v224_v7, %v224_v7 }
  0x1e   : > { %v397_v17 = vunpack.c.l.b16 %v730_v10  ;;  %v467_v19 = vor.u32 %v466_v11, %v463_v9  ;;  %v399_v26 = vshrl.u32 %v864_v22, 16  ;;  %v403_v27 = vrot.slane %v401_v21, 1  ;;  %v779_v10 = vld [vmem:[%s920_s2] ss:$0 sm:$0xff] }
  0x1f   : > { %v475_v20 = vor.u32 %v474_v13, %v471_v12  ;;  %v578_v30 = vrot.slane %v738_v58, 3  ;;  %vm623_vm5 = vcmask 125952   ;;  %vm626_vm6 = vcmask 123904  }
  0x20   : > { %v398_v23 = vpack.c.b16 %v397_v17, %v397_v17  ;;  %v404_v31 = vor.u32 %v403_v27, %v399_v26 }
  0x21   : > { %v476_v25 = vsel %vm459_vm3, %v467_v19, %v475_v20 }
  0x22   : > { %v406_v28 = vshll.u32 %v398_v23, 16  ;;  %v410_v22 = vshrl.u32 %v398_v23, 16 }
  0x23   : > { %728 = vmatmul.msk.bf16.vlgmr.msrb.gmra.mxu0 %vm190_vm1, %v765_v40  ;;  %719 = vmatmul.msk.bf16.gmra.mxu3 %vm190_vm1, %v318_v41 }
  0x24   : > { %v408_v32 = vrot.slane %v406_v28, 1 }
  0x25   : > { %705 = vmatmul.msk.bf16.vlgmr.msrb.gmra.mxu1 %vm190_vm1, %v762_v18  ;;  %v574_v18 = vunpack.c.l.b16 %v570_v15 }
  0x26   : > { %v409_v34 = vsel %vm260_vm2, %v404_v31, %v408_v32  ;;  %v412_v35 = vor.u32 %v410_v22, %v408_v32 }
  0x27   : > { %v575_v24 = vpack.c.b16 %v454_v49, %v574_v18 }
  0x29   : > { %v577_v29 = vrot.slane %v575_v24, 3 }
  0x2b   : > { %709 = vmatmul.msk.bf16.gmra.mxu2 %vm190_vm1, %v274_v55  ;;  %v579_v33 = vsel %vm576_vm4, %v577_v29, %v578_v30 }
  0x33   : > { %729 = vmatmul.msk.bf16.gmra.mxu0 %vm190_vm1, %v362_v8  ;;  %754 = vmatmul.msk.bf16.vlgmr.msrb.gmra.mxu3 %vm190_vm1, %v539_v14 }
  0x35   : > { %706 = vmatmul.msk.bf16.gmra.mxu1 %vm190_vm1, %v226_v16 }
  0x3b   : > { %739 = vmatmul.msk.bf16.vlgmr.msrb.gmra.mxu2 %vm190_vm1, %v476_v25 }
  0x43   : > { %757 = vmatmul.msk.bf16.vlgmr.msra.gmra.mxu0 %vm190_vm1, %v579_v33  ;;  %755 = vmatmul.msk.bf16.gmra.mxu3 %vm190_vm1, %v538_v6 }
  0x45   : > { %732 = vmatmul.msk.bf16.vlgmr.msra.gmra.mxu1 %vm190_vm1, %v409_v34 }
  0x4b   : > { %740 = vmatmul.msk.bf16.gmra.mxu2 %vm190_vm1, %v475_v20 }
  0x53   : > { %758 = vmatmul.msk.bf16.gmra.mxu0 %vm190_vm1, %v578_v30 }
  0x55   : > { %733 = vmatmul.msk.bf16.gmra.mxu1 %vm190_vm1, %v412_v35 }
  0x90   : > { %v210_v36 = vpop.f32.mrf.mxu0 }
  0x92   : > { %v215_v37 = vpop.f32.mrf.mxu1 }
  0x96   : > { %v337_v38 = vpop.f32.mrf.mxu3 }
  0x98   : > { %v212_v39 = vpop.f32.mrf.mxu0 }
  0x9a   : > { %v217_v40 = vpop.f32.mrf.mxu1 }
  0x9e   : > { %v293_v41 = vpop.f32.mrf.mxu2  ;;  %v339_v42 = vpop.f32.mrf.mxu3 }
  0xa0   : > { %v381_v43 = vpop.f32.mrf.mxu0 }
  0xa2   : > { %v245_v44 = vpop.f32.mrf.mxu1 }
  0xa3   : > { %v246_v53 = vadd.f32 %v245_v44, %v210_v36 }
  0xa5   : > { %v302_v57 = vadd.f32 %v293_v41, %v246_v53 }
  0xa6   : > { %v295_v45 = vpop.f32.mrf.mxu2  ;;  %v342_v46 = vpop.f32.mrf.mxu3 }
  0xa7   : > { %v346_v60 = vadd.f32 %v337_v38, %v302_v57 }
  0xa8   : > { %v383_v47 = vpop.f32.mrf.mxu0 }
  0xa9   : > { %v390_v1 = vadd.f32 %v381_v43, %v346_v60 }
  0xaa   : > { %v247_v48 = vpop.f32.mrf.mxu1 }
  0xab   : > { %v248_v59 = vadd.f32 %v247_v48, %v212_v39 }
  0xad   : > { %v303_v0 = vadd.f32 %v295_v45, %v248_v59 }
  0xae   : > { %v298_v49 = vpop.f32.mrf.mxu2  ;;  %v344_v50 = vpop.f32.mrf.mxu3 }
  0xaf   : > { %v347_v6 = vadd.f32 %v339_v42, %v303_v0 }
  0xb0   : > { %v386_v51 = vpop.f32.mrf.mxu0 }
  0xb1   : > { %v391_v14 = vadd.f32 %v383_v47, %v347_v6 }
  0xb2   : > { %v250_v52 = vpop.f32.mrf.mxu1 }
  0xb3   : > { %v251_v4 = vadd.f32 %v250_v52, %v215_v37 }
  0xb5   : > { %v304_v12 = vadd.f32 %v298_v49, %v251_v4 }
  0xb6   : > { %v300_v54 = vpop.f32.mrf.mxu2  ;;  %v558_v55 = vpop.f32.mrf.mxu3 }
  0xb7   : > { %v348_v20 = vadd.f32 %v342_v46, %v304_v12 }
  0xb8   : > { %v388_v56 = vpop.f32.mrf.mxu0 }
  0xb9   : > { %v392_v28 = vadd.f32 %v386_v51, %v348_v20 }
  0xba   : > { %v252_v58 = vpop.f32.mrf.mxu1 }
  0xbe   : > { %v495_v61 = vpop.f32.mrf.mxu2  ;;  %v560_v62 = vpop.f32.mrf.mxu3 }
  0xc0   : > { %v598_v63 = vpop.f32.mrf.mxu0 }
  0xc2   : > { %v431_v2 = vpop.f32.mrf.mxu1 }
  0xc3   : > { %v440_v3 = vadd.f32 %v431_v2, %v390_v1 }
  0xc5   : > { %v504_v5 = vadd.f32 %v495_v61, %v440_v3 }
  0xc6   : > { %v497_v7 = vpop.f32.mrf.mxu2  ;;  %v563_v8 = vpop.f32.mrf.mxu3 }
  0xc7   : > { %v567_v9 = vadd.f32 %v558_v55, %v504_v5 }
  0xc8   : > { %v600_v11 = vpop.f32.mrf.mxu0 }
  0xc9   : > { %v607_v13 = vadd.f32 %v598_v63, %v567_v9 }
  0xca   : > { %v433_v15 = vpop.f32.mrf.mxu1 }
  0xcb   : > { %v614_v16 = vadd.f32 %v779_v10, %v607_v13  ;;  %v441_v17 = vadd.f32 %v433_v15, %v391_v14 }
  0xcd   : > { %v617_v18 = vmax.f32 %v614_v16, 0.0  ;;  %v505_v19 = vadd.f32 %v497_v7, %v441_v17 }
  0xce   : > { %v500_v21 = vpop.f32.mrf.mxu2  ;;  %v565_v23 = vpop.f32.mrf.mxu3 }
  0xcf   : > { %v620_v24 = vpack.c.bf16 %v617_v18, %v617_v18  ;;  %v568_v25 = vadd.f32 %v560_v62, %v505_v19 }
  0xd0   : > { %v603_v26 = vpop.f32.mrf.mxu0 }
  0xd1   : > { %624 = vst.msk [vmem:[%s170_s16] sm:$0xf] %vm623_vm5, %v620_v24  ;;  %v608_v27 = vadd.f32 %v600_v11, %v568_v25 }
  0xd2   : > { %v436_v29 = vpop.f32.mrf.mxu1 }
  0xd3   : > { %v615_v30 = vadd.f32 %v779_v10, %v608_v27  ;;  %v442_v31 = vadd.f32 %v436_v29, %v392_v28 }
  0xd5   : > { %v618_v32 = vmax.f32 %v615_v30, 0.0  ;;  %v506_v33 = vadd.f32 %v500_v21, %v442_v31 }
  0xd6   : > { %v502_v34 = vpop.f32.mrf.mxu2 }
  0xd7   : > { %v621_v22 = vpack.c.bf16 %v618_v32, %v618_v32  ;;  %v569_v35 = vadd.f32 %v563_v8, %v506_v33 }
  0xd8   : > { %v605_v36 = vpop.f32.mrf.mxu0 }
  0xd9   : > { %625 = vst.msk [vmem:[%s170_s16 + $0x4] sm:$0xf] %vm623_vm5, %v621_v22  ;;  %v609_v37 = vadd.f32 %v603_v26, %v569_v35 }
  0xda   : > { %v438_v38 = vpop.f32.mrf.mxu1 }
  0xdb   : > { %v616_v39 = vadd.f32 %v779_v10, %v609_v37 }
  0xdd   : > { %v619_v40 = vmax.f32 %v616_v39, 0.0 }
  0xdf   : > { %v622_v41 = vpack.c.bf16 %v619_v40, %v619_v40 }
  0xe1   : > { %627 = vst.msk [vmem:[%s170_s16 + $0x8] sm:$0x3] %vm626_vm6, %v622_v41 }
  0xe2 PF: > { %s13_s12 = sadd.s32 1, %s786_s12  }
  0xe3   : > { %p10_p4 = scmp.ge.s32.totalorder %s13_s12, 4  }
  0xe5   :  { %12 = sbr.rel (!%p10_p4) target bundleno = 1 (0x1), region = 73 }

// kernel: generalized_ssd_forward.7
= control target key start
LH: loop header
LB: loop body
LE: loop exit
PB: predicated region body
PF: predicated region fallthrough
CT: control target
= control target key end

     0   :  { %s813_s12 = smov 0   ;;  %s930_s0 = inlined_call_operand.vmem [shape: bf16[2,1,48,16], index: 0, kind: input, shape index: {}]   ;;  %s931_s1 = inlined_call_operand.vmem [shape: bf16[9,16,42], index: 1, kind: input, shape index: {}]   ;;  %s932_s2 = inlined_call_operand.vmem [shape: f32[1,42], index: 2, kind: input, shape index: {}]   ;;  %s933_s3 = inlined_call_operand.vmem [shape: f32[2,24,42], index: 3, kind: output, shape index: {}]  }
   0x1 LB: > { %s677_s13 = sadd.s32 4294967295, %s791_s12   ;;  %p681_p0 = scmp.ge.s32.totalorder %s791_s12, 1  ;;  %s791_s12 = sphi %s813_s12, %s13_s12  }
   0x2   : > { %p137_p1 = scmp.lt.s32.totalorder %s791_s12, 3 }
   0x4   : > { %p138_p2 = pnand %p681_p0, %p137_p1 }
   0x5   : > { %p161_p3 = scmp.lt.s32.totalorder (!%p138_p2), %s677_s13, 1 }
   0x6   : > { %141 = sbr.rel (%p138_p2) target bundleno = 228 (0xe4), region = 32 }
   0xb   : > { %v757_v0 = vld [vmem:[%s931_s1 + $0x8] sm:$0xff]  ;;  %v756_v1 = vld [vmem:[%s931_s1] sm:$0xff]  ;;  %v758_v2 = vld [vmem:[%s931_s1 + $0x10] sm:$0xff]  ;;  %s935_s13 = smov (!%p161_p3, %s677_s13), 1  ;;  %vm275_vm0 = vcmask 1046528   ;;  %vm213_vm2 = vcmask 130048  }
   0xc   : > { %v759_v3 = vld [vmem:[%s931_s1 + $0x18] sm:$0xff]  ;;  %v760_v4 = vld [vmem:[%s931_s1 + $0x20] sm:$0xff]  ;;  %227 = vmatpush.bf16.msra.mxu0 %v757_v0  ;;  %774 = vmatpush.bf16.msra.mxu1 %v757_v0  ;;  %v762_v5 = vld [vmem:[%s931_s1 + $0x30] sm:$0xff]  ;;  %s775_s28 = smul.u32 24, %s935_s13  ;;  %vm191_vm1 = vsmask.f32 7424 }
   0xd   : > { %v763_v6 = vld [vmem:[%s931_s1 + $0x38] sm:$0xff]  ;;  %298 = vmatpush.bf16.msra.mxu2 %v758_v2  ;;  %346 = vmatpush.bf16.msra.mxu3 %v759_v3  ;;  %vm323_vm3 = vcmask 1044480   ;;  %v761_v36 = vld [vmem:[%s931_s1 + $0x28] sm:$0xff]  ;;  %v764_v37 = vld [vmem:[%s931_s1 + $0x40] sm:$0xff]  ;;  %vm367_vm4 = vsmask.f32 4352 }
   0xe   : > { %s850_s4 = scalar_lea.vmem %s930_s0, %s775_s28  ;;  %vm473_vm5 = vcmask 1045504   ;;  %vm517_vm6 = vsmask.f32 5376  ;;  %s170_s15 = scalar_lea.vmem %s933_s3, %s775_s28  ;;  %vm618_vm7 = vcmask 343040  }
   0xf   : > { %v853_v7 = vld [vmem:[%s850_s4] sm:$0xff]   ;;  %v856_v8 = vld [vmem:[%s850_s4 + $0x8] sm:$0xff]   ;;  %v510_v51 = vld [vmem:[%s850_s4 + $0x10] sm:$0x7] }
  0x10   : > { %257 = vmatpush.bf16.msrb.mxu1 %v756_v1  ;;  %404 = vmatpush.bf16.msrb.mxu0 %v760_v4  ;;  %v177_v9 = vld [vmem:[%s850_s4 + $0xc] sm:$0x1]  ;;  %v860_v10 = vunpack.c.l.b16 %v856_v8  ;;  %v193_v12 = vshrl.u32 %v853_v7, 16  ;;  %v195_v13 = vshll.u32 %v853_v7, 16  ;;  %v268_v14 = vld [vmem:[%s850_s4] sm:$0xe]  ;;  %v867_v16 = vunpack.c.h.b16 %v853_v7 }
  0x11   : > { %496 = vmatpush.bf16.msrb.mxu2 %v762_v5  ;;  %554 = vmatpush.bf16.msrb.mxu3 %v763_v6  ;;  %v188_v11 = vunpack.c.l.b16 %v177_v9  ;;  %v312_v15 = vld [vmem:[%s850_s4] sm:$0x8]  ;;  %v273_v17 = vunpack.c.l.b16 %v268_v14  ;;  %v313_v18 = vld [vmem:[%s850_s4 + $0xc] sm:$0x7]  ;;  %v365_v23 = vunpack.c.h.b16 %v856_v8  ;;  %v377_v43 = vshrl.u32 %v856_v8, 16 }
  0x12   : > { %v319_v19 = vunpack.c.l.b16 %v312_v15  ;;  %v197_v21 = vrot.slane %v195_v13, 1  ;;  %v320_v22 = vunpack.c.l.b16 %v313_v18  ;;  %v380_v44 = vshll.u32 %v856_v8, 16  ;;  %v456_v49 = vld [vmem:[%s850_s4 + $0x4] sm:$0xc]  ;;  %v773_v50 = vld [vmem:[%s850_s4 + $0x8] sm:$0xff]  }
  0x13   : > { %v190_v20 = vpack.c.b16 %v188_v11, %v860_v10  ;;  %v274_v24 = vpack.c.b16 %v867_v16, %v273_v17  ;;  %v379_v47 = vrot.slane %v377_v43, 3  ;;  %v771_v54 = vunpack.c.l.b16 %v773_v50  ;;  %v459_v59 = vld [vmem:[%s850_s4 + $0x10] sm:$0x3]  ;;  %v568_v18 = vld [vmem:[%s850_s4 + $0x4] sm:$0x8] }
  0x14   : > { %v321_v25 = vpack.c.b16 %v867_v16, %v319_v19  ;;  %v198_v26 = vor.u32 %v197_v21, %v193_v12  ;;  %v322_v31 = vpack.c.b16 %v320_v22, %v860_v10  ;;  %v382_v48 = vrot.slane %v380_v44, 4 }
  0x15   : > { %v200_v27 = vshll.u32 %v190_v20, 16  ;;  %v204_v28 = vshrl.u32 %v190_v20, 16  ;;  %v277_v29 = vrot.slane %v190_v20, 1  ;;  %v276_v30 = vrot.slane %v274_v24, 1 }
  0x16   : > { %v324_v32 = vrot.slane %v321_v25, 3  ;;  %v325_v35 = vrot.slane %v322_v31, 3  ;;  %v369_v41 = vshrl.u32 %v321_v25, 16  ;;  %v372_v42 = vshll.u32 %v321_v25, 16 }
  0x17   : > { %v202_v33 = vrot.slane %v200_v27, 1  ;;  %v278_v34 = vsel %vm275_vm0, %v276_v30, %v277_v29  ;;  %v383_v53 = vor.u32 %v382_v48, %v379_v47  ;;  %v772_v55 = vunpack.c.h.b16 %v773_v50 }
  0x18   : > { %704 = vmatmul.msk.bf16.vlgmr.msra.gmra.mxu2 %vm213_vm2, %v278_v34  ;;  %v326_v40 = vsel %vm323_vm3, %v324_v32, %v325_v35  ;;  %v371_v45 = vrot.slane %v369_v41, 3  ;;  %v374_v46 = vrot.slane %v372_v42, 4  ;;  %v467_v56 = vunpack.c.l.b16 %v456_v49 }
  0x19   : > { %v203_v38 = vsel %vm191_vm1, %v198_v26, %v202_v33  ;;  %v206_v39 = vor.u32 %v204_v28, %v202_v33  ;;  %712 = vmatmul.msk.bf16.vlgmr.msra.gmra.mxu3 %vm213_vm2, %v326_v40  ;;  %v515_v57 = vunpack.c.l.b16 %v510_v51  ;;  %v470_v62 = vunpack.c.l.b16 %v459_v59 }
  0x1a   : > { %690 = vmatmul.msk.bf16.vlgmr.msra.gmra.mxu0 %vm213_vm2, %v203_v38  ;;  %v375_v52 = vor.u32 %v374_v46, %v371_v45  ;;  %v471_v60 = vpack.c.b16 %v771_v54, %v467_v56  ;;  %v573_v19 = vunpack.c.l.b16 %v568_v18  ;;  %v421_v25 = vpack.c.b16 %v860_v10, %v867_v16 }
  0x1b   : > { %691 = vmatmul.msk.bf16.vlgmr.msra.gmra.mxu1 %vm213_vm2, %v206_v39  ;;  %597 = vmatpush.bf16.msra.mxu0 %v764_v37  ;;  %v516_v61 = vpack.c.b16 %v515_v57, %v772_v55  ;;  %v472_v3 = vpack.c.b16 %v470_v62, %v772_v55  ;;  %v422_v26 = vpack.c.b16 %v365_v23, %v365_v23 }
  0x1c   : > { %442 = vmatpush.bf16.msra.mxu1 %v761_v36  ;;  %v384_v58 = vsel %vm367_vm4, %v375_v52, %v383_v53  ;;  %v519_v63 = vshrl.u32 %v471_v60, 16  ;;  %v522_v0 = vshll.u32 %v471_v60, 16  ;;  %v474_v11 = vrot.slane %v471_v60, 2 }
  0x1d   : > { %v527_v1 = vshrl.u32 %v516_v61, 16  ;;  %v530_v2 = vshll.u32 %v516_v61, 16  ;;  %v475_v12 = vrot.slane %v472_v3, 2  ;;  %v574_v20 = vpack.c.b16 %v771_v54, %v573_v19 }
  0x1e   : > { %v521_v4 = vrot.slane %v519_v63, 2  ;;  %v524_v5 = vrot.slane %v522_v0, 3  ;;  %v576_v22 = vrot.slane %v516_v61, 3  ;;  %v784_v61 = vld [vmem:[%s932_s2] ss:$0 sm:$0xff] }
  0x1f   : > { %v529_v6 = vrot.slane %v527_v1, 2  ;;  %v532_v9 = vrot.slane %v530_v2, 3  ;;  %v476_v15 = vsel %vm473_vm5, %v474_v11, %v475_v12  ;;  %v575_v21 = vrot.slane %v574_v20, 3 }
  0x20   : > { %v525_v13 = vor.u32 %v524_v5, %v521_v4 }
  0x21   : > { %v533_v14 = vor.u32 %v532_v9, %v529_v6  ;;  %v577_v24 = vsel %vm323_vm3, %v575_v21, %v576_v22 }
  0x23   : > { %v534_v17 = vsel %vm517_vm6, %v525_v13, %v533_v14 }
  0x28   : > { %705 = vmatmul.msk.bf16.gmra.mxu2 %vm213_vm2, %v277_v29 }
  0x29   : > { %713 = vmatmul.msk.bf16.gmra.mxu3 %vm213_vm2, %v325_v35 }
  0x2a   : > { %720 = vmatmul.msk.bf16.vlgmr.msrb.gmra.mxu0 %vm213_vm2, %v384_v58 }
  0x2b   : > { %696 = vmatmul.msk.bf16.vlgmr.msrb.gmra.mxu1 %vm213_vm2, %v853_v7  ;;  %v238_v7 = vpack.c.b16 %v860_v10, %v860_v10 }
  0x38   : > { %736 = vmatmul.msk.bf16.vlgmr.msrb.gmra.mxu2 %vm213_vm2, %v476_v15 }
  0x39   : > { %744 = vmatmul.msk.bf16.vlgmr.msrb.gmra.mxu3 %vm213_vm2, %v534_v17 }
  0x3a   : > { %721 = vmatmul.msk.bf16.gmra.mxu0 %vm213_vm2, %v383_v53 }
  0x3b   : > { %697 = vmatmul.msk.bf16.gmra.mxu1 %vm213_vm2, %v238_v7 }
  0x48   : > { %737 = vmatmul.msk.bf16.gmra.mxu2 %vm213_vm2, %v475_v12 }
  0x49   : > { %745 = vmatmul.msk.bf16.gmra.mxu3 %vm213_vm2, %v533_v14 }
  0x4a   : > { %752 = vmatmul.msk.bf16.vlgmr.msra.gmra.mxu0 %vm213_vm2, %v577_v24 }
  0x4b   : > { %728 = vmatmul.msk.bf16.vlgmr.msra.gmra.mxu1 %vm213_vm2, %v421_v25 }
  0x5a   : > { %753 = vmatmul.msk.bf16.gmra.mxu0 %vm213_vm2, %v576_v22 }
  0x5b   : > { %729 = vmatmul.msk.bf16.gmra.mxu1 %vm213_vm2, %v422_v26 }
  0x97   : > { %v229_v27 = vpop.f32.mrf.mxu0 }
  0x98   : > { %v234_v28 = vpop.f32.mrf.mxu1 }
  0x9b   : > { %v300_v29 = vpop.f32.mrf.mxu2 }
  0x9c   : > { %v348_v10 = vpop.f32.mrf.mxu3 }
  0x9f   : > { %v231_v16 = vpop.f32.mrf.mxu0 }
  0xa0   : > { %v236_v30 = vpop.f32.mrf.mxu1 }
  0xa3   : > { %v302_v31 = vpop.f32.mrf.mxu2 }
  0xa4   : > { %v350_v32 = vpop.f32.mrf.mxu3 }
  0xa7   : > { %v406_v33 = vpop.f32.mrf.mxu0 }
  0xa8   : > { %v259_v34 = vpop.f32.mrf.mxu1 }
  0xa9   : > { %v260_v41 = vadd.f32 %v259_v34, %v229_v27 }
  0xab   : > { %v305_v35 = vpop.f32.mrf.mxu2  ;;  %v309_v44 = vadd.f32 %v300_v29, %v260_v41 }
  0xac   : > { %v353_v36 = vpop.f32.mrf.mxu3 }
  0xad   : > { %v357_v48 = vadd.f32 %v348_v10, %v309_v44 }
  0xaf   : > { %v408_v37 = vpop.f32.mrf.mxu0  ;;  %v415_v53 = vadd.f32 %v406_v33, %v357_v48 }
  0xb0   : > { %v261_v8 = vpop.f32.mrf.mxu1 }
  0xb1   : > { %v262_v47 = vadd.f32 %v261_v8, %v231_v16 }
  0xb3   : > { %v307_v38 = vpop.f32.mrf.mxu2  ;;  %v310_v51 = vadd.f32 %v302_v31, %v262_v47 }
  0xb4   : > { %v355_v23 = vpop.f32.mrf.mxu3 }
  0xb5   : > { %v358_v58 = vadd.f32 %v350_v32, %v310_v51 }
  0xb7   : > { %v411_v39 = vpop.f32.mrf.mxu0  ;;  %v416_v2 = vadd.f32 %v408_v37, %v358_v58 }
  0xb8   : > { %v264_v40 = vpop.f32.mrf.mxu1 }
  0xb9   : > { %v265_v56 = vadd.f32 %v264_v40, %v234_v28 }
  0xbb   : > { %v498_v42 = vpop.f32.mrf.mxu2  ;;  %v311_v63 = vadd.f32 %v305_v35, %v265_v56 }
  0xbc   : > { %v556_v43 = vpop.f32.mrf.mxu3 }
  0xbd   : > { %v359_v9 = vadd.f32 %v353_v36, %v311_v63 }
  0xbf   : > { %v413_v45 = vpop.f32.mrf.mxu0  ;;  %v417_v7 = vadd.f32 %v411_v39, %v359_v9 }
  0xc0   : > { %v266_v46 = vpop.f32.mrf.mxu1 }
  0xc3   : > { %v500_v49 = vpop.f32.mrf.mxu2 }
  0xc4   : > { %v558_v50 = vpop.f32.mrf.mxu3 }
  0xc7   : > { %v599_v52 = vpop.f32.mrf.mxu0 }
  0xc8   : > { %v444_v54 = vpop.f32.mrf.mxu1 }
  0xc9   : > { %v453_v55 = vadd.f32 %v444_v54, %v415_v53 }
  0xcb   : > { %v507_v57 = vadd.f32 %v498_v42, %v453_v55  ;;  %v503_v59 = vpop.f32.mrf.mxu2 }
  0xcc   : > { %v561_v62 = vpop.f32.mrf.mxu3 }
  0xcd   : > { %v565_v60 = vadd.f32 %v556_v43, %v507_v57 }
  0xcf   : > { %v608_v0 = vadd.f32 %v599_v52, %v565_v60  ;;  %v601_v1 = vpop.f32.mrf.mxu0 }
  0xd0   : > { %v446_v3 = vpop.f32.mrf.mxu1 }
  0xd1   : > { %v615_v4 = vadd.f32 %v784_v61, %v608_v0  ;;  %v454_v5 = vadd.f32 %v446_v3, %v416_v2 }
  0xd3   : > { %619 = vst.msk [vmem:[%s170_s15] sm:$0xff] %vm618_vm7, %v615_v4  ;;  %v508_v6 = vadd.f32 %v500_v49, %v454_v5  ;;  %v505_v11 = vpop.f32.mrf.mxu2 }
  0xd4   : > { %v563_v13 = vpop.f32.mrf.mxu3 }
  0xd5   : > { %v566_v12 = vadd.f32 %v558_v50, %v508_v6 }
  0xd7   : > { %v609_v14 = vadd.f32 %v601_v1, %v566_v12  ;;  %v604_v15 = vpop.f32.mrf.mxu0 }
  0xd8   : > { %v449_v17 = vpop.f32.mrf.mxu1 }
  0xd9   : > { %v616_v18 = vadd.f32 %v784_v61, %v609_v14  ;;  %v455_v19 = vadd.f32 %v449_v17, %v417_v7 }
  0xdb   : > { %620 = vst.msk [vmem:[%s170_s15 + $0x8] sm:$0xff] %vm618_vm7, %v616_v18  ;;  %v509_v20 = vadd.f32 %v503_v59, %v455_v19 }
  0xdd   : > { %v567_v21 = vadd.f32 %v561_v62, %v509_v20 }
  0xdf   : > { %v610_v22 = vadd.f32 %v604_v15, %v567_v21  ;;  %v606_v24 = vpop.f32.mrf.mxu0 }
  0xe0   : > { %v451_v25 = vpop.f32.mrf.mxu1 }
  0xe1   : > { %v617_v26 = vadd.f32 %v784_v61, %v610_v22 }
  0xe3   : > { %621 = vst.msk [vmem:[%s170_s15 + $0x10] sm:$0xff] %vm618_vm7, %v617_v26 }
  0xe4 PF: > { %s13_s12 = sadd.s32 1, %s791_s12  }
  0xe5   : > { %p10_p4 = scmp.ge.s32.totalorder %s13_s12, 4  }
  0xe7   :  { %12 = sbr.rel (!%p10_p4) target bundleno = 1 (0x1), region = 70 }

// kernel: generalized_ssd_forward.6
= control target key start
LH: loop header
LB: loop body
LE: loop exit
PB: predicated region body
PF: predicated region fallthrough
CT: control target
= control target key end

     0   :  { %s1323_s12 = smov 0   ;;  %s1660_s0 = inlined_call_operand.vmem [shape: bf16[2,1,112,8], index: 0, kind: input, shape index: {}]   ;;  %s1661_s1 = inlined_call_operand.vmem [shape: bf16[9,8,28], index: 1, kind: input, shape index: {}]   ;;  %s1662_s2 = inlined_call_operand.vmem [shape: f32[1,28], index: 2, kind: input, shape index: {}]   ;;  %s1663_s3 = inlined_call_operand.vmem [shape: f32[2,80,28], index: 3, kind: output, shape index: {}]  }
   0x1 LB: > { %s1152_s13 = sadd.s32 4294967295, %s1301_s12   ;;  %p1156_p0 = scmp.ge.s32.totalorder %s1301_s12, 1  ;;  %s1301_s12 = sphi %s1323_s12, %s13_s12  }
   0x2   : > { %p137_p1 = scmp.lt.s32.totalorder %s1301_s12, 3 }
   0x4   : > { %p138_p2 = pnand %p1156_p0, %p137_p1 }
   0x5   : > { %p161_p3 = scmp.lt.s32.totalorder (!%p138_p2), %s1152_s13, 1 }
   0x6   : > { %141 = sbr.rel (%p138_p2) target bundleno = 349 (0x15d), region = 32 }
   0xb   : > { %v1159_v0 = vld [vmem:[%s1661_s1 + $0x4] sm:$0xf]  ;;  %vm275_vm0 = vcmask 1043456   ;;  %v1186_v2 = vld [vmem:[%s1661_s1 + $0x8] sm:$0xf]  ;;  %s1665_s13 = smov (!%p161_p3, %s1152_s13), 1 }
   0xc   : > { %v277_v1 = vsel %vm275_vm0, %v1159_v0, 0  ;;  %v182_v3 = vld [vmem:[%s1661_s1] sm:$0xf]  ;;  %v394_v4 = vsel %vm275_vm0, %v1186_v2, 0  ;;  %v1192_v6 = vld [vmem:[%s1661_s1 + $0xc] sm:$0xf] }
   0xd   : > { %1281 = vmatpush.bf16.msra.mxu1 %v277_v1  ;;  %1282 = vmatpush.bf16.msra.mxu2 %v277_v1  ;;  %v324_v5 = vsel %vm275_vm0, %v182_v3, 0  ;;  %v508_v7 = vsel %vm275_vm0, %v1192_v6, 0  ;;  %v1214_v8 = vld [vmem:[%s1661_s1 + $0x10] sm:$0xf]  ;;  %s1284_s24 = smul.u32 56, %s1665_s13  ;;  %vm259_vm2 = vcmask 64512  }
   0xe   : > { %1283 = vmatpush.bf16.msra.mxu3 %v277_v1  ;;  %286 = vmatpush.bf16.msra.mxu0 %v277_v1  ;;  %v630_v9 = vsel %vm275_vm0, %v1214_v8, 0  ;;  %vm214_vm1 = vsmask.f32 7424  ;;  %v1226_v44 = vld [vmem:[%s1661_s1 + $0x18] sm:$0xf]  ;;  %vm366_vm3 = vcmask 1046528  }
   0xf   : > { %s1357_s27 = scalar_lea.vmem %s1660_s0, %s1284_s24  ;;  %v824_v46 = vsel %vm275_vm0, %v1226_v44, 0  ;;  %v1248_v47 = vld [vmem:[%s1661_s1 + $0x1c] sm:$0xf]  ;;  %v1220_v51 = vld [vmem:[%s1661_s1 + $0x14] sm:$0xf]  ;;  %vm682_vm5 = vcmask 1045504  }
  0x10   : > { %v1360_v10 = vld [vmem:[%s1357_s27 + $0x8] sm:$0xff]  ;;  %v1363_v11 = vld [vmem:[%s1357_s27 + $0x10] sm:$0xff]  ;;  %v1366_v12 = vld [vmem:[%s1357_s27 + $0x18] sm:$0xff]  ;;  %v946_v57 = vsel %vm275_vm0, %v1248_v47, 0  ;;  %v710_v58 = vsel %vm275_vm0, %v1220_v51, 0  ;;  %vm998_vm7 = vcmask 1044480  }
  0x11   : > { %403 = vmatpush.bf16.msrb.mxu2 %v394_v4  ;;  %333 = vmatpush.bf16.msrb.mxu1 %v324_v5  ;;  %v1369_v13 = vld [vmem:[%s1357_s27 + $0x20] sm:$0xff]  ;;  %v183_v14 = vld [vmem:[%s1357_s27 + $0x28] sm:$0x1]  ;;  %v223_v15 = vshll.u32 %v1360_v10, 16  ;;  %v227_v16 = vshrl.u32 %v1360_v10, 16  ;;  %v231_v17 = vshll.u32 %v1363_v11, 16 }
  0x12   : > { %517 = vmatpush.bf16.msrb.mxu3 %v508_v7  ;;  %639 = vmatpush.bf16.msrb.mxu0 %v630_v9  ;;  %v235_v18 = vshrl.u32 %v1363_v11, 16  ;;  %v1377_v19 = vld [vmem:[%s1357_s27] sm:$0xff]   ;;  %v239_v20 = vshll.u32 %v1366_v12, 16  ;;  %v207_v21 = vunpack.c.l.b16 %v183_v14  ;;  %v247_v22 = vshll.u32 %v1369_v13, 16  ;;  %v1384_v25 = vld [vmem:[%s1357_s27 + $0x8] sm:$0xff]   ;;  %s1285_s9 = smul.u32 80, %s1665_s13 }
  0x13   : > { %v251_v23 = vshrl.u32 %v1369_v13, 16  ;;  %v440_v24 = vld [vmem:[%s1357_s27 + $0x4] sm:$0xe]  ;;  %v225_v26 = vrot.slane %v223_v15, 1  ;;  %v233_v27 = vrot.slane %v231_v17, 1  ;;  %v216_v28 = vshrl.u32 %v1377_v19, 16 }
  0x14   : > { %v241_v29 = vrot.slane %v239_v20, 1  ;;  %v1387_v30 = vpack.c.b16 %v207_v21, %v207_v21  ;;  %v249_v31 = vrot.slane %v247_v22, 1  ;;  %v218_v32 = vshll.u32 %v1377_v19, 16  ;;  %v1408_v50 = vld [vmem:[%s1357_s27 + $0xc] sm:$0xff]  ;;  %v1254_v54 = vld [vmem:[%s1661_s1 + $0x20] sm:$0xf]  ;;  %s1616_s16 = scalar_lea.vmem %s1663_s3, %s1285_s9 }
  0x15   : > { %v229_v33 = vor.u32 %v227_v16, %v225_v26  ;;  %v237_v34 = vor.u32 %v235_v18, %v233_v27  ;;  %v464_v35 = vunpack.c.l.b16 %v440_v24  ;;  %v465_v36 = vunpack.c.l.b16 %v1384_v25  ;;  %v1278_v9 = vld [vmem:[%s1357_s27] sm:$0xf0]  ;;  %v1279_v14 = vld [vmem:[%s1357_s27] sm:$0xe]  ;;  %v1434_v15 = vld [vmem:[%s1357_s27 + $0x14] sm:$0xff] }
  0x16   : > { %v253_v37 = vor.u32 %v251_v23, %v249_v31  ;;  %v255_v38 = vshll.u32 %v1387_v30, 16  ;;  %v220_v39 = vrot.slane %v218_v32, 1  ;;  %v570_v55 = vshrl.u32 %v1408_v50, 16 }
  0x17   : > { %v234_v40 = vsel %vm214_vm1, %v229_v33, %v233_v27  ;;  %v242_v41 = vsel %vm214_vm1, %v237_v34, %v241_v29  ;;  %v475_v45 = vpack.c.b16 %v465_v36, %v464_v35  ;;  %v573_v56 = vshll.u32 %v1408_v50, 16 }
  0x18   : > { %1177 = vmatmul.msk.bf16.vlgmr.msra.gmra.mxu1 %vm259_vm2, %v234_v40  ;;  %1178 = vmatmul.msk.bf16.vlgmr.msra.gmra.mxu2 %vm259_vm2, %v242_v41  ;;  %v257_v42 = vrot.slane %v255_v38, 1  ;;  %v221_v43 = vor.u32 %v220_v39, %v216_v28  ;;  %v243_v59 = vshrl.u32 %v1366_v12, 16  ;;  %v1026_v60 = vsel %vm275_vm0, %v1254_v54, 0  ;;  %v1464_v41 = vld [vmem:[%s1357_s27 + $0x24] sm:$0xff] }
  0x19   : > { %833 = vmatpush.bf16.msra.mxu2 %v824_v46  ;;  %v562_v52 = vshrl.u32 %v475_v45, 16  ;;  %v565_v53 = vshll.u32 %v475_v45, 16  ;;  %719 = vmatpush.bf16.msra.mxu1 %v710_v58  ;;  %v572_v63 = vrot.slane %v570_v55, 1  ;;  %v575_v0 = vrot.slane %v573_v56, 2 }
  0x1a   : > { %v258_v48 = vsel %vm214_vm1, %v253_v37, %v257_v42  ;;  %v226_v49 = vsel %vm214_vm1, %v221_v43, %v225_v26  ;;  %v245_v1 = vor.u32 %v243_v59, %v241_v29  ;;  %v481_v2 = vrot.slane %v475_v45, 1  ;;  %v1449_v29 = vld [vmem:[%s1357_s27 + $0x1c] sm:$0xff] }
  0x1b   : > { %1180 = vmatmul.msk.bf16.vlgmr.msra.gmra.mxu3 %vm259_vm2, %v258_v48  ;;  %1176 = vmatmul.msk.bf16.vlgmr.msra.gmra.mxu0 %vm259_vm2, %v226_v49  ;;  %v564_v61 = vrot.slane %v562_v52, 1  ;;  %v567_v62 = vrot.slane %v565_v53, 2  ;;  %v482_v3 = vrot.slane %v1408_v50, 1  ;;  %v576_v5 = vor.u32 %v575_v0, %v572_v63  ;;  %v676_v48 = vld [vmem:[%s1357_s27 + $0x4] sm:$0xc] }
  0x1c   : > { %955 = vmatpush.bf16.msra.mxu3 %v946_v57  ;;  %1035 = vmatpush.bf16.msra.mxu0 %v1026_v60  ;;  %v250_v6 = vsel %vm214_vm1, %v245_v1, %v249_v31  ;;  %vm560_vm4 = vsmask.f32 6400  ;;  %v579_v16 = vshrl.u32 %v1434_v15, 16  ;;  %v582_v17 = vshll.u32 %v1434_v15, 16  ;;  %v554_v52 = vld [vmem:[%s1357_s27 + $0x2c] sm:$0x3] }
  0x1d   : > { %v568_v4 = vor.u32 %v567_v62, %v564_v61  ;;  %v483_v7 = vsel %vm366_vm3, %v481_v2, %v482_v3  ;;  %v1280_v18 = vor.u32 %v1279_v14, %v1278_v9  ;;  %v368_v22 = vrot.slane %v1360_v10, 1  ;;  %v450_v62 = vld [vmem:[%s1357_s27 + $0x2c] sm:$0x1] }
  0x1e   : > { %v581_v20 = vrot.slane %v579_v16, 1  ;;  %v484_v23 = vrot.slane %v1434_v15, 1  ;;  %v588_v31 = vshrl.u32 %v1449_v29, 16  ;;  %v591_v32 = vshll.u32 %v1449_v29, 16  ;;  %v1270_v16 = vld [vmem:[%s1357_s27 + $0x10] sm:$0xff] }
  0x1f   : > { %v577_v8 = vsel %vm560_vm4, %v568_v4, %v576_v5  ;;  %v367_v21 = vrot.slane %v1280_v18, 1  ;;  %v486_v35 = vrot.slane %v1449_v29, 1  ;;  %v374_v42 = vrot.slane %v1369_v13, 1 }
  0x20   : > { %v485_v27 = vsel %vm366_vm3, %v482_v3, %v484_v23  ;;  %v590_v33 = vrot.slane %v588_v31, 1  ;;  %v593_v34 = vrot.slane %v591_v32, 2  ;;  %v376_v43 = vrot.slane %v1387_v30, 1 }
  0x21   : > { %v369_v26 = vsel %vm366_vm3, %v367_v21, %v368_v22  ;;  %v487_v39 = vsel %vm366_vm3, %v484_v23, %v486_v35  ;;  %v597_v44 = vshrl.u32 %v1464_v41, 16  ;;  %v372_v49 = vrot.slane %v1366_v12, 1 }
  0x22   : > { %v594_v37 = vor.u32 %v593_v34, %v590_v33  ;;  %v1473_v45 = vsel %vm366_vm3, %v374_v42, %v376_v43  ;;  %v680_v51 = vunpack.c.l.b16 %v676_v48  ;;  %v488_v30 = vrot.slane %v1464_v41, 1 }
  0x23   : > { %v599_v46 = vrot.slane %v597_v44, 1  ;;  %v558_v55 = vunpack.c.l.b16 %v554_v52  ;;  %v684_v58 = vrot.slane %v1408_v50, 2  ;;  %v686_v50 = vrot.slane %v1434_v15, 2 }
  0x24   : > { %v681_v53 = vpack.c.b16 %v465_v36, %v680_v51  ;;  %v489_v36 = vsel %vm366_vm3, %v486_v35, %v488_v30  ;;  %v474_v63 = vunpack.c.l.b16 %v450_v62  ;;  %v781_v9 = vunpack.c.h.b16 %v1384_v25  ;;  %v1526_v51 = vld [vmem:[%s1357_s27 + $0x20] sm:$0xff] }
  0x25   : > { %v1489_v61 = vpack.c.b16 %v558_v55, %v558_v55  ;;  %v687_v1 = vsel %vm682_vm5, %v684_v58, %v686_v50  ;;  %v375_v14 = vsel %vm366_vm3, %v372_v49, %v374_v42  ;;  %v886_v21 = vshrl.u32 %v1270_v16, 16 }
  0x26   : > { %v683_v57 = vrot.slane %v681_v53, 2  ;;  %v480_v2 = vpack.c.b16 %v474_v63, %v474_v63  ;;  %v889_v23 = vshll.u32 %v1270_v16, 16  ;;  %vm876_vm6 = vsmask.f32 5376 }
  0x27   : > { %v609_v0 = vshll.u32 %v1489_v61, 16  ;;  %v904_v52 = vshrl.u32 %v1526_v51, 16  ;;  %v907_v53 = vshll.u32 %v1526_v51, 16  ;;  %v688_v55 = vrot.slane %v1449_v29, 2 }
  0x28   : > { %1179 = vmatmul.msk.bf16.gmra.mxu2 %vm259_vm2, %v250_v6  ;;  %1181 = vmatmul.msk.bf16.vlgmr.msrb.gmra.mxu1 %vm259_vm2, %v1377_v19  ;;  %v584_v19 = vrot.slane %v582_v17, 2  ;;  %v685_v59 = vsel %vm682_vm5, %v683_v57, %v684_v58  ;;  %v490_v6 = vrot.slane %v480_v2, 1  ;;  %v1004_v58 = vrot.slane %v1526_v51, 3 }
  0x29   : > { %v611_v4 = vrot.slane %v609_v0, 2  ;;  %vm1086_vm8 = vcmask 228352  }
  0x2a   : > { %v585_v24 = vor.u32 %v584_v19, %v581_v20  ;;  %v491_v17 = vsel %vm366_vm3, %v488_v30, %v490_v6  ;;  %v992_v19 = vld [vmem:[%s1357_s27 + $0x8] sm:$0x8]  ;;  %v906_v30 = vrot.slane %v904_v52, 2  ;;  %v690_v6 = vrot.slane %v1464_v41, 2 }
  0x2b   : > { %1209 = vmatmul.msk.bf16.vlgmr.msrb.gmra.mxu3 %vm259_vm2, %v483_v7  ;;  %1215 = vmatmul.msk.bf16.vlgmr.msrb.gmra.mxu0 %vm259_vm2, %v577_v8 }
  0x2c   : > { %v586_v28 = vsel %vm560_vm4, %v576_v5, %v585_v24  ;;  %v595_v40 = vsel %vm560_vm4, %v585_v24, %v594_v37  ;;  %v756_v5 = vld [vmem:[%s1357_s27 + $0x8] sm:$0xc]  ;;  %v996_v24 = vunpack.c.l.b16 %v992_v19 }
  0x2d   : > { %v780_v8 = vunpack.c.l.b16 %v756_v5 }
  0x2e   : > { %v997_v31 = vpack.c.b16 %v781_v9, %v996_v24 }
  0x2f   : > { %v791_v20 = vpack.c.b16 %v781_v9, %v780_v8  ;;  %v870_v8 = vld [vmem:[%s1357_s27 + $0x30] sm:$0x7] }
  0x30   : > { %v999_v34 = vrot.slane %v997_v31, 3 }
  0x31   : > { %v878_v25 = vshrl.u32 %v791_v20, 16  ;;  %v797_v44 = vrot.slane %v791_v20, 2 }
  0x38   : > { %1182 = vmatmul.msk.bf16.gmra.mxu1 %vm259_vm2, %v1360_v10  ;;  %1187 = vmatmul.msk.bf16.vlgmr.msrb.gmra.mxu2 %vm259_vm2, %v369_v26  ;;  %v370_v10 = vrot.slane %v1363_v11, 1  ;;  %v888_v26 = vrot.slane %v886_v21, 2 }
  0x3a   : > { %v371_v38 = vsel %vm366_vm3, %v368_v22, %v370_v10  ;;  %v373_v56 = vsel %vm366_vm3, %v370_v10, %v372_v49  ;;  %v881_v22 = vshll.u32 %v791_v20, 16  ;;  %v1000_v10 = vrot.slane %v1270_v16, 3 }
  0x3b   : > { %1210 = vmatmul.msk.bf16.gmra.mxu3 %vm259_vm2, %v485_v27  ;;  %1216 = vmatmul.msk.bf16.gmra.mxu0 %vm259_vm2, %v586_v28  ;;  %v891_v28 = vrot.slane %v889_v23, 3  ;;  %v691_v20 = vsel %vm682_vm5, %v688_v55, %v690_v6 }
  0x3c   : > { %v883_v27 = vrot.slane %v881_v22, 3 }
  0x3d   : > { %v892_v33 = vor.u32 %v891_v28, %v888_v26 }
  0x48   : > { %1183 = vmatmul.msk.bf16.gmra.mxu1 %vm259_vm2, %v1363_v11  ;;  %1188 = vmatmul.msk.bf16.gmra.mxu2 %vm259_vm2, %v371_v38  ;;  %v600_v11 = vshll.u32 %v1464_v41, 16  ;;  %v1271_v38 = vld [vmem:[%s1357_s27 + $0x18] sm:$0xff] }
  0x4a   : > { %v602_v47 = vrot.slane %v600_v11, 2  ;;  %v798_v11 = vrot.slane %v1270_v16, 2 }
  0x4b   : > { %1211 = vmatmul.msk.bf16.gmra.mxu3 %vm259_vm2, %v487_v39  ;;  %1217 = vmatmul.msk.bf16.gmra.mxu0 %vm259_vm2, %v595_v40  ;;  %v895_v39 = vshrl.u32 %v1271_v38, 16  ;;  %v898_v40 = vshll.u32 %v1271_v38, 16 }
  0x4c   : > { %v603_v54 = vor.u32 %v602_v47, %v599_v46  ;;  %v799_v47 = vsel %vm682_vm5, %v797_v44, %v798_v11 }
  0x4d   : > { %v897_v42 = vrot.slane %v895_v39, 2  ;;  %v900_v43 = vrot.slane %v898_v40, 3 }
  0x4e   : > { %v604_v60 = vsel %vm560_vm4, %v594_v37, %v603_v54  ;;  %v1001_v37 = vsel %vm998_vm7, %v999_v34, %v1000_v10 }
  0x4f   : > { %v901_v46 = vor.u32 %v900_v43, %v897_v42 }
  0x51   : > { %v902_v48 = vsel %vm876_vm6, %v892_v33, %v901_v46 }
  0x58   : > { %1184 = vmatmul.msk.bf16.gmra.mxu1 %vm259_vm2, %v1366_v12  ;;  %1189 = vmatmul.msk.bf16.gmra.mxu2 %vm259_vm2, %v373_v56  ;;  %v606_v12 = vshrl.u32 %v1489_v61, 16  ;;  %v800_v56 = vrot.slane %v1271_v38, 2 }
  0x5a   : > { %v608_v3 = vrot.slane %v606_v12, 1  ;;  %v1543_v12 = vld [vmem:[%s1357_s27 + $0x28] sm:$0xff] }
  0x5b   : > { %1212 = vmatmul.msk.bf16.gmra.mxu3 %vm259_vm2, %v489_v36  ;;  %1218 = vmatmul.msk.bf16.gmra.mxu0 %vm259_vm2, %v604_v60  ;;  %v689_v36 = vsel %vm682_vm5, %v686_v50, %v688_v55  ;;  %v801_v60 = vsel %vm682_vm5, %v798_v11, %v800_v56  ;;  %v913_v15 = vshrl.u32 %v1543_v12, 16  ;;  %v916_v50 = vshll.u32 %v1543_v12, 16 }
  0x5c   : > { %v612_v7 = vor.u32 %v611_v4, %v608_v3  ;;  %v1006_v16 = vrot.slane %v1543_v12, 3 }
  0x5d   : > { %v915_v4 = vrot.slane %v913_v15, 2  ;;  %v918_v5 = vrot.slane %v916_v50, 3 }
  0x5e   : > { %v613_v18 = vsel %vm560_vm4, %v603_v54, %v612_v7  ;;  %v909_v54 = vrot.slane %v907_v53, 3  ;;  %v802_v7 = vrot.slane %v1526_v51, 2  ;;  %v1007_v23 = vsel %vm998_vm7, %v1004_v58, %v1006_v16 }
  0x60   : > { %v910_v57 = vor.u32 %v909_v54, %v906_v30  ;;  %v803_v19 = vsel %vm682_vm5, %v800_v56, %v802_v7 }
  0x62   : > { %v911_v62 = vsel %vm876_vm6, %v901_v46, %v910_v57 }
  0x68   : > { %1185 = vmatmul.msk.bf16.gmra.mxu1 %vm259_vm2, %v1369_v13  ;;  %1190 = vmatmul.msk.bf16.gmra.mxu2 %vm259_vm2, %v375_v14  ;;  %v880_v13 = vrot.slane %v878_v25, 2  ;;  %v919_v14 = vor.u32 %v918_v5, %v915_v4 }
  0x6a   : > { %v884_v32 = vor.u32 %v883_v27, %v880_v13  ;;  %v920_v41 = vsel %vm876_vm6, %v910_v57, %v919_v14 }
  0x6b   : > { %1213 = vmatmul.msk.bf16.gmra.mxu3 %vm259_vm2, %v491_v17  ;;  %1219 = vmatmul.msk.bf16.gmra.mxu0 %vm259_vm2, %v613_v18  ;;  %v874_v17 = vunpack.c.l.b16 %v870_v8 }
  0x6c   : > { %v893_v35 = vsel %vm876_vm6, %v884_v32, %v892_v33 }
  0x6d   : > { %v875_v24 = vpack.c.b16 %v874_v17, %v874_v17 }
  0x6f   : > { %v922_v13 = vshrl.u32 %v875_v24, 16  ;;  %v925_v27 = vshll.u32 %v875_v24, 16  ;;  %v1008_v40 = vrot.slane %v875_v24, 3 }
  0x71   : > { %v924_v34 = vrot.slane %v922_v13, 2 }
  0x78   : > { %1191 = vmatmul.msk.bf16.gmra.mxu2 %vm259_vm2, %v1473_v45  ;;  %1221 = vmatmul.msk.bf16.vlgmr.msra.gmra.mxu1 %vm259_vm2, %v685_v59  ;;  %v1002_v45 = vrot.slane %v1271_v38, 3 }
  0x7a   : > { %v1003_v49 = vsel %vm998_vm7, %v1000_v10, %v1002_v45  ;;  %v1005_v29 = vsel %vm998_vm7, %v1002_v45, %v1004_v58  ;;  %v927_v10 = vrot.slane %v925_v27, 3  ;;  %v766_v45 = vld [vmem:[%s1357_s27 + $0x30] sm:$0x3] }
  0x7b   : > { %1249 = vmatmul.msk.bf16.vlgmr.msra.gmra.mxu3 %vm259_vm2, %v893_v35  ;;  %1255 = vmatmul.msk.bf16.vlgmr.msra.gmra.mxu0 %vm259_vm2, %v1001_v37  ;;  %v692_v35 = vrot.slane %v1489_v61, 2  ;;  %v804_v37 = vrot.slane %v1543_v12, 2 }
  0x7c   : > { %v928_v39 = vor.u32 %v927_v10, %v924_v34 }
  0x7d   : > { %v693_v43 = vsel %vm682_vm5, %v690_v6, %v692_v35  ;;  %v805_v44 = vsel %vm682_vm5, %v802_v7, %v804_v37 }
  0x88   : > { %1222 = vmatmul.msk.bf16.gmra.mxu1 %vm259_vm2, %v687_v1  ;;  %1243 = vmatmul.msk.bf16.vlgmr.msra.gmra.mxu2 %vm259_vm2, %v799_v47  ;;  %v929_v47 = vsel %vm876_vm6, %v919_v14, %v928_v39 }
  0x8b   : > { %1250 = vmatmul.msk.bf16.gmra.mxu3 %vm259_vm2, %v902_v48  ;;  %1256 = vmatmul.msk.bf16.gmra.mxu0 %vm259_vm2, %v1003_v49  ;;  %v1009_v48 = vsel %vm998_vm7, %v1006_v16, %v1008_v40  ;;  %v790_v49 = vunpack.c.l.b16 %v766_v45 }
  0x8d   : > { %v796_v30 = vpack.c.b16 %v790_v49, %v790_v49 }
  0x95   : > { %v293_v59 = vpop.f32.mrf.mxu1 }
  0x98   : > { %1223 = vmatmul.msk.bf16.gmra.mxu1 %vm259_vm2, %v689_v36  ;;  %1244 = vmatmul.msk.bf16.gmra.mxu2 %vm259_vm2, %v801_v60  ;;  %v288_v63 = vpop.f32.mrf.mxu0 }
  0x9b   : > { %v1545_v0 = vpop.f32.mrf.mxu2  ;;  %1251 = vmatmul.msk.bf16.gmra.mxu3 %vm259_vm2, %v911_v62  ;;  %1257 = vmatmul.msk.bf16.gmra.mxu0 %vm259_vm2, %v1005_v29 }
  0x9d   : > { %v295_v1 = vpop.f32.mrf.mxu1 }
  0x9e   : > { %v1551_v2 = vpop.f32.mrf.mxu3 }
  0xa0   : > { %v290_v3 = vpop.f32.mrf.mxu0 }
  0xa3   : > { %v1556_v9 = vpop.f32.mrf.mxu2 }
  0xa5   : > { %v335_v18 = vpop.f32.mrf.mxu1 }
  0xa6   : > { %v336_v21 = vadd.f32 %v335_v18, %v288_v63  ;;  %v1561_v25 = vpop.f32.mrf.mxu3 }
  0xa8   : > { %1224 = vmatmul.msk.bf16.gmra.mxu1 %vm259_vm2, %v691_v20  ;;  %1245 = vmatmul.msk.bf16.gmra.mxu2 %vm259_vm2, %v803_v19  ;;  %v641_v22 = vpop.f32.mrf.mxu0 }
  0xab   : > { %v303_v26 = vpop.f32.mrf.mxu2  ;;  %1252 = vmatmul.msk.bf16.gmra.mxu3 %vm259_vm2, %v920_v41  ;;  %1258 = vmatmul.msk.bf16.gmra.mxu0 %vm259_vm2, %v1007_v23 }
  0xad   : > { %v337_v28 = vpop.f32.mrf.mxu1 }
  0xae   : > { %v338_v31 = vadd.f32 %v337_v28, %v290_v3  ;;  %v519_v32 = vpop.f32.mrf.mxu3 }
  0xb0   : > { %v643_v33 = vpop.f32.mrf.mxu0 }
  0xb3   : > { %v305_v38 = vpop.f32.mrf.mxu2 }
  0xb5   : > { %v340_v42 = vpop.f32.mrf.mxu1 }
  0xb6   : > { %v341_v11 = vadd.f32 %v340_v42, %v293_v59  ;;  %v521_v46 = vpop.f32.mrf.mxu3  ;;  %v806_v59 = vrot.slane %v796_v30, 2 }
  0xb8   : > { %1225 = vmatmul.msk.bf16.gmra.mxu1 %vm259_vm2, %v693_v43  ;;  %1246 = vmatmul.msk.bf16.gmra.mxu2 %vm259_vm2, %v805_v44  ;;  %v646_v61 = vpop.f32.mrf.mxu0  ;;  %v807_v63 = vsel %vm682_vm5, %v804_v37, %v806_v59 }
  0xbb   : > { %v405_v51 = vpop.f32.mrf.mxu2  ;;  %1253 = vmatmul.msk.bf16.gmra.mxu3 %vm259_vm2, %v929_v47  ;;  %1259 = vmatmul.msk.bf16.gmra.mxu0 %vm259_vm2, %v1009_v48 }
  0xbc   : > { %v430_v52 = vadd.f32 %v405_v51, %v336_v21 }
  0xbd   : > { %v342_v53 = vpop.f32.mrf.mxu1 }
  0xbe   : > { %v544_v54 = vadd.f32 %v519_v32, %v430_v52  ;;  %v343_v55 = vadd.f32 %v342_v53, %v295_v1  ;;  %v524_v56 = vpop.f32.mrf.mxu3 }
  0xc0   : > { %v648_v57 = vpop.f32.mrf.mxu0  ;;  %v1580_v58 = vadd.f32 %v641_v22, %v544_v54 }
  0xc3   : > { %v407_v36 = vpop.f32.mrf.mxu2 }
  0xc4   : > { %v431_v60 = vadd.f32 %v407_v36, %v338_v31 }
  0xc5   : > { %v345_v62 = vpop.f32.mrf.mxu1 }
  0xc6   : > { %v545_v29 = vadd.f32 %v521_v46, %v431_v60  ;;  %v346_v12 = vadd.f32 %v345_v62, %v1545_v0  ;;  %v526_v15 = vpop.f32.mrf.mxu3 }
  0xc8   : > { %1247 = vmatmul.msk.bf16.gmra.mxu2 %vm259_vm2, %v807_v63  ;;  %v651_v50 = vpop.f32.mrf.mxu0  ;;  %v1585_v3 = vadd.f32 %v643_v33, %v545_v29 }
  0xcb   : > { %v410_v1 = vpop.f32.mrf.mxu2 }
  0xcc   : > { %v432_v4 = vadd.f32 %v410_v1, %v341_v11 }
  0xcd   : > { %v347_v5 = vpop.f32.mrf.mxu1 }
  0xce   : > { %v546_v6 = vadd.f32 %v524_v56, %v432_v4  ;;  %v348_v7 = vadd.f32 %v347_v5, %v1556_v9  ;;  %v529_v8 = vpop.f32.mrf.mxu3  ;;  %v1611_v5 = vld [vmem:[%s1662_s2] ss:$0 sm:$0xff] }
  0xd0   : > { %v653_v14 = vpop.f32.mrf.mxu0  ;;  %v1588_v16 = vadd.f32 %v646_v61, %v546_v6 }
  0xd3   : > { %v412_v17 = vpop.f32.mrf.mxu2 }
  0xd4   : > { %v433_v18 = vadd.f32 %v412_v17, %v343_v55 }
  0xd5   : > { %v350_v20 = vpop.f32.mrf.mxu1 }
  0xd6   : > { %v547_v0 = vadd.f32 %v526_v15, %v433_v18  ;;  %v351_v19 = vadd.f32 %v350_v20, %v303_v26  ;;  %v531_v21 = vpop.f32.mrf.mxu3 }
  0xd8   : > { %v656_v41 = vpop.f32.mrf.mxu0  ;;  %v1590_v22 = vadd.f32 %v648_v57, %v547_v0 }
  0xdb   : > { %v415_v23 = vpop.f32.mrf.mxu2 }
  0xdc   : > { %v434_v24 = vadd.f32 %v415_v23, %v346_v12 }
  0xdd   : > { %v352_v13 = vpop.f32.mrf.mxu1 }
  0xde   : > { %v548_v27 = vadd.f32 %v529_v8, %v434_v24  ;;  %v353_v28 = vadd.f32 %v352_v13, %v305_v38  ;;  %v534_v31 = vpop.f32.mrf.mxu3 }
  0xe0   : > { %v658_v9 = vpop.f32.mrf.mxu0  ;;  %v1592_v32 = vadd.f32 %v651_v50, %v548_v27 }
  0xe3   : > { %v417_v33 = vpop.f32.mrf.mxu2 }
  0xe4   : > { %v435_v34 = vadd.f32 %v417_v33, %v348_v7 }
  0xe5   : > { %v355_v10 = vpop.f32.mrf.mxu1 }
  0xe6   : > { %v549_v35 = vadd.f32 %v531_v21, %v435_v34  ;;  %v356_v37 = vadd.f32 %v355_v10, %v1551_v2  ;;  %v536_v26 = vpop.f32.mrf.mxu3 }
  0xe8   : > { %v1595_v39 = vadd.f32 %v653_v14, %v549_v35  ;;  %v661_v40 = vpop.f32.mrf.mxu0 }
  0xeb   : > { %v420_v42 = vpop.f32.mrf.mxu2 }
  0xec   : > { %v436_v43 = vadd.f32 %v420_v42, %v351_v19 }
  0xed   : > { %v357_v44 = vpop.f32.mrf.mxu1 }
  0xee   : > { %v550_v11 = vadd.f32 %v534_v31, %v436_v43  ;;  %v358_v38 = vadd.f32 %v357_v44, %v1561_v25  ;;  %v539_v46 = vpop.f32.mrf.mxu3 }
  0xf0   : > { %v1598_v45 = vadd.f32 %v656_v41, %v550_v11  ;;  %v663_v61 = vpop.f32.mrf.mxu0 }
  0xf3   : > { %v422_v47 = vpop.f32.mrf.mxu2 }
  0xf4   : > { %v437_v48 = vadd.f32 %v422_v47, %v353_v28 }
  0xf5   : > { %v721_v49 = vpop.f32.mrf.mxu1 }
  0xf6   : > { %v551_v51 = vadd.f32 %v536_v26, %v437_v48  ;;  %v541_v52 = vpop.f32.mrf.mxu3  ;;  %v746_v15 = vadd.f32 %v721_v49, %v1580_v58 }
  0xf8   : > { %v1600_v2 = vadd.f32 %v658_v9, %v551_v51  ;;  %v1037_v54 = vpop.f32.mrf.mxu0 }
  0xfb   : > { %v425_v53 = vpop.f32.mrf.mxu2 }
  0xfc   : > { %v438_v30 = vadd.f32 %v425_v53, %v356_v37 }
  0xfd   : > { %v723_v57 = vpop.f32.mrf.mxu1 }
  0xfe   : > { %v552_v55 = vadd.f32 %v539_v46, %v438_v30  ;;  %v957_v56 = vpop.f32.mrf.mxu3  ;;  %v747_v8 = vadd.f32 %v723_v57, %v1585_v3 }
 0x100   : > { %v1602_v59 = vadd.f32 %v661_v40, %v552_v55  ;;  %v1039_v63 = vpop.f32.mrf.mxu0 }
 0x103   : > { %v427_v25 = vpop.f32.mrf.mxu2 }
 0x104   : > { %v439_v36 = vadd.f32 %v427_v25, %v358_v38 }
 0x105   : > { %v726_v12 = vpop.f32.mrf.mxu1 }
 0x106   : > { %v553_v60 = vadd.f32 %v541_v52, %v439_v36  ;;  %v959_v62 = vpop.f32.mrf.mxu3  ;;  %v748_v41 = vadd.f32 %v726_v12, %v1588_v16 }
 0x108   : > { %v1604_v29 = vadd.f32 %v663_v61, %v553_v60  ;;  %v1042_v58 = vpop.f32.mrf.mxu0 }
 0x10b   : > { %v835_v50 = vpop.f32.mrf.mxu2 }
 0x10c   : > { %v860_v1 = vadd.f32 %v835_v50, %v746_v15 }
 0x10d   : > { %v728_v17 = vpop.f32.mrf.mxu1 }
 0x10e   : > { %v982_v4 = vadd.f32 %v957_v56, %v860_v1  ;;  %v962_v6 = vpop.f32.mrf.mxu3  ;;  %v749_v9 = vadd.f32 %v728_v17, %v1590_v22 }
 0x110   : > { %v1062_v7 = vadd.f32 %v1037_v54, %v982_v4  ;;  %v1044_v13 = vpop.f32.mrf.mxu0 }
 0x112   : > { %v1076_v14 = vadd.f32 %v1611_v5, %v1062_v7 }
 0x113   : > { %v837_v18 = vpop.f32.mrf.mxu2 }
 0x114   : > { %1087 = vst.msk [vmem:[%s1616_s16] sm:$0xff] %vm1086_vm8, %v1076_v14  ;;  %v861_v20 = vadd.f32 %v837_v18, %v747_v8 }
 0x115   : > { %v731_v27 = vpop.f32.mrf.mxu1 }
 0x116   : > { %v983_v0 = vadd.f32 %v959_v62, %v861_v20  ;;  %v964_v21 = vpop.f32.mrf.mxu3  ;;  %v750_v42 = vadd.f32 %v731_v27, %v1592_v32 }
 0x118   : > { %v1063_v19 = vadd.f32 %v1039_v63, %v983_v0  ;;  %v1047_v35 = vpop.f32.mrf.mxu0 }
 0x11a   : > { %v1077_v23 = vadd.f32 %v1611_v5, %v1063_v19 }
 0x11b   : > { %v840_v24 = vpop.f32.mrf.mxu2 }
 0x11c   : > { %1088 = vst.msk [vmem:[%s1616_s16 + $0x8] sm:$0xff] %vm1086_vm8, %v1077_v23  ;;  %v862_v3 = vadd.f32 %v840_v24, %v748_v41 }
 0x11d   : > { %v733_v26 = vpop.f32.mrf.mxu1 }
 0x11e   : > { %v984_v28 = vadd.f32 %v962_v6, %v862_v3  ;;  %v967_v10 = vpop.f32.mrf.mxu3  ;;  %v751_v48 = vadd.f32 %v733_v26, %v1595_v39 }
 0x120   : > { %v1064_v31 = vadd.f32 %v1042_v58, %v984_v28  ;;  %v1049_v46 = vpop.f32.mrf.mxu0 }
 0x122   : > { %v1078_v33 = vadd.f32 %v1611_v5, %v1064_v31 }
 0x123   : > { %v842_v34 = vpop.f32.mrf.mxu2 }
 0x124   : > { %1089 = vst.msk [vmem:[%s1616_s16 + $0x10] sm:$0xff] %vm1086_vm8, %v1078_v33  ;;  %v863_v16 = vadd.f32 %v842_v34, %v749_v9 }
 0x125   : > { %v736_v61 = vpop.f32.mrf.mxu1 }
 0x126   : > { %v985_v37 = vadd.f32 %v964_v21, %v863_v16  ;;  %v969_v11 = vpop.f32.mrf.mxu3  ;;  %v752_v55 = vadd.f32 %v736_v61, %v1598_v45 }
 0x128   : > { %v1065_v40 = vadd.f32 %v1044_v13, %v985_v37  ;;  %v1052_v54 = vpop.f32.mrf.mxu0 }
 0x12a   : > { %v1079_v43 = vadd.f32 %v1611_v5, %v1065_v40 }
 0x12b   : > { %v845_v44 = vpop.f32.mrf.mxu2 }
 0x12c   : > { %1090 = vst.msk [vmem:[%s1616_s16 + $0x18] sm:$0xff] %vm1086_vm8, %v1079_v43  ;;  %v864_v22 = vadd.f32 %v845_v44, %v750_v42 }
 0x12d   : > { %v738_v57 = vpop.f32.mrf.mxu1 }
 0x12e   : > { %v986_v38 = vadd.f32 %v967_v10, %v864_v22  ;;  %v972_v53 = vpop.f32.mrf.mxu3  ;;  %v753_v63 = vadd.f32 %v738_v57, %v1600_v2 }
 0x130   : > { %v1066_v47 = vadd.f32 %v1047_v35, %v986_v38  ;;  %v1054_v15 = vpop.f32.mrf.mxu0 }
 0x132   : > { %v1080_v49 = vadd.f32 %v1611_v5, %v1066_v47 }
 0x133   : > { %v847_v51 = vpop.f32.mrf.mxu2 }
 0x134   : > { %1091 = vst.msk [vmem:[%s1616_s16 + $0x20] sm:$0xff] %vm1086_vm8, %v1080_v49  ;;  %v865_v32 = vadd.f32 %v847_v51, %v751_v48 }
 0x135   : > { %v741_v1 = vpop.f32.mrf.mxu1 }
 0x136   : > { %v987_v52 = vadd.f32 %v969_v11, %v865_v32  ;;  %v974_v62 = vpop.f32.mrf.mxu3  ;;  %v754_v7 = vadd.f32 %v741_v1, %v1602_v59 }
 0x138   : > { %v1067_v30 = vadd.f32 %v1049_v46, %v987_v52  ;;  %v1057_v17 = vpop.f32.mrf.mxu0 }
 0x13a   : > { %v1081_v56 = vadd.f32 %v1611_v5, %v1067_v30 }
 0x13b   : > { %v850_v25 = vpop.f32.mrf.mxu2 }
 0x13c   : > { %1092 = vst.msk [vmem:[%s1616_s16 + $0x28] sm:$0xff] %vm1086_vm8, %v1081_v56  ;;  %v866_v39 = vadd.f32 %v850_v25, %v752_v55 }
 0x13d   : > { %v743_v20 = vpop.f32.mrf.mxu1 }
 0x13e   : > { %v988_v36 = vadd.f32 %v972_v53, %v866_v39  ;;  %v977_v8 = vpop.f32.mrf.mxu3  ;;  %v755_v19 = vadd.f32 %v743_v20, %v1604_v29 }
 0x140   : > { %v1068_v60 = vadd.f32 %v1052_v54, %v988_v36  ;;  %v1059_v13 = vpop.f32.mrf.mxu0 }
 0x142   : > { %v1082_v12 = vadd.f32 %v1611_v5, %v1068_v60 }
 0x143   : > { %v852_v50 = vpop.f32.mrf.mxu2 }
 0x144   : > { %1093 = vst.msk [vmem:[%s1616_s16 + $0x30] sm:$0xff] %vm1086_vm8, %v1082_v12  ;;  %v867_v45 = vadd.f32 %v852_v50, %v753_v63 }
 0x146   : > { %v989_v4 = vadd.f32 %v974_v62, %v867_v45  ;;  %v979_v23 = vpop.f32.mrf.mxu3 }
 0x148   : > { %v1069_v6 = vadd.f32 %v1054_v15, %v989_v4 }
 0x14a   : > { %v1083_v58 = vadd.f32 %v1611_v5, %v1069_v6 }
 0x14b   : > { %v855_v14 = vpop.f32.mrf.mxu2 }
 0x14c   : > { %1094 = vst.msk [vmem:[%s1616_s16 + $0x38] sm:$0xff] %vm1086_vm8, %v1083_v58  ;;  %v868_v2 = vadd.f32 %v855_v14, %v754_v7 }
 0x14e   : > { %v990_v18 = vadd.f32 %v977_v8, %v868_v2 }
 0x150   : > { %v1070_v0 = vadd.f32 %v1057_v17, %v990_v18 }
 0x152   : > { %v1084_v21 = vadd.f32 %v1611_v5, %v1070_v0 }
 0x153   : > { %v857_v41 = vpop.f32.mrf.mxu2 }
 0x154   : > { %1095 = vst.msk [vmem:[%s1616_s16 + $0x40] sm:$0xff] %vm1086_vm8, %v1084_v21  ;;  %v869_v59 = vadd.f32 %v857_v41, %v755_v19 }
 0x156   : > { %v991_v24 = vadd.f32 %v979_v23, %v869_v59 }
 0x158   : > { %v1071_v3 = vadd.f32 %v1059_v13, %v991_v24 }
 0x15a   : > { %v1085_v27 = vadd.f32 %v1611_v5, %v1071_v3 }
 0x15c   : > { %1096 = vst.msk [vmem:[%s1616_s16 + $0x48] sm:$0xff] %vm1086_vm8, %v1085_v27 }
 0x15d PF: > { %s13_s12 = sadd.s32 1, %s1301_s12  }
 0x15e   : > { %p10_p4 = scmp.ge.s32.totalorder %s13_s12, 4  }
 0x160   :  { %12 = sbr.rel (!%p10_p4) target bundleno = 1 (0x1), region = 70 }

</bundles_post_ra>
